<compile_context>
chip_gen: v7x
topology: tpu7x:2x2x1
jax: 0.10.0
libtpu: 0.0.40
codegen_flags: <defaults>
</compile_context>

<pallas_src>
import functools

import jax
import jax.numpy as jnp
from jax.experimental import pallas as pl
from jax.experimental.pallas import tpu as pltpu


def _gridfeat_kernel(x_ref, w1t_ref, b1_ref, w2t_ref, b2_ref, o_ref, *, tc, n_chunks):
    # x_ref:   (Cin, tn)   f32   current block of points (channels on sublanes)
    # w1t_ref: (H, Cin)    f32   layer-1 weight, BN scale folded in
    # b1_ref:  (H, 1)      f32   layer-1 shift (folded BN + conv bias)
    # w2t_ref: (Cout, H)   f32   layer-2 weight, BN scale folded in
    # b2_ref:  (Cout, 1)   f32   layer-2 shift
    # o_ref:   (Cout, tn)  bf16 (or f32)
    cin = x_ref.shape[0]

    def chunk(c, carry):
        start = pl.multiple_of(c * tc, 128)
        x = x_ref[:, pl.ds(start, tc)]                       # (Cin, tc) f32

        # Layer 1: Cin is tiny (3) -> broadcasted rank-1 FMAs on the VPU,
        # full f32 (no bf16 VPU path -> also optimal on v5e).
        acc = w1t_ref[:, 0:1] * x[0:1, :]                    # (H, tc)
        for k in range(1, cin):                              # Cin known at trace time
            acc = acc + w1t_ref[:, k:k + 1] * x[k:k + 1, :]
        h = jnp.maximum(acc + b1_ref[...], 0.0)              # (H, tc)

        # Layer 2: K=H matmul on the MXU.  Kept in f32 (HIGHEST precision):
        # the MXU work is hidden under the HBM store, so accuracy is free.
        y = jnp.dot(w2t_ref[...], h,
                    preferred_element_type=jnp.float32,
                    precision=jax.lax.Precision.HIGHEST)     # (Cout, tc)
        y = jnp.maximum(y + b2_ref[...], 0.0)
        o_ref[:, pl.ds(start, tc)] = y.astype(o_ref.dtype)
        return carry

    # Unrolled inner loop over lane sub-chunks bounds f32 intermediate live
    # ranges (avoids VMEM spills once tn grows past ~512).
    jax.lax.fori_loop(0, n_chunks, chunk, None, unroll=True)


def _round_up(x, m):
    return (x + m - 1) // m * m


@functools.partial(jax.jit, static_argnames=("tn", "out_dtype"))
def grid_feat_forward(grid, params, tn=1024, out_dtype=jnp.bfloat16):
    """grid: (B, Cin, N) float32 -> (B, Cout, N) out_dtype (default bf16)."""
    B, Cin, N = grid.shape
    w1t, b1, w2t, b2 = params
    H = w1t.shape[0]
    Cout = w2t.shape[0]

    # Clamp the point tile to the (128-rounded) problem size; keep it a
    # multiple of 128 lanes.  No host-side pad / post-call slice: Pallas masks
    # the boundary block for ragged N, so there is exactly one output pass.
    tn_eff = max(128, min(_round_up(tn, 128), _round_up(N, 128)))
    for tc in (512, 256, 128):          # largest sub-chunk that divides the tile
        if tn_eff % tc == 0:
            break
    n_chunks = tn_eff // tc

    out_bytes = B * Cout * N * jnp.dtype(out_dtype).itemsize
    in_bytes = B * Cin * N * 4 + (H * Cin + H + Cout * H + Cout) * 4
    flops = 2 * B * N * (Cin * H + H * Cout)

    return pl.pallas_call(
        functools.partial(_gridfeat_kernel, tc=tc, n_chunks=n_chunks),
        out_shape=jax.ShapeDtypeStruct((B, Cout, N), out_dtype),
        grid_spec=pl.GridSpec(
            grid=(B, pl.cdiv(N, tn_eff)),
            in_specs=[
                # x: (Cin, tn) blocks read directly out of the NCW input.
                pl.BlockSpec((None, Cin, tn_eff), lambda b, j: (b, 0, j)),
                # weights / shifts: constant index maps -> resident in VMEM.
                pl.BlockSpec((H, Cin), lambda b, j: (0, 0)),
                pl.BlockSpec((H, 1), lambda b, j: (0, 0)),
                pl.BlockSpec((Cout, H), lambda b, j: (0, 0)),
                pl.BlockSpec((Cout, 1), lambda b, j: (0, 0)),
            ],
            # lane-dense (Cout, tn) blocks written straight into (B, Cout, N).
            out_specs=pl.BlockSpec((None, Cout, tn_eff), lambda b, j: (b, 0, j)),
        ),
        compiler_params=pltpu.CompilerParams(
            dimension_semantics=("parallel", "parallel")),
        cost_estimate=pl.CostEstimate(
            flops=flops, transcendentals=0,
            bytes_accessed=in_bytes + out_bytes),
    )(grid, w1t, b1, w2t, b2)


def make_params(key, in_dim=3, hidden=64, out_dim=128, eps=1e-5):
    """Deterministic synthetic params; BN (inference) folded into the weights.

    Returns (kernel_params, ref_params):
      kernel_params = (w1t (H,Cin) f32, b1 (H,1) f32, w2t (Cout,H) f32, b2 (Cout,1) f32)
      ref_params    = folded weights/shifts for the reference path.
    """
    ks = jax.random.split(key, 12)

    def layer(keys, cin, cout):
        kw, kb, kg, kbeta, kmean, kvar = keys
        w = jax.random.normal(kw, (cin, cout), jnp.float32) * 0.1     # conv weight (Cin, Cout)
        b = jax.random.normal(kb, (cout,), jnp.float32) * 0.01        # conv bias
        gamma = 1.0 + 0.1 * jax.random.normal(kg, (cout,), jnp.float32)
        beta = 0.1 * jax.random.normal(kbeta, (cout,), jnp.float32)
        mean = 0.05 * jax.random.normal(kmean, (cout,), jnp.float32)
        var = jnp.abs(1.0 + 0.1 * jax.random.normal(kvar, (cout,), jnp.float32))
        scale = gamma / jnp.sqrt(var + eps)
        shift = beta + (b - mean) * scale
        w_folded = w * scale[None, :]                                 # fold BN scale into weight
        return w_folded, shift

    w1f, sh1 = layer(ks[0:6], in_dim, hidden)
    w2f, sh2 = layer(ks[6:12], hidden, out_dim)

    kernel_params = (
        jnp.asarray(w1f.T, jnp.float32),                # (H, Cin)
        sh1.reshape(hidden, 1).astype(jnp.float32),     # (H, 1)
        jnp.asarray(w2f.T, jnp.float32),                # (Cout, H)  f32 (accuracy is free)
        sh2.reshape(out_dim, 1).astype(jnp.float32),    # (Cout, 1)
    )
    ref_params = (w1f, sh1, w2f, sh2)
    return kernel_params, ref_params


def _reference(grid, ref_params):
    w1f, sh1, w2f, sh2 = ref_params
    x = jnp.transpose(grid, (0, 2, 1))                  # (B, N, Cin)
    h = jnp.maximum(x @ w1f + sh1, 0.0)
    y = jnp.maximum(h @ w2f + sh2, 0.0)
    return jnp.transpose(y, (0, 2, 1))                  # (B, Cout, N)


if __name__ == "__main__":
    key = jax.random.PRNGKey(0)
    k_p, k_x = jax.random.split(key)

    B, Cin, N = 2, 3, 1024
    params, ref_params = make_params(k_p, in_dim=Cin, hidden=64, out_dim=128)
    grid = jax.random.normal(k_x, (B, Cin, N), jnp.float32)

    # Even N, default tile (tn clamps to 1024 -> grid (2, 1)).
    out = jax.block_until_ready(grid_feat_forward(grid, params))
    ref = _reference(grid, ref_params)
    assert out.shape == (B, 128, N), out.shape
    assert out.dtype == jnp.bfloat16, out.dtype
    # bf16 output dominates the error budget.
    err = float(jnp.max(jnp.abs(out.astype(jnp.float32) - ref)))
    assert err < 2e-2, err

    # Ragged N: boundary block handled by Pallas masking (no pad / no slice).
    N2 = 1000
    grid2 = jax.random.normal(jax.random.PRNGKey(1), (B, Cin, N2), jnp.float32)
    out2 = jax.block_until_ready(grid_feat_forward(grid2, params, tn=512))
    ref2 = _reference(grid2, ref_params)
    assert out2.shape == (B, 128, N2), out2.shape
    err2 = float(jnp.max(jnp.abs(out2.astype(jnp.float32) - ref2)))
    assert err2 < 2e-2, err2

    print("KERNEL_OK")
</pallas_src>

<mosaic_0001>
module attributes {stable_mosaic.version = 11 : i64} {
  func.func @_gridfeat_kernel(%arg0: i32, %arg1: i32, %arg2: memref<1x3x1024xf32, #tpu.memory_space<vmem>>, %arg3: memref<64x3xf32, #tpu.memory_space<vmem>>, %arg4: memref<64x1xf32, #tpu.memory_space<vmem>>, %arg5: memref<128x64xf32, #tpu.memory_space<vmem>>, %arg6: memref<128x1xf32, #tpu.memory_space<vmem>>, %arg7: memref<1x128x1024xbf16, #tpu.memory_space<vmem>>) attributes {dimension_semantics = [#tpu.dimension_semantics<parallel>, #tpu.dimension_semantics<parallel>], iteration_bounds = array<i64: 2, 1>, scalar_prefetch = 0 : i64, scratch_operands = 0 : i64, tpu.core_type = #tpu.core_type<tc>, window_params = [{transform_indices = @transform_0, window_bounds = array<i64: 1, 3, 1024>}, {pipeline_mode = #tpu.pipeline_mode<synchronous>, transform_indices = @transform_1, window_bounds = array<i64: 64, 3>}, {pipeline_mode = #tpu.pipeline_mode<synchronous>, transform_indices = @transform_2, window_bounds = array<i64: 64, 1>}, {pipeline_mode = #tpu.pipeline_mode<synchronous>, transform_indices = @transform_3, window_bounds = array<i64: 128, 64>}, {pipeline_mode = #tpu.pipeline_mode<synchronous>, transform_indices = @transform_4, window_bounds = array<i64: 128, 1>}, {transform_indices = @transform_5, window_bounds = array<i64: 1, 128, 1024>}]} {
    %c0_i32 = arith.constant 0 : i32
    %c512_i32 = arith.constant 512 : i32
    %0 = arith.muli %c0_i32, %c512_i32 : i32
    %1 = tpu.assume_multiple %0, 128 : i32
    %c0 = arith.constant 0 : index
    %c0_0 = arith.constant 0 : index
    %2 = arith.index_cast %1 : i32 to index
    %3 = vector.load %arg2[%c0, %c0_0, %2] : memref<1x3x1024xf32, #tpu.memory_space<vmem>>, vector<1x3x512xf32>
    %4 = vector.shape_cast %3 : vector<1x3x512xf32> to vector<3x512xf32>
    %c0_1 = arith.constant 0 : index
    %c0_2 = arith.constant 0 : index
    %5 = vector.load %arg3[%c0_1, %c0_2] : memref<64x3xf32, #tpu.memory_space<vmem>>, vector<64x1xf32>
    %6 = vector.extract_strided_slice %4 {offsets = [0, 0], sizes = [1, 512], strides = [1, 1]} : vector<3x512xf32> to vector<1x512xf32>
    %7 = vector.broadcast %5 : vector<64x1xf32> to vector<64x512xf32>
    %8 = vector.broadcast %6 : vector<1x512xf32> to vector<64x512xf32>
    %9 = arith.mulf %7, %8 : vector<64x512xf32>
    %c0_3 = arith.constant 0 : index
    %c1 = arith.constant 1 : index
    %10 = vector.load %arg3[%c0_3, %c1] : memref<64x3xf32, #tpu.memory_space<vmem>>, vector<64x1xf32>
    %11 = vector.extract_strided_slice %4 {offsets = [1, 0], sizes = [1, 512], strides = [1, 1]} : vector<3x512xf32> to vector<1x512xf32>
    %12 = vector.broadcast %10 : vector<64x1xf32> to vector<64x512xf32>
    %13 = vector.broadcast %11 : vector<1x512xf32> to vector<64x512xf32>
    %14 = arith.mulf %12, %13 : vector<64x512xf32>
    %15 = arith.addf %9, %14 : vector<64x512xf32>
    %c0_4 = arith.constant 0 : index
    %c2 = arith.constant 2 : index
    %16 = vector.load %arg3[%c0_4, %c2] : memref<64x3xf32, #tpu.memory_space<vmem>>, vector<64x1xf32>
    %17 = vector.extract_strided_slice %4 {offsets = [2, 0], sizes = [1, 512], strides = [1, 1]} : vector<3x512xf32> to vector<1x512xf32>
    %18 = vector.broadcast %16 : vector<64x1xf32> to vector<64x512xf32>
    %19 = vector.broadcast %17 : vector<1x512xf32> to vector<64x512xf32>
    %20 = arith.mulf %18, %19 : vector<64x512xf32>
    %21 = arith.addf %15, %20 : vector<64x512xf32>
    %c0_5 = arith.constant 0 : index
    %c0_6 = arith.constant 0 : index
    %22 = vector.load %arg4[%c0_5, %c0_6] : memref<64x1xf32, #tpu.memory_space<vmem>>, vector<64x1xf32>
    %23 = vector.broadcast %22 : vector<64x1xf32> to vector<64x512xf32>
    %24 = arith.addf %21, %23 : vector<64x512xf32>
    %cst = arith.constant 0.000000e+00 : f32
    %25 = vector.broadcast %cst : f32 to vector<64x512xf32>
    %26 = arith.maximumf %24, %25 : vector<64x512xf32>
    %c0_7 = arith.constant 0 : index
    %c0_8 = arith.constant 0 : index
    %27 = vector.load %arg5[%c0_7, %c0_8] : memref<128x64xf32, #tpu.memory_space<vmem>>, vector<128x64xf32>
    %cst_9 = arith.constant dense<0.000000e+00> : vector<128x512xf32>
    %28 = tpu.matmul %27, %26, %cst_9 {dimension_numbers = #tpu.dot_dimension_numbers<[1], [0], [0], [1], [0, 0, 1, 1], [], []>, precision = #tpu.contract_precision<fp32>} : vector<128x64xf32>, vector<64x512xf32>, vector<128x512xf32> -> vector<128x512xf32>
    %c0_10 = arith.constant 0 : index
    %c0_11 = arith.constant 0 : index
    %29 = vector.load %arg6[%c0_10, %c0_11] : memref<128x1xf32, #tpu.memory_space<vmem>>, vector<128x1xf32>
    %30 = vector.broadcast %29 : vector<128x1xf32> to vector<128x512xf32>
    %31 = arith.addf %28, %30 : vector<128x512xf32>
    %cst_12 = arith.constant 0.000000e+00 : f32
    %32 = vector.broadcast %cst_12 : f32 to vector<128x512xf32>
    %33 = arith.maximumf %31, %32 : vector<128x512xf32>
    %34 = arith.truncf %33 : vector<128x512xf32> to vector<128x512xbf16>
    %c0_13 = arith.constant 0 : index
    %c0_14 = arith.constant 0 : index
    %35 = arith.index_cast %1 : i32 to index
    %36 = vector.load %arg7[%c0_13, %c0_14, %35] : memref<1x128x1024xbf16, #tpu.memory_space<vmem>>, vector<1x128x512xbf16>
    %37 = vector.shape_cast %36 : vector<1x128x512xbf16> to vector<128x512xbf16>
    %38 = vector.shape_cast %34 : vector<128x512xbf16> to vector<1x128x512xbf16>
    tpu.vector_store %arg7[%c0_13, %c0_14, %35], %38 {strides = array<i32>} : memref<1x128x1024xbf16, #tpu.memory_space<vmem>>, vector<1x128x512xbf16>,
    %c1_i32 = arith.constant 1 : i32
    %c512_i32_15 = arith.constant 512 : i32
    %39 = arith.muli %c1_i32, %c512_i32_15 : i32
    %40 = tpu.assume_multiple %39, 128 : i32
    %c0_16 = arith.constant 0 : index
    %c0_17 = arith.constant 0 : index
    %41 = arith.index_cast %40 : i32 to index
    %42 = vector.load %arg2[%c0_16, %c0_17, %41] : memref<1x3x1024xf32, #tpu.memory_space<vmem>>, vector<1x3x512xf32>
    %43 = vector.shape_cast %42 : vector<1x3x512xf32> to vector<3x512xf32>
    %c0_18 = arith.constant 0 : index
    %c0_19 = arith.constant 0 : index
    %44 = vector.load %arg3[%c0_18, %c0_19] : memref<64x3xf32, #tpu.memory_space<vmem>>, vector<64x1xf32>
    %45 = vector.extract_strided_slice %43 {offsets = [0, 0], sizes = [1, 512], strides = [1, 1]} : vector<3x512xf32> to vector<1x512xf32>
    %46 = vector.broadcast %44 : vector<64x1xf32> to vector<64x512xf32>
    %47 = vector.broadcast %45 : vector<1x512xf32> to vector<64x512xf32>
    %48 = arith.mulf %46, %47 : vector<64x512xf32>
    %c0_20 = arith.constant 0 : index
    %c1_21 = arith.constant 1 : index
    %49 = vector.load %arg3[%c0_20, %c1_21] : memref<64x3xf32, #tpu.memory_space<vmem>>, vector<64x1xf32>
    %50 = vector.extract_strided_slice %43 {offsets = [1, 0], sizes = [1, 512], strides = [1, 1]} : vector<3x512xf32> to vector<1x512xf32>
    %51 = vector.broadcast %49 : vector<64x1xf32> to vector<64x512xf32>
    %52 = vector.broadcast %50 : vector<1x512xf32> to vector<64x512xf32>
    %53 = arith.mulf %51, %52 : vector<64x512xf32>
    %54 = arith.addf %48, %53 : vector<64x512xf32>
    %c0_22 = arith.constant 0 : index
    %c2_23 = arith.constant 2 : index
    %55 = vector.load %arg3[%c0_22, %c2_23] : memref<64x3xf32, #tpu.memory_space<vmem>>, vector<64x1xf32>
    %56 = vector.extract_strided_slice %43 {offsets = [2, 0], sizes = [1, 512], strides = [1, 1]} : vector<3x512xf32> to vector<1x512xf32>
    %57 = vector.broadcast %55 : vector<64x1xf32> to vector<64x512xf32>
    %58 = vector.broadcast %56 : vector<1x512xf32> to vector<64x512xf32>
    %59 = arith.mulf %57, %58 : vector<64x512xf32>
    %60 = arith.addf %54, %59 : vector<64x512xf32>
    %c0_24 = arith.constant 0 : index
    %c0_25 = arith.constant 0 : index
    %61 = vector.load %arg4[%c0_24, %c0_25] : memref<64x1xf32, #tpu.memory_space<vmem>>, vector<64x1xf32>
    %62 = vector.broadcast %61 : vector<64x1xf32> to vector<64x512xf32>
    %63 = arith.addf %60, %62 : vector<64x512xf32>
    %cst_26 = arith.constant 0.000000e+00 : f32
    %64 = vector.broadcast %cst_26 : f32 to vector<64x512xf32>
    %65 = arith.maximumf %63, %64 : vector<64x512xf32>
    %c0_27 = arith.constant 0 : index
    %c0_28 = arith.constant 0 : index
    %66 = vector.load %arg5[%c0_27, %c0_28] : memref<128x64xf32, #tpu.memory_space<vmem>>, vector<128x64xf32>
    %cst_29 = arith.constant dense<0.000000e+00> : vector<128x512xf32>
    %67 = tpu.matmul %66, %65, %cst_29 {dimension_numbers = #tpu.dot_dimension_numbers<[1], [0], [0], [1], [0, 0, 1, 1], [], []>, precision = #tpu.contract_precision<fp32>} : vector<128x64xf32>, vector<64x512xf32>, vector<128x512xf32> -> vector<128x512xf32>
    %c0_30 = arith.constant 0 : index
    %c0_31 = arith.constant 0 : index
    %68 = vector.load %arg6[%c0_30, %c0_31] : memref<128x1xf32, #tpu.memory_space<vmem>>, vector<128x1xf32>
    %69 = vector.broadcast %68 : vector<128x1xf32> to vector<128x512xf32>
    %70 = arith.addf %67, %69 : vector<128x512xf32>
    %cst_32 = arith.constant 0.000000e+00 : f32
    %71 = vector.broadcast %cst_32 : f32 to vector<128x512xf32>
    %72 = arith.maximumf %70, %71 : vector<128x512xf32>
    %73 = arith.truncf %72 : vector<128x512xf32> to vector<128x512xbf16>
    %c0_33 = arith.constant 0 : index
    %c0_34 = arith.constant 0 : index
    %74 = arith.index_cast %40 : i32 to index
    %75 = vector.load %arg7[%c0_33, %c0_34, %74] : memref<1x128x1024xbf16, #tpu.memory_space<vmem>>, vector<1x128x512xbf16>
    %76 = vector.shape_cast %75 : vector<1x128x512xbf16> to vector<128x512xbf16>
    %77 = vector.shape_cast %73 : vector<128x512xbf16> to vector<1x128x512xbf16>
    tpu.vector_store %arg7[%c0_33, %c0_34, %74], %77 {strides = array<i32>} : memref<1x128x1024xbf16, #tpu.memory_space<vmem>>, vector<1x128x512xbf16>,
    %c2_i32 = arith.constant 2 : i32
    return
  }
  func.func @transform_0(%arg0: i32, %arg1: i32) -> (i32, i32, i32) {
    %c0_i32 = arith.constant 0 : i32
    %c0_i32_0 = arith.constant 0 : i32
    return %arg0, %c0_i32, %arg1 : i32, i32, i32
  }
  func.func @transform_1(%arg0: i32, %arg1: i32) -> (i32, i32) {
    %c0_i32 = arith.constant 0 : i32
    %c0_i32_0 = arith.constant 0 : i32
    %c0_i32_1 = arith.constant 0 : i32
    return %c0_i32, %c0_i32_0 : i32, i32
  }
  func.func @transform_2(%arg0: i32, %arg1: i32) -> (i32, i32) {
    %c0_i32 = arith.constant 0 : i32
    %c0_i32_0 = arith.constant 0 : i32
    %c0_i32_1 = arith.constant 0 : i32
    return %c0_i32, %c0_i32_0 : i32, i32
  }
  func.func @transform_3(%arg0: i32, %arg1: i32) -> (i32, i32) {
    %c0_i32 = arith.constant 0 : i32
    %c0_i32_0 = arith.constant 0 : i32
    %c0_i32_1 = arith.constant 0 : i32
    return %c0_i32, %c0_i32_0 : i32, i32
  }
  func.func @transform_4(%arg0: i32, %arg1: i32) -> (i32, i32) {
    %c0_i32 = arith.constant 0 : i32
    %c0_i32_0 = arith.constant 0 : i32
    %c0_i32_1 = arith.constant 0 : i32
    return %c0_i32, %c0_i32_0 : i32, i32
  }
  func.func @transform_5(%arg0: i32, %arg1: i32) -> (i32, i32, i32) {
    %c0_i32 = arith.constant 0 : i32
    %c0_i32_0 = arith.constant 0 : i32
    return %arg0, %c0_i32, %arg1 : i32, i32, i32
  }
}

</mosaic_0001>

<bundles_post_ra>
// kernel: grid_feat_forward.1
= control target key start
LH: loop header
LB: loop body
LE: loop exit
PB: predicated region body
PF: predicated region fallthrough
CT: control target
= control target key end

     0   :  { %10 = vsyncpa [#allocation3], 0  ;;  %s13136_s0 = inlined_call_operand.vmem [shape: f32[2,3,1024], index: 0, kind: input, shape index: {}]   ;;  %s13137_s1 = inlined_call_operand.vmem [shape: f32[64,3], index: 1, kind: input, shape index: {}]   ;;  %s13138_s2 = inlined_call_operand.vmem [shape: f32[64,1], index: 2, kind: input, shape index: {}]   ;;  %s13139_s3 = inlined_call_operand.vmem [shape: f32[128,64], index: 3, kind: input, shape index: {}]   ;;  %s13140_s4 = inlined_call_operand.vmem [shape: f32[128,1], index: 4, kind: input, shape index: {}]   ;;  %s13141_s5 = inlined_call_operand.hbm [shape: bf16[2,128,1024], index: 5, kind: output, shape index: {}]  }
   0x1   :  { %12 = vsyncpa [#allocation3 + $0x1], 0  ;;  %s9306_s18 = smov 0   ;;  %s9308_s19 = smov 0  }
   0x2   :  { %s9310_s20 = smov 0   ;;  %s9312_s21 = smov 0  }
   0x3   :  { %s9314_s22 = smov 0   ;;  %s9316_s23 = smov 0  }
   0x4 LB: > { %s7768_s24 = sadd.s32 4294967295, %s9267_s23   ;;  %s7769_s25 = sadd.s32 4294967294, %s9267_s23   ;;  %s9267_s23 = sphi %s9316_s23, %s18_s23   ;;  %s9263_s22 = sphi %s9314_s22, %s14212_s22   ;;  %s9259_s21 = sphi %s9312_s21, %s14211_s21   ;;  %s9255_s20 = sphi %s9310_s20, %s14210_s20   ;;  %s9251_s19 = sphi %s9308_s19, %s14209_s19   ;;  %s9247_s18 = sphi %s9306_s18, %s14208_s18  }
   0x5   : > { %s30_s26 = sadd.s32 1, %s9263_s22  ;;  %s151_s27 = sadd.s32 1, %s9255_s20 }
   0x6   : > { %p32_p0 = scmp.ge.s32.totalorder %s30_s26, 2  ;;  %p161_p1 = scmp.ne.s32.totalorder %s9255_s20, %s9251_s19 }
   0x7   : > { %p162_p2 = scmp.eq.s32.totalorder %s7768_s24, 1  ;;  %p167_p3 = scmp.ne.s32.totalorder %s9251_s19, %s9247_s18 }
   0x8   : > { %s14214_s26 = smov (%p32_p0, %s30_s26), 0  ;;  %p168_p5 = scmp.eq.s32.totalorder %s7769_s25, 1 }
   0x9   : > { %p9346_p4 = por %p162_p2, %p161_p1  ;;  %s146_s29 = ssub.s32 %s9263_s22, %s14214_s26 }
   0xa   : > { %p7772_p6 = scmp.ge.s32.totalorder %s9267_s23, 1  ;;  %p149_p7 = scmp.eq.s32.totalorder %s146_s29, 0 }
   0xb   : > { %p9353_p8 = por %p168_p5, %p167_p3  ;;  %p211_p9 = scmp.lt.s32.totalorder %s9267_s23, 3 }
   0xc   : > { %s9359_s6 = scalar_select %p149_p7, %s9255_s20, %s151_s27  }
   0xd   : > { %p212_p10 = pnand %p7772_p6, %p211_p9 }
   0xf   : > { %215 = sbr.rel (%p212_p10) target bundleno = 1285 (0x505), region = 40 }
  0x16   : > { %v9364_v0 = vld [vmem:[%s13137_s1] sm:$0xff]  ;;  %v13144_v1 = vmov 2   ;;  %v13146_v2 = vmov 1   ;;  %v9373_v3 = vld [vmem:[%s13137_s1 + $0x10] sm:$0xff]  ;;  %v9378_v4 = vld [vmem:[%s13137_s1 + $0x8] sm:$0xff]  ;;  %v13142_v7 = vmov 0   ;;  %v306_v20 = vlaneseq }
  0x17   : > { %9159 = vset.pattern.permute.xlu0 %v13144_v1  ;;  %9158 = vset.pattern.permute.xlu1 %v13146_v2  ;;  %v261_v5 = vld [vmem:[%s13137_s1 + $0x28] sm:$0xff]  ;;  %v260_v6 = vld [vmem:[%s13137_s1 + $0x20] sm:$0xff]  ;;  %v263_v8 = vld [vmem:[%s13137_s1 + $0x38] sm:$0xff]  ;;  %v13148_v19 = vmov 0.0   ;;  %p244_p11 = scmp.lt.s32.totalorder %s9259_s21, 1  ;;  %vm862_vm0 = vcmask 523264  }
  0x18   : > { %507 = vperm.xlu0 %9159, %v9364_v0   ;;  %375 = vperm.xlu1 %9158, %v9364_v0   ;;  %v9401_v9 = vld [vmem:[%s13137_s1 + $0x18] sm:$0xff]  ;;  %v638_v10 = vld [vmem:[%s13138_s2] sm:$0xff]  ;;  %v9416_v11 = vld [vmem:[%s13138_s2 + $0x8] sm:$0xff]  ;;  %v307_v21 = vshrl.u32 %v306_v20, 7  ;;  %s7944_s13 = sshll.u32 %s9259_s21, 13  ;;  %s9273_s25 = smov [#allocation2]  }
  0x19   : > { %v262_v12 = vld [vmem:[%s13137_s1 + $0x30] sm:$0xff]  ;;  %v642_v13 = vld [vmem:[%s13138_s2 + $0x20] sm:$0xff]  ;;  %v645_v14 = vld [vmem:[%s13138_s2 + $0x38] sm:$0xff]  ;;  %991 = vmatprep.mubr.f32.mxu0 %v13148_v19  ;;  %2373 = vmatprep.mubr.f32.mxu1 %v13148_v19  ;;  %s245_s9 = scalar_select %p244_p11, %s9259_s21, 1 }
  0x1a   : > { %v640_v15 = vld [vmem:[%s13138_s2 + $0x10] sm:$0xff]  ;;  %v641_v16 = vld [vmem:[%s13138_s2 + $0x18] sm:$0xff]  ;;  %v643_v17 = vld [vmem:[%s13138_s2 + $0x28] sm:$0xff]  ;;  %v9481_v24 = vsub.s32 1, %v307_v21  ;;  %v9483_v25 = vsub.s32 5, %v307_v21  ;;  %v9488_v29 = vsub.s32 2, %v307_v21  ;;  %s13082_s17 = scalar_lea.hbm %s13141_s5, %s7944_s13 }
  0x1b   : > { %v644_v18 = vld [vmem:[%s13138_s2 + $0x30] sm:$0xff]  ;;  %s7879_s10 = sshll.u32 %s245_s9, 5  ;;  %v750_v22 = vld [vmem:[%s13139_s3] sm:$0xff]  ;;  %v751_v23 = vld [vmem:[%s13139_s3 + $0x8] sm:$0xff]  ;;  %v9491_v31 = vsub.s32 6, %v307_v21  ;;  %v9493_v32 = vsub.s32 0, %v307_v21 }
  0x1c   : > { %515 = vperm.xlu0 %9159, %v9373_v3   ;;  %379 = vperm.xlu1 %9158, %v9378_v4   ;;  %s9475_s15 = scalar_lea.vmem %s13136_s0, %s7879_s10  ;;  %v864_v26 = vsel %vm862_vm0, %v750_v22, 0  ;;  %v867_v28 = vsel %vm862_vm0, %v751_v23, 0  ;;  %v9499_v35 = vsub.s32 4, %v307_v21  ;;  %v752_v46 = vld [vmem:[%s13139_s3 + $0x10] sm:$0xff]  ;;  %s240_s10 = sand.u32 1, %s9251_s19  }
  0x1d   : > { %v254_v27 = vld [vmem:[%s9475_s15] sm:$0x77]  ;;  %v255_v30 = vld [vmem:[%s9475_s15 + $0x8] sm:$0x77]  ;;  %v9501_v36 = vand.u32 4294901760, %v864_v26  ;;  %v9506_v39 = vand.u32 4294901760, %v867_v28 }
  0x1e   : > { %v409_v37 = vrot.slane %v254_v27, %v9481_v24  ;;  %v413_v38 = vrot.slane %v254_v27, %v9483_v25  ;;  %v417_v40 = vrot.slane %v255_v30, %v9481_v24  ;;  %v421_v41 = vrot.slane %v255_v30, %v9483_v25  ;;  %s7773_s11 = sshll.u32 %s240_s10, 9  ;;  %s13090_s21 = scalar_lea.sflag [#allocation3], %s240_s10 }
  0x1f   : > { %13526 = vst [vmem:[#allocation5_spill] sm:$0xff] %v9501_v36  ;;  %13527 = vst [vmem:[#allocation6_spill] sm:$0xff] %v9506_v39  ;;  %v541_v42 = vrot.slane %v254_v27, %v9488_v29  ;;  %v545_v43 = vrot.slane %v254_v27, %v9491_v31  ;;  %v549_v44 = vrot.slane %v255_v30, %v9488_v29  ;;  %v870_v59 = vsel %vm862_vm0, %v752_v46, 0  ;;  %s12757_s12 = scalar_lea.vmem [#allocation2], %s7773_s11  ;;  %s9193_s27 = sshll.u32 %s9273_s25, 4  ;;  %s9194_s27 = int_to_ptr.vmem [resolvable:$false] %s9193_s27 }
  0x20   : > { %527 = vperm.xlu0 %9159, %v261_v5   ;;  %9160 = vset.pattern.permute.xlu1 %v13144_v1  ;;  %v553_v45 = vrot.slane %v255_v30, %v9491_v31  ;;  %v309_v49 = vrot.slane %v254_v27, %v9493_v32  ;;  %v313_v50 = vrot.slane %v254_v27, %v9499_v35  ;;  %s7689_s14 = sshll.u32 %s12757_s12, 4  ;;  %s9195_s29 = scalar_lea.vmem %s9194_s27, 16384  ;;  %s13084_s14 = int_to_ptr.vmem [resolvable:$true] %s7689_s14 }
  0x21   : > { %511 = vperm.xlu1 %9160, %v9378_v4   ;;  %v317_v51 = vrot.slane %v255_v30, %v9493_v32  ;;  %v9526_v52 = vsub.f32 %v864_v26, %v9501_v36  ;;  %v9529_v53 = vrot.slane %v409_v37, %v9481_v24  ;;  %v9532_v54 = vrot.slane %v413_v38, %v9481_v24  ;;  %v753_v26 = vld [vmem:[%s13139_s3 + $0x18] sm:$0xff]  ;;  %s9189_s24 = scalar_lea.vmem %s13084_s14, 8192  ;;  %p9196_p1 = scmp.lt.s32.totalorder %s13084_s14, %s9194_s27 }
  0x22   : > { %v9535_v55 = vsub.f32 %v867_v28, %v9506_v39  ;;  %v9538_v56 = vrot.slane %v417_v40, %v9481_v24  ;;  %v9541_v57 = vrot.slane %v421_v41, %v9481_v24  ;;  %v321_v58 = vrot.slane %v255_v30, %v9499_v35  ;;  %p9190_p12 = scmp.ne.s32.totalorder %s13084_s14, %s9189_s24  ;;  %p9197_p2 = scmp.lt.s32.totalorder %s9195_s29, %s9189_s24 }
  0x23   : > { %13528 = vst [vmem:[#allocation7_spill] sm:$0xff] %v9526_v52  ;;  %v9546_v60 = vrot.slane %v541_v42, %v9488_v29  ;;  %v9549_v61 = vrot.slane %v545_v43, %v9488_v29  ;;  %v9552_v62 = vrot.slane %v549_v44, %v9488_v29  ;;  %v9555_v63 = vrot.slane %v553_v45, %v9488_v29 }
  0x24   : > { %9167 = vset.pattern.permute.xlu0 %v13146_v2  ;;  %13529 = vst [vmem:[#allocation8_spill] sm:$0xff] %v9535_v55  ;;  %13530 = vst [vmem:[#allocation9_spill] sm:$0xff] %v9541_v57  ;;  %v873_v45 = vsel %vm862_vm0, %v753_v26, 0  ;;  %p9191_p13 = pnand %p9190_p12, %p9346_p4  ;;  %p9198_p3 = por %p9197_p2, %p9196_p1 }
  0x25   : > { %391 = vperm.xlu0 %9167, %v260_v6   ;;  %9161 = vset.pattern.permute.xlu1 %v13142_v7  ;;  %13531 = vst [vmem:[#allocation10_spill] sm:$0xff] %v9549_v61 }
  0x26   : > { %276 = vperm.xlu1 %9161, %v9373_v3   ;;  %p9192_p0 = pneg %p9191_p13 }
  0x28   : > { %p9199_p5 = pnand %p9198_p3, %p9192_p0 }
  0x29   : > { %403 = vperm.xlu0 %9167, %v263_v8  }
  0x2a   : > { %9162 = vset.pattern.permute.xlu1 %v13146_v2 }
  0x2b   : > { %383 = vperm.xlu1 %9162, %v9373_v3  }
  0x2d   : > { %9170 = vset.pattern.permute.xlu0 %v13142_v7 }
  0x2e   : > { %266 = vperm.xlu0 %9170, %v9364_v0  }
  0x2f   : > { %387 = vperm.xlu1 %9162, %v9401_v9  }
  0x32   : > { %271 = vperm.xlu0 %9170, %v9378_v4  }
  0x33   : > { %9163 = vset.pattern.permute.xlu1 %v13144_v1 }
  0x34   : > { %519 = vperm.xlu1 %9163, %v9401_v9  }
  0x36   : > { %281 = vperm.xlu0 %9170, %v9401_v9  }
  0x38   : > { %9164 = vset.pattern.permute.xlu1 %v13142_v7 }
  0x39   : > { %648 = vperm.xlu1 %9164, %v638_v10  }
  0x3a   : > { %653 = vperm.xlu0 %9170, %v9416_v11  }
  0x3d   : > { %286 = vperm.xlu1 %9164, %v260_v6  }
  0x3e   : > { %296 = vperm.xlu0 %9170, %v262_v12  }
  0x41   : > { %291 = vperm.xlu1 %9164, %v261_v5  }
  0x42   : > { %668 = vperm.xlu0 %9170, %v642_v13   ;;  %v9578_v13 = vand.u32 4294901760, %v9535_v55 }
  0x44   : > { %13533 = vst [vmem:[#allocation12_spill] sm:$0xff] %v9578_v13  ;;  %v1006_v40 = vsub.f32 %v9535_v55, %v9578_v13 }
  0x45   : > { %9165 = vset.pattern.permute.xlu1 %v13146_v2 }
  0x46   : > { %395 = vperm.xlu1 %9165, %v261_v5   ;;  %683 = vperm.xlu0 %9170, %v645_v14   ;;  %v9580_v14 = vand.u32 4294901760, %v870_v59 }
  0x48   : > { %13534 = vst [vmem:[#allocation13_spill] sm:$0xff] %v9580_v14  ;;  %v9611_v41 = vsub.f32 %v870_v59, %v9580_v14 }
  0x4a   : > { %9166 = vset.pattern.permute.xlu1 %v13144_v1  ;;  %9174 = vset.pattern.permute.xlu0 %v13146_v2  ;;  %13537 = vst [vmem:[#allocation16_spill] sm:$0xff] %v9611_v41 }
  0x4b   : > { %523 = vperm.xlu1 %9166, %v260_v6   ;;  %4089 = vperm.xlu0 %9174, %v9378_v4   ;;  %v9567_v6 = vrot.slane %v317_v51, %v9493_v32 }
  0x4f   : > { %9168 = vset.pattern.permute.xlu1 %v13142_v7  ;;  %4097 = vperm.xlu0 %9174, %v9401_v9  }
  0x50   : > { %658 = vperm.xlu1 %9168, %v640_v15   ;;  %v9583_v15 = vrot.slane %v321_v58, %v9493_v32 }
  0x53   : > { %4105 = vperm.xlu0 %9174, %v261_v5  }
  0x54   : > { %663 = vperm.xlu1 %9168, %v641_v16  }
  0x57   : > { %4113 = vperm.xlu0 %9174, %v263_v8  }
  0x58   : > { %301 = vperm.xlu1 %9168, %v263_v8  }
  0x5b   : > { %9184 = vset.pattern.permute.xlu0 %v13142_v7 }
  0x5c   : > { %9169 = vset.pattern.permute.xlu1 %v13146_v2  ;;  %3981 = vperm.xlu0 %9184, %v9378_v4  }
  0x5d   : > { %399 = vperm.xlu1 %9169, %v262_v12  }
  0x60   : > { %3986 = vperm.xlu0 %9184, %v9373_v3  }
  0x61   : > { %9171 = vset.pattern.permute.xlu1 %v13144_v1 }
  0x62   : > { %531 = vperm.xlu1 %9171, %v262_v12  }
  0x64   : > { %4358 = vperm.xlu0 %9184, %v638_v10  }
  0x66   : > { %535 = vperm.xlu1 %9171, %v263_v8   ;;  %v7809_v8 = vld [vmem:[%s9475_s15 + $0x18] sm:$0x77] }
  0x67   : > { %v4127_v16 = vrot.slane %v7809_v8, %v9481_v24  ;;  %v4027_v21 = vrot.slane %v7809_v8, %v9493_v32  ;;  %v4031_v22 = vrot.slane %v7809_v8, %v9499_v35  ;;  %v4263_v30 = vrot.slane %v7809_v8, %v9491_v31 }
  0x68   : > { %4001 = vperm.xlu0 %9184, %v261_v5   ;;  %v9564_v5 = vrot.slane %v313_v50, %v9493_v32 }
  0x69   : > { %v9616_v43 = vrot.slane %v4127_v16, %v9481_v24  ;;  %v9632_v50 = vrot.slane %v4031_v22, %v9493_v32  ;;  %v9657_v16 = vand.u32 4294901760, %v873_v45 }
  0x6a   : > { %9172 = vset.pattern.permute.xlu1 %v13142_v7 }
  0x6b   : > { %673 = vperm.xlu1 %9172, %v643_v17   ;;  %v4131_v17 = vrot.slane %v7809_v8, %v9483_v25  ;;  %13538 = vst [vmem:[#allocation17_spill] sm:$0xff] %v9616_v43  ;;  %13543 = vst [vmem:[#allocation22_spill] sm:$0xff] %v9632_v50 }
  0x6c   : > { %13551 = vst [vmem:[#allocation30_spill] sm:$0xff] %v9657_v16 }
  0x6f   : > { %678 = vperm.xlu1 %9172, %v644_v18  }
  0x73   : > { %3976 = vperm.xlu1 %9172, %v9364_v0  }
  0x77   : > { %9173 = vset.pattern.permute.xlu1 %v13146_v2 }
  0x78   : > { %4085 = vperm.xlu1 %9173, %v9364_v0  }
  0x7c   : > { %9175 = vset.pattern.permute.xlu1 %v13144_v1 }
  0x7d   : > { %4217 = vperm.xlu1 %9175, %v9364_v0   ;;  %v7808_v0 = vld [vmem:[%s9475_s15 + $0x10] sm:$0x77] }
  0x7e   : > { %v4123_v12 = vrot.slane %v7808_v0, %v9483_v25  ;;  %v4019_v18 = vrot.slane %v7808_v0, %v9493_v32  ;;  %v4023_v20 = vrot.slane %v7808_v0, %v9499_v35  ;;  %v4251_v23 = vrot.slane %v7808_v0, %v9488_v29 }
  0x7f   : > { %v4255_v28 = vrot.slane %v7808_v0, %v9491_v31  ;;  %v4259_v25 = vrot.slane %v7809_v8, %v9488_v29  ;;  %v9619_v31 = vrot.slane %v4131_v17, %v9481_v24 }
  0x80   : > { %v9606_v35 = vrot.slane %v4123_v12, %v9481_v24  ;;  %v9622_v44 = vrot.slane %v4019_v18, %v9493_v32  ;;  %v9626_v46 = vrot.slane %v4023_v20, %v9493_v32  ;;  %v9635_v51 = vrot.slane %v4251_v23, %v9488_v29 }
  0x81   : > { %4221 = vperm.xlu1 %9175, %v9378_v4   ;;  %v9561_v4 = vrot.slane %v309_v49, %v9493_v32  ;;  %13539 = vst [vmem:[#allocation18_spill] sm:$0xff] %v9619_v31  ;;  %v9629_v49 = vrot.slane %v4027_v21, %v9493_v32  ;;  %v9643_v59 = vrot.slane %v4259_v25, %v9488_v29  ;;  %v9652_v32 = vand.u32 4294901760, %v1006_v40 }
  0x82   : > { %13536 = vst [vmem:[#allocation15_spill] sm:$0xff] %v9606_v35  ;;  %13540 = vst [vmem:[#allocation19_spill] sm:$0xff] %v9622_v44  ;;  %v9655_v12 = vand.u32 4294901760, %v9611_v41 }
  0x83   : > { %13541 = vst [vmem:[#allocation20_spill] sm:$0xff] %v9626_v46  ;;  %13542 = vst [vmem:[#allocation21_spill] sm:$0xff] %v9629_v49 }
  0x84   : > { %13544 = vst [vmem:[#allocation23_spill] sm:$0xff] %v9635_v51  ;;  %13547 = vst [vmem:[#allocation26_spill] sm:$0xff] %v9643_v59 }
  0x85   : > { %9176 = vset.pattern.permute.xlu1 %v13142_v7  ;;  %13549 = vst [vmem:[#allocation28_spill] sm:$0xff] %v9652_v32  ;;  %13550 = vst [vmem:[#allocation29_spill] sm:$0xff] %v9655_v12  ;;  %v756_v32 = vld [vmem:[%s13139_s3 + $0x30] sm:$0xff] }
  0x86   : > { %3991 = vperm.xlu1 %9176, %v9401_v9  }
  0x8a   : > { %9177 = vset.pattern.permute.xlu1 %v13146_v2 }
  0x8b   : > { %4093 = vperm.xlu1 %9177, %v9373_v3  }
  0x8f   : > { %9178 = vset.pattern.permute.xlu1 %v13144_v1  ;;  %v9700_v1 = vsub.f32 %v873_v45, %v9657_v16  ;;  %v754_v45 = vld [vmem:[%s13139_s3 + $0x20] sm:$0xff]  ;;  %v755_v16 = vld [vmem:[%s13139_s3 + $0x28] sm:$0xff] }
  0x90   : > { %4225 = vperm.xlu1 %9178, %v9373_v3   ;;  %v876_v46 = vsel %vm862_vm0, %v754_v45, 0 }
  0x91   : > { %13552 = vst [vmem:[#allocation31_spill] sm:$0xff] %v9700_v1 }
  0x94   : > { %4229 = vperm.xlu1 %9178, %v9401_v9   ;;  %v9571_v9 = vand.u32 4294901760, %v9526_v52 }
  0x96   : > { %13532 = vst [vmem:[#allocation11_spill] sm:$0xff] %v9571_v9  ;;  %v995_v27 = vsub.f32 %v9526_v52, %v9571_v9 }
  0x97   : > { %v9495_v33 = vpop.permute.xlu1 %375  ;;  %v9497_v34 = vpop.permute.xlu0 %507 }
  0x98   : > { %9179 = vset.pattern.permute.xlu1 %v13142_v7  ;;  %v9637_v58 = vand.u32 4294901760, %v995_v27  ;;  %v442_v8 = vmul.f32 %v9529_v53, %v9495_v33  ;;  %v443_v17 = vmul.f32 %v9532_v54, %v9495_v33  ;;  %v444_v18 = vmul.f32 %v9538_v56, %v9495_v33 }
  0x99   : > { %4363 = vperm.xlu1 %9179, %v9416_v11   ;;  %v4119_v11 = vrot.slane %v7808_v0, %v9481_v24  ;;  %v9646_v0 = vrot.slane %v4263_v30, %v9488_v29  ;;  %v574_v20 = vmul.f32 %v9546_v60, %v9497_v34  ;;  %v575_v21 = vmul.f32 %v9549_v61, %v9497_v34 }
  0x9a   : > { %13545 = vst [vmem:[#allocation24_spill] sm:$0xff] %v9637_v58  ;;  %v9671_v22 = vmul.f32 %v9552_v62, %v9497_v34  ;;  %v577_v23 = vmul.f32 %v9555_v63, %v9497_v34  ;;  %v1017_v7 = vsub.f32 %v9611_v41, %v9655_v12 }
  0x9b   : > { %v9518_v47 = vpop.permute.xlu1 %379  ;;  %v9520_v48 = vpop.permute.xlu0 %515  ;;  %v9603_v38 = vrot.slane %v4119_v11, %v9481_v24  ;;  %v9640_v24 = vrot.slane %v4255_v28, %v9488_v29  ;;  %13548 = vst [vmem:[#allocation27_spill] sm:$0xff] %v9646_v0  ;;  %v445_v29 = vmul.f32 %v9541_v57, %v9495_v33 }
  0x9c   : > { %v446_v26 = vmul.f32 %v9529_v53, %v9518_v47  ;;  %v447_v33 = vmul.f32 %v9532_v54, %v9518_v47  ;;  %v448_v28 = vmul.f32 %v9538_v56, %v9518_v47  ;;  %v449_v25 = vmul.f32 %v9541_v57, %v9518_v47 }
  0x9d   : > { %13535 = vst [vmem:[#allocation14_spill] sm:$0xff] %v9603_v38  ;;  %13546 = vst [vmem:[#allocation25_spill] sm:$0xff] %v9640_v24  ;;  %v9687_v30 = vmul.f32 %v9546_v60, %v9520_v48  ;;  %v9691_v34 = vmul.f32 %v9549_v61, %v9520_v48  ;;  %v9695_v40 = vmul.f32 %v9552_v62, %v9520_v48  ;;  %v9742_v50 = vand.u32 4294901760, %v1017_v7 }
  0x9e   : > { %v9704_v47 = vmul.f32 %v9555_v63, %v9520_v48 }
  0x9f   : > { %v9558_v3 = vpop.permute.xlu0 %527  ;;  %13557 = vst [vmem:[#allocation36_spill] sm:$0xff] %v9742_v50  ;;  %v879_v50 = vsel %vm862_vm0, %v755_v16, 0 }
  0xa0   : > { %v9573_v10 = vpop.permute.xlu1 %511  ;;  %v9708_v2 = vmul.f32 %v9546_v60, %v9558_v3  ;;  %v9712_v19 = vmul.f32 %v9549_v61, %v9558_v3  ;;  %v9716_v13 = vmul.f32 %v9552_v62, %v9558_v3  ;;  %v9729_v55 = vmul.f32 %v9555_v63, %v9558_v3 }
  0xa1   : > { %v578_v48 = vmul.f32 %v9546_v60, %v9573_v10  ;;  %v579_v9 = vmul.f32 %v9549_v61, %v9573_v10  ;;  %v580_v41 = vmul.f32 %v9552_v62, %v9573_v10  ;;  %v581_v14 = vmul.f32 %v9555_v63, %v9573_v10 }
  0xa2   : > { %13553 = vst [vmem:[#allocation32_spill] sm:$0xff] %v9708_v2  ;;  %13554 = vst [vmem:[#allocation33_spill] sm:$0xff] %v9712_v19  ;;  %v9745_v3 = vand.u32 4294901760, %v9700_v1 }
  0xa3   : > { %13555 = vst [vmem:[#allocation34_spill] sm:$0xff] %v9716_v13  ;;  %13556 = vst [vmem:[#allocation35_spill] sm:$0xff] %v9729_v55  ;;  %v882_v13 = vsel %vm862_vm0, %v756_v32, 0 }
  0xa4   : > { %v9600_v37 = vpop.permute.xlu0 %391  ;;  %13558 = vst [vmem:[#allocation37_spill] sm:$0xff] %v9745_v3 }
  0xa5   : > { %v9613_v42 = vpop.permute.xlu1 %276  ;;  %v9753_v10 = vmul.f32 %v9529_v53, %v9600_v37  ;;  %v9757_v59 = vmul.f32 %v9532_v54, %v9600_v37  ;;  %v9761_v7 = vmul.f32 %v9538_v56, %v9600_v37  ;;  %v9773_v16 = vmul.f32 %v9541_v57, %v9600_v37 }
  0xa6   : > { %v9793_v37 = vand.u32 4294901760, %v876_v46 }
  0xa7   : > { %13559 = vst [vmem:[#allocation38_spill] sm:$0xff] %v9757_v59  ;;  %13560 = vst [vmem:[#allocation39_spill] sm:$0xff] %v9761_v7  ;;  %v9777_v7 = vmul.f32 %v9561_v4, %v9613_v42 }
  0xa8   : > { %v9650_v11 = vpop.permute.xlu0 %403  ;;  %13561 = vst [vmem:[#allocation40_spill] sm:$0xff] %v9773_v16  ;;  %13562 = vst [vmem:[#allocation41_spill] sm:$0xff] %v9793_v37 }
  0xaa   : > { %v9677_v27 = vpop.permute.xlu1 %383 }
  0xad   : > { %v267_v12 = vpop.permute.xlu0 %266 }
  0xae   : > { %v9731_v52 = vpop.permute.xlu1 %387  ;;  %v342_v39 = vmul.f32 %v9561_v4, %v267_v12  ;;  %v343_v36 = vmul.f32 %v9564_v5, %v267_v12  ;;  %v345_v0 = vmul.f32 %v9583_v15, %v267_v12  ;;  %v344_v24 = vmul.f32 %v9567_v6, %v267_v12 }
  0xb0   : > { %v474_v44 = vadd.f32 %v442_v8, %v342_v39  ;;  %v475_v31 = vadd.f32 %v443_v17, %v343_v36  ;;  %v477_v43 = vadd.f32 %v445_v29, %v345_v0  ;;  %v476_v35 = vadd.f32 %v444_v18, %v344_v24 }
  0xb1   : > { %v272_v12 = vpop.permute.xlu0 %271  ;;  %v9781_v36 = vmul.f32 %v9564_v5, %v9613_v42  ;;  %v9787_v24 = vmul.f32 %v9567_v6, %v9613_v42  ;;  %v9797_v18 = vand.u32 4294901760, %v882_v13 }
  0xb2   : > { %v346_v45 = vmul.f32 %v9561_v4, %v272_v12  ;;  %v347_v58 = vmul.f32 %v9564_v5, %v272_v12  ;;  %v348_v51 = vmul.f32 %v9567_v6, %v272_v12  ;;  %v349_v49 = vmul.f32 %v9583_v15, %v272_v12 }
  0xb3   : > { %v9768_v55 = vpop.permute.xlu1 %519  ;;  %v606_v8 = vadd.f32 %v574_v20, %v474_v44  ;;  %v607_v32 = vadd.f32 %v575_v21, %v475_v31  ;;  %v609_v17 = vadd.f32 %v577_v23, %v477_v43  ;;  %13564 = vst [vmem:[#allocation43_spill] sm:$0xff] %v9797_v18  ;;  %v608_v29 = vadd.f32 %v9671_v22, %v476_v35 }
  0xb4   : > { %v478_v38 = vadd.f32 %v446_v26, %v346_v45  ;;  %v479_v19 = vadd.f32 %v447_v33, %v347_v58  ;;  %v481_v2 = vadd.f32 %v449_v25, %v349_v49  ;;  %v480_v39 = vadd.f32 %v448_v28, %v348_v51 }
  0xb5   : > { %v9783_v0 = vpop.permute.xlu0 %281  ;;  %v9791_v49 = vmul.f32 %v9583_v15, %v9613_v42  ;;  %v9795_v58 = vand.u32 4294901760, %v879_v50  ;;  %v1028_v35 = vsub.f32 %v9700_v1, %v9745_v3  ;;  %v9827_v21 = vsub.f32 %v876_v46, %v9793_v37 }
  0xb6   : > { %v610_v26 = vadd.f32 %v578_v48, %v478_v38  ;;  %v611_v33 = vadd.f32 %v579_v9, %v479_v19  ;;  %v613_v28 = vadd.f32 %v581_v14, %v481_v2  ;;  %v612_v16 = vadd.f32 %v580_v41, %v480_v39 }
  0xb7   : > { %13563 = vst [vmem:[#allocation42_spill] sm:$0xff] %v9795_v58  ;;  %v9822_v14 = vmul.f32 %v9529_v53, %v9650_v11  ;;  %13566 = vst [vmem:[#allocation45_spill] sm:$0xff] %v9827_v21  ;;  %v9832_v48 = vsub.f32 %v879_v50, %v9795_v58  ;;  %v451_v50 = vmul.f32 %v9532_v54, %v9677_v27 }
  0xb8   : > { %v649_v51 = vpop.permute.xlu1 %648 }
  0xb9   : > { %v9800_v25 = vadd.f32 %v649_v51, %v606_v8  ;;  %v9802_v12 = vadd.f32 %v649_v51, %v607_v32  ;;  %v9804_v42 = vadd.f32 %v649_v51, %v609_v17  ;;  %v654_v45 = vpop.permute.xlu0 %653  ;;  %v9814_v38 = vadd.f32 %v649_v51, %v608_v29  ;;  %13565 = vst [vmem:[#allocation44_spill] sm:$0xff] %v9822_v14 }
  0xba   : > { %v9806_v59 = vadd.f32 %v654_v45, %v610_v26  ;;  %v9808_v31 = vadd.f32 %v654_v45, %v611_v33  ;;  %v9810_v43 = vadd.f32 %v654_v45, %v613_v28  ;;  %v9818_v9 = vadd.f32 %v654_v45, %v612_v16  ;;  %13567 = vst [vmem:[#allocation46_spill] sm:$0xff] %v9832_v48 }
  0xbb   : > { %v13188_v2 = vmax.f32 %v9802_v12, 0.0  ;;  %v13186_v19 = vmax.f32 %v9804_v42, 0.0  ;;  %v13199_v22 = vmax.f32 %v9800_v25, 0.0  ;;  %v9835_v16 = vsub.f32 %v882_v13, %v9797_v18 }
  0xbc   : > { %v13187_v41 = vmax.f32 %v9808_v31, 0.0  ;;  %v13185_v44 = vmax.f32 %v9810_v43, 0.0  ;;  %v287_v20 = vpop.permute.xlu1 %286  ;;  %v13200_v23 = vmax.f32 %v9806_v59, 0.0  ;;  %v450_v13 = vmul.f32 %v9529_v53, %v9677_v27 }
  0xbd   : > { %13568 = vst [vmem:[#allocation47_spill] sm:$0xff] %v9835_v16  ;;  %v9839_v39 = vand.u32 4294901760, %v13188_v2  ;;  %v9847_v46 = vand.u32 4294901760, %v13186_v19  ;;  %v452_v29 = vmul.f32 %v9538_v56, %v9677_v27  ;;  %v453_v26 = vmul.f32 %v9541_v57, %v9677_v27 }
  0xbe   : > { %v9843_v8 = vand.u32 4294901760, %v13187_v41  ;;  %v9851_v32 = vand.u32 4294901760, %v13185_v44  ;;  %v9873_v44 = vmul.f32 %v9532_v54, %v9650_v11  ;;  %v9877_v19 = vmul.f32 %v9538_v56, %v9650_v11 }
  0xbf   : > { %v9881_v27 = vmul.f32 %v9541_v57, %v9650_v11  ;;  %v9883_v41 = vand.u32 4294901760, %v1028_v35  ;;  %v913_v2 = vand.u32 4294901760, %v13199_v22  ;;  %v917_v51 = vand.u32 4294901760, %v13200_v23 }
  0xc0   : > { %v292_v33 = vpop.permute.xlu1 %291  ;;  %v9865_v28 = vpack.c.bf16 %v9843_v8, %v9839_v39  ;;  %v9869_v45 = vpack.c.bf16 %v9851_v32, %v9847_v46  ;;  %13571 = vst [vmem:[#allocation50_spill] sm:$0xff] %v9873_v44  ;;  %13572 = vst [vmem:[#allocation51_spill] sm:$0xff] %v9877_v19  ;;  %v9892_v17 = vand.u32 4294901760, %v9827_v21  ;;  %v9895_v3 = vand.u32 4294901760, %v9832_v48 }
  0xc1   : > { %13573 = vst [vmem:[#allocation52_spill] sm:$0xff] %v9881_v27  ;;  %13574 = vst [vmem:[#allocation53_spill] sm:$0xff] %v9883_v41  ;;  %v13577_v11 = vmax.f32 %v9814_v38, 0.0  ;;  %v13578_v1 = vmax.f32 %v9818_v9, 0.0  ;;  %v482_v58 = vadd.f32 %v450_v13, %v9777_v7  ;;  %v9903_v37 = vand.u32 4294901760, %v9835_v16  ;;  %v13583_v27 = vld [vmem:[#allocation39_spill] sm:$0xff] }
  0xc2   : > { %13569 = vst [vmem:[#allocation48_spill] sm:$0xff] %v9865_v28  ;;  %13570 = vst [vmem:[#allocation49_spill] sm:$0xff] %v9869_v45  ;;  %7946 = vmatprep.subr.bf16.mxu0 %v9865_v28  ;;  %8042 = vmatprep.subr.bf16.mxu1 %v9869_v45  ;;  %v9905_v22 = vpack.c.bf16 %v917_v51, %v913_v2  ;;  %v483_v23 = vadd.f32 %v451_v50, %v9781_v36 }
  0xc3   : > { %13575 = vst [vmem:[#allocation54_spill] sm:$0xff] %v9892_v17  ;;  %13576 = vst [vmem:[#allocation55_spill] sm:$0xff] %v9895_v3  ;;  %v2295_v35 = vand.u32 4294901760, %v13577_v11  ;;  %v2299_v18 = vand.u32 4294901760, %v13578_v1  ;;  %v484_v45 = vadd.f32 %v452_v29, %v9787_v24  ;;  %v485_v28 = vadd.f32 %v453_v26, %v9791_v49 }
  0xc4   : > { %13579 = vst [vmem:[#allocation56_spill] sm:$0xff] %v9903_v37  ;;  %13580 = vst [vmem:[#allocation57_spill] sm:$0xff] %v9905_v22  ;;  %v454_v48 = vmul.f32 %v9529_v53, %v9731_v52  ;;  %v455_v11 = vmul.f32 %v9532_v54, %v9731_v52  ;;  %v456_v1 = vmul.f32 %v9538_v56, %v9731_v52  ;;  %7948 = vmatpush1.bf16.msra.mxu0 %v9905_v22 }
  0xc5   : > { %v9916_v7 = vpack.c.bf16 %v2299_v18, %v2295_v35  ;;  %v9918_v13 = vpop.permute.xlu1 %395  ;;  %v457_v36 = vmul.f32 %v9541_v57, %v9731_v52  ;;  %v354_v24 = vmul.f32 %v9561_v4, %v9783_v0  ;;  %v355_v49 = vmul.f32 %v9564_v5, %v9783_v0  ;;  %v13584_v57 = vld [vmem:[#allocation40_spill] sm:$0xff] }
  0xc6   : > { %v356_v50 = vmul.f32 %v9567_v6, %v9783_v0  ;;  %v357_v29 = vmul.f32 %v9583_v15, %v9783_v0  ;;  %v358_v26 = vmul.f32 %v9561_v4, %v287_v20  ;;  %v359_v16 = vmul.f32 %v9564_v5, %v287_v20 }
  0xc7   : > { %13581 = vst [vmem:[#allocation58_spill] sm:$0xff] %v9916_v7  ;;  %v360_v52 = vmul.f32 %v9567_v6, %v287_v20  ;;  %8044 = vmatpush1.bf16.msra.mxu1 %v9916_v7  ;;  %v361_v37 = vmul.f32 %v9583_v15, %v287_v20  ;;  %v614_v3 = vadd.f32 %v9687_v30, %v482_v58 }
  0xc8   : > { %v615_v21 = vadd.f32 %v9691_v34, %v483_v23  ;;  %v616_v17 = vadd.f32 %v9695_v40, %v484_v45  ;;  %v586_v22 = vmul.f32 %v9546_v60, %v9768_v55  ;;  %v587_v0 = vmul.f32 %v9549_v61, %v9768_v55  ;;  %v13582_v45 = vld [vmem:[#allocation38_spill] sm:$0xff] }
  0xc9   : > { %v588_v41 = vmul.f32 %v9552_v62, %v9768_v55  ;;  %v617_v19 = vadd.f32 %v9704_v47, %v485_v28  ;;  %v589_v20 = vmul.f32 %v9555_v63, %v9768_v55  ;;  %v486_v7 = vadd.f32 %v454_v48, %v354_v24 }
  0xca   : > { %v487_v30 = vadd.f32 %v455_v11, %v355_v49  ;;  %v488_v58 = vadd.f32 %v456_v1, %v356_v50  ;;  %v524_v34 = vpop.permute.xlu1 %523  ;;  %v489_v23 = vadd.f32 %v457_v36, %v357_v29  ;;  %v490_v40 = vadd.f32 %v9753_v10, %v358_v26  ;;  %v297_v1 = vpop.permute.xlu0 %296 }
  0xcb   : > { %v491_v14 = vadd.f32 %v13582_v45, %v359_v16  ;;  %v9951_v44 = vadd.f32 %v13583_v27, %v360_v52  ;;  %v9954_v61 = vadd.f32 %v13584_v57, %v361_v37  ;;  %v362_v47 = vmul.f32 %v9561_v4, %v292_v33 }
  0xcc   : > { %v13585_v55 = vmax.f32 %v9802_v12, 0.0  ;;  %v13587_v28 = vmax.f32 %v9808_v31, 0.0  ;;  %v363_v10 = vmul.f32 %v9564_v5, %v292_v33  ;;  %v364_v16 = vmul.f32 %v9567_v6, %v292_v33 }
  0xcd   : > { %v365_v27 = vmul.f32 %v9583_v15, %v292_v33  ;;  %v13589_v57 = vmax.f32 %v9804_v42, 0.0  ;;  %v13591_v12 = vmax.f32 %v9810_v43, 0.0  ;;  %v13593_v31 = vmax.f32 %v9800_v25, 0.0 }
  0xce   : > { %v9960_v48 = vsub.f32 %v13585_v55, %v9839_v39  ;;  %v9965_v11 = vsub.f32 %v13587_v28, %v9843_v8  ;;  %v9985_v36 = vmul.f32 %v9561_v4, %v297_v1  ;;  %v9988_v33 = vmul.f32 %v9564_v5, %v297_v1 }
  0xcf   : > { %v9973_v37 = vsub.f32 %v13589_v57, %v9847_v46  ;;  %v9978_v39 = vsub.f32 %v13591_v12, %v9851_v32  ;;  %v9982_v8 = vsub.f32 %v13593_v31, %v913_v2  ;;  %v13595_v42 = vmax.f32 %v9806_v59, 0.0  ;;  %v659_v2 = vpop.permute.xlu1 %658  ;;  %v669_v31 = vpop.permute.xlu0 %668 }
  0xd0   : > { %13586 = vst [vmem:[#allocation38_spill] sm:$0xff] %v9960_v48  ;;  %13588 = vst [vmem:[#allocation39_spill] sm:$0xff] %v9965_v11  ;;  %v13597_v24 = vmax.f32 %v9814_v38, 0.0  ;;  %v13599_v43 = vmax.f32 %v9818_v9, 0.0  ;;  %v10003_v25 = vmul.f32 %v9567_v6, %v297_v1  ;;  %v462_v50 = vmul.f32 %v9529_v53, %v9918_v13 }
  0xd1   : > { %13590 = vst [vmem:[#allocation40_spill] sm:$0xff] %v9973_v37  ;;  %13592 = vst [vmem:[#allocation59_spill] sm:$0xff] %v9978_v39  ;;  %v9992_v46 = vsub.f32 %v13595_v42, %v917_v51  ;;  %v10008_v29 = vmul.f32 %v9583_v15, %v297_v1  ;;  %v10010_v59 = vadd.f32 %v659_v2, %v615_v21  ;;  %v13601_v21 = vld [vmem:[#allocation10_spill] sm:$0xff] }
  0xd2   : > { %13594 = vst [vmem:[#allocation60_spill] sm:$0xff] %v9982_v8  ;;  %v9996_v49 = vsub.f32 %v13597_v24, %v2295_v35  ;;  %v10000_v32 = vsub.f32 %v13599_v43, %v2299_v18  ;;  %v10012_v51 = vadd.f32 %v659_v2, %v617_v19  ;;  %v463_v38 = vmul.f32 %v9532_v54, %v9918_v13  ;;  %v13603_v43 = vld [vmem:[#allocation9_spill] sm:$0xff] }
  0xd3   : > { %13596 = vst [vmem:[#allocation61_spill] sm:$0xff] %v9992_v46  ;;  %v464_v18 = vmul.f32 %v9538_v56, %v9918_v13  ;;  %v10018_v9 = vadd.f32 %v659_v2, %v614_v3  ;;  %v10020_v35 = vadd.f32 %v659_v2, %v616_v17  ;;  %v618_v26 = vadd.f32 %v586_v22, %v486_v7  ;;  %v664_v12 = vpop.permute.xlu1 %663 }
  0xd4   : > { %13598 = vst [vmem:[#allocation62_spill] sm:$0xff] %v9996_v49  ;;  %13600 = vst [vmem:[#allocation63_spill] sm:$0xff] %v10000_v32  ;;  %v619_v52 = vadd.f32 %v587_v0, %v487_v30  ;;  %v620_v45 = vadd.f32 %v588_v41, %v488_v58  ;;  %v621_v55 = vadd.f32 %v589_v20, %v489_v23  ;;  %v13226_v19 = vmax.f32 %v10010_v59, 0.0  ;;  %v10044_v0 = vpop.permute.xlu0 %683  ;;  %v13620_v49 = vld [vmem:[#allocation35_spill] sm:$0xff] }
  0xd5   : > { %v590_v28 = vmul.f32 %v9546_v60, %v524_v34  ;;  %v591_v57 = vmul.f32 %v13601_v21, %v524_v34  ;;  %v13225_v1 = vmax.f32 %v10012_v51, 0.0  ;;  %v10026_v42 = vadd.f32 %v664_v12, %v618_v26 }
  0xd6   : > { %v10028_v3 = vadd.f32 %v664_v12, %v619_v52  ;;  %v10030_v17 = vadd.f32 %v664_v12, %v620_v45  ;;  %v10032_v22 = vadd.f32 %v664_v12, %v621_v55  ;;  %v592_v41 = vmul.f32 %v9552_v62, %v524_v34 }
  0xd7   : > { %v593_v7 = vmul.f32 %v9555_v63, %v524_v34  ;;  %v465_v2 = vmul.f32 %v13603_v43, %v9918_v13  ;;  %v494_v26 = vadd.f32 %v462_v50, %v362_v47  ;;  %v495_v52 = vadd.f32 %v463_v38, %v363_v10  ;;  %v302_v55 = vpop.permute.xlu1 %301 }
  0xd8   : > { %13602 = vst [vmem:[#allocation10_spill] sm:$0xff] %v10030_v17  ;;  %v13224_v58 = vmax.f32 %v10028_v3, 0.0  ;;  %v13223_v24 = vmax.f32 %v10032_v22, 0.0  ;;  %v496_v45 = vadd.f32 %v464_v18, %v364_v16  ;;  %v622_v34 = vadd.f32 %v590_v28, %v490_v40 }
  0xd9   : > { %v623_v12 = vadd.f32 %v591_v57, %v491_v14  ;;  %v919_v20 = vand.u32 4294901760, %v13226_v19  ;;  %v10050_v30 = vand.u32 4294901760, %v13225_v1  ;;  %v13604_v40 = vmax.f32 %v10026_v42, 0.0  ;;  %v13613_v1 = vld [vmem:[#allocation32_spill] sm:$0xff] }
  0xda   : > { %v10054_v23 = vand.u32 4294901760, %v13224_v58  ;;  %v10058_v13 = vand.u32 4294901760, %v13223_v24  ;;  %v13605_v47 = vmax.f32 %v10030_v17, 0.0  ;;  %v624_v16 = vadd.f32 %v592_v41, %v9951_v44  ;;  %v13614_v44 = vld [vmem:[#allocation33_spill] sm:$0xff] }
  0xdb   : > { %v10062_v14 = vand.u32 4294901760, %v13604_v40  ;;  %v625_v50 = vadd.f32 %v593_v7, %v9954_v61  ;;  %v13607_v38 = vmax.f32 %v10018_v9, 0.0  ;;  %v13608_v28 = vmax.f32 %v10020_v35, 0.0  ;;  %v757_v61 = vld [vmem:[%s13139_s3 + $0x38] sm:$0xff] }
  0xdc   : > { %v10066_v10 = vand.u32 4294901760, %v13605_v47  ;;  %v497_v24 = vadd.f32 %v465_v2, %v365_v27  ;;  %v10079_v40 = vpack.c.bf16 %v10054_v23, %v919_v20  ;;  %v10083_v47 = vpack.c.bf16 %v10058_v13, %v10050_v30  ;;  %v400_v41 = vpop.permute.xlu1 %399  ;;  %v4090_v2 = vpop.permute.xlu0 %4089 }
  0xdd   : > { %v10072_v18 = vand.u32 4294901760, %v13607_v38  ;;  %v10076_v57 = vand.u32 4294901760, %v13608_v28  ;;  %v10099_v58 = vadd.f32 %v669_v31, %v622_v34  ;;  %v626_v19 = vadd.f32 %v13613_v1, %v494_v26  ;;  %v13616_v1 = vld [vmem:[#allocation14_spill] sm:$0xff]  ;;  %v13621_v38 = vld [vmem:[#allocation17_spill] sm:$0xff] }
  0xde   : > { %13606 = vst [vmem:[#allocation9_spill] sm:$0xff] %v10066_v10  ;;  %13609 = vst [vmem:[#allocation64_spill] sm:$0xff] %v10079_v40  ;;  %7950 = vmatprep.subr.bf16.mxu0 %v10079_v40  ;;  %v627_v32 = vadd.f32 %v13614_v44, %v495_v52  ;;  %v10105_v46 = vadd.f32 %v669_v31, %v623_v12  ;;  %v10107_v17 = vadd.f32 %v669_v31, %v624_v16  ;;  %v13617_v52 = vld [vmem:[#allocation15_spill] sm:$0xff]  ;;  %v13619_v12 = vld [vmem:[#allocation34_spill] sm:$0xff] }
  0xdf   : > { %13610 = vst [vmem:[#allocation65_spill] sm:$0xff] %v10083_v47  ;;  %v10091_v7 = vpack.c.bf16 %v10062_v14, %v10072_v18  ;;  %v10095_v27 = vpack.c.bf16 %v10066_v10, %v10076_v57  ;;  %v10109_v10 = vadd.f32 %v669_v31, %v625_v50  ;;  %8046 = vmatprep.subr.bf16.mxu1 %v10083_v47  ;;  %v10114_v34 = vsel %vm862_vm0, %v757_v61, 0  ;;  %v13623_v61 = vld [vmem:[#allocation18_spill] sm:$0xff] }
  0xe0   : > { %13615 = vst [vmem:[#allocation32_spill] sm:$0xff] %v10114_v34  ;;  %v10118_v26 = vmul.f32 %v13616_v1, %v4090_v2  ;;  %v10121_v44 = vmul.f32 %v13617_v52, %v4090_v2  ;;  %v628_v16 = vadd.f32 %v13619_v12, %v496_v45  ;;  %v629_v31 = vadd.f32 %v13620_v49, %v497_v24 }
  0xe1   : > { %13611 = vst [vmem:[#allocation66_spill] sm:$0xff] %v10091_v7  ;;  %13612 = vst [vmem:[#allocation67_spill] sm:$0xff] %v10095_v27  ;;  %7952 = vmatpush1.bf16.msra.mxu0 %v10091_v7  ;;  %8048 = vmatpush1.bf16.msra.mxu1 %v10095_v27  ;;  %v371_v50 = vmul.f32 %v9564_v5, %v302_v55  ;;  %v373_v28 = vmul.f32 %v9583_v15, %v302_v55  ;;  %v532_v27 = vpop.permute.xlu1 %531  ;;  %v13625_v40 = vand.u32 4294901760, %v9960_v48 }
  0xe2   : > { %13618 = vst [vmem:[#allocation33_spill] sm:$0xff] %v10121_v44  ;;  %v10128_v7 = vmul.f32 %v13621_v38, %v4090_v2  ;;  %v10131_v47 = vmul.f32 %v13623_v61, %v4090_v2  ;;  %v13626_v45 = vand.u32 4294901760, %v9965_v11  ;;  %v13627_v5 = vand.u32 4294901760, %v9973_v37 }
  0xe3   : > { %v10136_v34 = vsub.f32 %v9960_v48, %v13625_v40  ;;  %v13628_v24 = vand.u32 4294901760, %v9978_v39  ;;  %v13632_v48 = vld [vmem:[#allocation52_spill] sm:$0xff] }
  0xe4   : > { %13622 = vst [vmem:[#allocation34_spill] sm:$0xff] %v10128_v7  ;;  %13624 = vst [vmem:[#allocation35_spill] sm:$0xff] %v10131_v47  ;;  %v10141_v49 = vsub.f32 %v9965_v11, %v13626_v45  ;;  %v10146_v15 = vsub.f32 %v9973_v37, %v13627_v5  ;;  %v10157_v45 = vpop.permute.xlu0 %4097  ;;  %v370_v11 = vmul.f32 %v9561_v4, %v302_v55  ;;  %v13633_v47 = vmax.f32 %v10010_v59, 0.0 }
  0xe5   : > { %v10151_v2 = vsub.f32 %v9978_v39, %v13628_v24  ;;  %13629 = vst [vmem:[#allocation68_spill] sm:$0xff] %v10157_v45  ;;  %v372_v5 = vmul.f32 %v9567_v6, %v302_v55  ;;  %v466_v37 = vmul.f32 %v9529_v53, %v400_v41  ;;  %v10164_v24 = vmul.f32 %v13616_v1, %v10157_v45  ;;  %v13631_v39 = vld [vmem:[#allocation50_spill] sm:$0xff] }
  0xe6   : > { %v503_v12 = vadd.f32 %v13631_v39, %v371_v50  ;;  %v505_v40 = vadd.f32 %v13632_v48, %v373_v28  ;;  %v10170_v7 = vsub.f32 %v13633_v47, %v919_v20  ;;  %v10174_v44 = vmul.f32 %v13621_v38, %v10157_v45  ;;  %v13636_v47 = vld [vmem:[#allocation44_spill] sm:$0xff]  ;;  %v13637_v50 = vld [vmem:[#allocation51_spill] sm:$0xff] }
  0xe7   : > { %13630 = vst [vmem:[#allocation69_spill] sm:$0xff] %v10164_v24  ;;  %v467_v4 = vmul.f32 %v9532_v54, %v400_v41  ;;  %v468_v53 = vmul.f32 %v9538_v56, %v400_v41  ;;  %v469_v6 = vmul.f32 %v13603_v43, %v400_v41  ;;  %v598_v55 = vmul.f32 %v9546_v60, %v532_v27  ;;  %v536_v24 = vpop.permute.xlu1 %535 }
  0xe8   : > { %13634 = vst [vmem:[#allocation50_spill] sm:$0xff] %v10170_v7  ;;  %13635 = vst [vmem:[#allocation52_spill] sm:$0xff] %v10174_v44  ;;  %v602_v39 = vmul.f32 %v9546_v60, %v536_v24  ;;  %v603_v48 = vmul.f32 %v13601_v21, %v536_v24  ;;  %v604_v59 = vmul.f32 %v9552_v62, %v536_v24 }
  0xe9   : > { %v605_v20 = vmul.f32 %v9555_v63, %v536_v24  ;;  %v502_v28 = vadd.f32 %v13636_v47, %v370_v11  ;;  %v504_v45 = vadd.f32 %v13637_v50, %v372_v5  ;;  %v498_v54 = vadd.f32 %v466_v37, %v9985_v36 }
  0xea   : > { %v599_v56 = vmul.f32 %v13601_v21, %v532_v27  ;;  %v600_v43 = vmul.f32 %v9552_v62, %v532_v27  ;;  %v601_v41 = vmul.f32 %v9555_v63, %v532_v27  ;;  %v635_v44 = vadd.f32 %v603_v48, %v503_v12 }
  0xeb   : > { %v637_v60 = vadd.f32 %v605_v20, %v505_v40  ;;  %v499_v61 = vadd.f32 %v467_v4, %v9988_v33  ;;  %v500_v52 = vadd.f32 %v468_v53, %v10003_v25  ;;  %v501_v24 = vadd.f32 %v469_v6, %v10008_v29  ;;  %v674_v36 = vpop.permute.xlu1 %673  ;;  %v10234_v20 = vpop.permute.xlu0 %4105 }
  0xec   : > { %v13638_v11 = vmax.f32 %v10105_v46, 0.0  ;;  %v634_v5 = vadd.f32 %v602_v39, %v502_v28  ;;  %v636_v37 = vadd.f32 %v604_v59, %v504_v45  ;;  %v630_v21 = vadd.f32 %v598_v55, %v498_v54  ;;  %13643 = vst [vmem:[#allocation71_spill] sm:$0xff] %v10234_v20 }
  0xed   : > { %v10198_v62 = vadd.f32 %v10044_v0, %v635_v44  ;;  %v10200_v63 = vadd.f32 %v674_v36, %v626_v19  ;;  %v10202_v27 = vadd.f32 %v674_v36, %v627_v32  ;;  %v10204_v33 = vadd.f32 %v674_v36, %v628_v16 }
  0xee   : > { %v10195_v47 = vand.u32 4294901760, %v13638_v11  ;;  %v10206_v25 = vadd.f32 %v674_v36, %v629_v31  ;;  %v631_v29 = vadd.f32 %v599_v56, %v499_v61  ;;  %v632_v12 = vadd.f32 %v600_v43, %v500_v52  ;;  %v4350_v11 = vld [vmem:[%s13138_s2 + $0x10] sm:$0xff] }
  0xef   : > { %v633_v40 = vadd.f32 %v601_v41, %v501_v24  ;;  %v10209_v4 = vadd.f32 %v10044_v0, %v637_v60  ;;  %v13252_v45 = vmax.f32 %v10200_v63, 0.0  ;;  %v13254_v53 = vmax.f32 %v10202_v27, 0.0  ;;  %v679_v32 = vpop.permute.xlu1 %678  ;;  %4368 = vperm.xlu0 %9184, %v4350_v11  }
  0xf0   : > { %v13251_v44 = vmax.f32 %v10204_v33, 0.0  ;;  %v13253_v19 = vmax.f32 %v10206_v25, 0.0  ;;  %v13639_v16 = vmax.f32 %v10109_v10, 0.0  ;;  %v13258_v31 = vmax.f32 %v10198_v62, 0.0 }
  0xf1   : > { %v10221_v52 = vadd.f32 %v10044_v0, %v634_v5  ;;  %v10224_v61 = vadd.f32 %v10044_v0, %v636_v37  ;;  %v10226_v55 = vadd.f32 %v679_v32, %v630_v21  ;;  %v10228_v39 = vadd.f32 %v679_v32, %v631_v29 }
  0xf2   : > { %v10217_v6 = vand.u32 4294901760, %v13639_v16  ;;  %v10230_v48 = vadd.f32 %v679_v32, %v632_v12  ;;  %v10232_v59 = vadd.f32 %v679_v32, %v633_v40  ;;  %v10238_v28 = vand.u32 4294901760, %v13254_v53 }
  0xf3   : > { %13640 = vst [vmem:[#allocation44_spill] sm:$0xff] %v10224_v61  ;;  %13641 = vst [vmem:[#allocation51_spill] sm:$0xff] %v10226_v55  ;;  %v10242_v50 = vand.u32 4294901760, %v13253_v19  ;;  %v10246_v0 = vand.u32 4294901760, %v13252_v45  ;;  %v10250_v54 = vand.u32 4294901760, %v13251_v44  ;;  %v13255_v56 = vmax.f32 %v10228_v39, 0.0  ;;  %v10263_v37 = vpop.permute.xlu1 %3976  ;;  %v10313_v44 = vpop.permute.xlu0 %4113 }
  0xf4   : > { %13642 = vst [vmem:[#allocation70_spill] sm:$0xff] %v10230_v48  ;;  %v13256_v43 = vmax.f32 %v10232_v59, 0.0  ;;  %v13644_v41 = vmax.f32 %v10099_v58, 0.0  ;;  %v13257_v24 = vmax.f32 %v10209_v4, 0.0  ;;  %v13261_v5 = vmax.f32 %v10226_v55, 0.0  ;;  %13652 = vst [vmem:[#allocation77_spill] sm:$0xff] %v10313_v44 }
  0xf5   : > { %v10267_v36 = vpack.c.bf16 %v10238_v28, %v10195_v47  ;;  %v10271_v21 = vpack.c.bf16 %v10242_v50, %v10217_v6  ;;  %v13647_v29 = vmax.f32 %v10107_v17, 0.0  ;;  %v13648_v40 = vmax.f32 %v10012_v51, 0.0 }
  0xf6   : > { %v10256_v60 = vand.u32 4294901760, %v13644_v41  ;;  %v13266_v41 = vmax.f32 %v10221_v52, 0.0  ;;  %v10297_v51 = vand.u32 4294901760, %v13255_v56  ;;  %v10309_v45 = vand.u32 4294901760, %v13257_v24 }
  0xf7   : > { %13645 = vst [vmem:[#allocation72_spill] sm:$0xff] %v10267_v36  ;;  %13646 = vst [vmem:[#allocation73_spill] sm:$0xff] %v10271_v21  ;;  %v10275_v12 = vand.u32 4294901760, %v13647_v29  ;;  %v10280_v32 = vsub.f32 %v13648_v40, %v10050_v30  ;;  %7954 = vmatprep.subr.bf16.mxu0 %v10267_v36  ;;  %8050 = vmatprep.subr.bf16.mxu1 %v10271_v21  ;;  %v10301_v30 = vand.u32 4294901760, %v13258_v31  ;;  %v10305_v40 = vand.u32 4294901760, %v13256_v43  ;;  %v10327_v31 = vpop.permute.xlu1 %4085  ;;  %v10363_v36 = vld [vmem:[%s13137_s1 + $0x20] sm:$0xff] }
  0xf8   : > { %v10289_v29 = vpack.c.bf16 %v10246_v0, %v10256_v60  ;;  %v1172_v19 = vand.u32 4294901760, %v10136_v34  ;;  %v1184_v53 = vand.u32 4294901760, %v10141_v49  ;;  %v10323_v43 = vand.u32 4294901760, %v13261_v5  ;;  %3996 = vperm.xlu1 %9179, %v10363_v36  }
  0xf9   : > { %13649 = vst [vmem:[#allocation74_spill] sm:$0xff] %v10280_v32  ;;  %v10293_v11 = vpack.c.bf16 %v10250_v54, %v10275_v12  ;;  %v10319_v56 = vpack.c.bf16 %v10301_v30, %v10297_v51  ;;  %v2554_v24 = vand.u32 4294901760, %v10146_v15  ;;  %v2566_v34 = vand.u32 4294901760, %v10151_v2  ;;  %v10348_v15 = vld [vmem:[%s13137_s1 + $0x38] sm:$0xff]  ;;  %v13659_v2 = vld [vmem:[#allocation19_spill] sm:$0xff] }
  0xfa   : > { %13650 = vst [vmem:[#allocation75_spill] sm:$0xff] %v10289_v29  ;;  %7956 = vmatpush1.bf16.msra.mxu0 %v10289_v29  ;;  %v10331_v49 = vpack.c.bf16 %v10309_v45, %v10305_v40  ;;  %v10335_v16 = vand.u32 4294901760, %v13266_v41  ;;  %v13655_v44 = vmax.f32 %v10230_v48, 0.0  ;;  %v13656_v5 = vmax.f32 %v10224_v61, 0.0  ;;  %13658 = vst [vmem:[#allocation81_spill] sm:$0xff] %v10348_v15  ;;  %4011 = vperm.xlu0 %9184, %v10348_v15   ;;  %v13660_v41 = vld [vmem:[#allocation21_spill] sm:$0xff] }
  0xfb   : > { %13651 = vst [vmem:[#allocation76_spill] sm:$0xff] %v10293_v11  ;;  %8052 = vmatpush1.bf16.msra.mxu1 %v10293_v11  ;;  %13653 = vst [vmem:[#allocation78_spill] sm:$0xff] %v10319_v56  ;;  %v4052_v29 = vmul.f32 %v13659_v2, %v10263_v37  ;;  %v4054_v21 = vmul.f32 %v13660_v41, %v10263_v37  ;;  %7958 = vmatprep.subr.bf16.mxu0 %v10319_v56  ;;  %v13661_v15 = vmax.f32 %v10018_v9, 0.0  ;;  %v4352_v9 = vld [vmem:[%s13138_s2 + $0x20] sm:$0xff] }
  0xfc   : > { %13654 = vst [vmem:[#allocation79_spill] sm:$0xff] %v10331_v49  ;;  %v10339_v20 = vand.u32 4294901760, %v13655_v44  ;;  %v10343_v11 = vand.u32 4294901760, %v13656_v5  ;;  %v4152_v44 = vmul.f32 %v13616_v1, %v10327_v31  ;;  %v4154_v5 = vmul.f32 %v13621_v38, %v10327_v31  ;;  %8054 = vmatprep.subr.bf16.mxu1 %v10331_v49 }
  0xfd   : > { %v10368_v61 = vsub.f32 %v13661_v15, %v10072_v18  ;;  %v13662_v48 = vmax.f32 %v10020_v35, 0.0  ;;  %v10378_v38 = vpack.c.bf16 %v10335_v16, %v10323_v43  ;;  %v13665_v18 = vmax.f32 %v10028_v3, 0.0 }
  0xfe   : > { %13657 = vst [vmem:[#allocation80_spill] sm:$0xff] %v10343_v11  ;;  %v10382_v1 = vpack.c.bf16 %v10343_v11, %v10339_v20  ;;  %v4184_v15 = vadd.f32 %v4152_v44, %v4052_v29  ;;  %v4186_v49 = vadd.f32 %v4154_v5, %v4054_v21  ;;  %v13668_v56 = vmax.f32 %v10026_v42, 0.0  ;;  %4378 = vperm.xlu0 %9184, %v4352_v9  }
  0xff   : > { %v10373_v55 = vsub.f32 %v13662_v48, %v10076_v57  ;;  %13663 = vst [vmem:[#allocation82_spill] sm:$0xff] %v10378_v38  ;;  %v10390_v35 = vsub.f32 %v13665_v18, %v10054_v23  ;;  %v13667_v57 = vmax.f32 %v10032_v22, 0.0  ;;  %7960 = vmatpush1.bf16.msra.mxu0 %v10378_v38  ;;  %v7961_v3 = vpack.c.bf16 %v1184_v53, %v1172_v19  ;;  %v13669_v22 = vld [vmem:[#allocation9_spill] sm:$0xff]  ;;  %v10421_v53 = vpop.permute.xlu1 %4217 }
 0x100   : > { %13664 = vst [vmem:[#allocation83_spill] sm:$0xff] %v10382_v1  ;;  %v10401_v11 = vsub.f32 %v13668_v56, %v10062_v14  ;;  %8056 = vmatpush1.bf16.msra.mxu1 %v10382_v1  ;;  %v8057_v23 = vpack.c.bf16 %v2566_v34, %v2554_v24  ;;  %v13286_v18 = vand.u32 4294901760, %v9982_v8  ;;  %v13672_v21 = vmax.f32 %v10105_v46, 0.0  ;;  %v3982_v56 = vpop.permute.xlu0 %3981  ;;  %v13674_v19 = vld [vmem:[#allocation61_spill] sm:$0xff] }
 0x101   : > { %13666 = vst [vmem:[#allocation84_spill] sm:$0xff] %v10390_v35  ;;  %v10395_v48 = vsub.f32 %v13667_v57, %v10058_v13  ;;  %v13670_v13 = vld [vmem:[#allocation10_spill] sm:$0xff]  ;;  %v13673_v42 = vmax.f32 %v10109_v10, 0.0  ;;  %v13289_v24 = vand.u32 4294901760, %v13674_v19  ;;  %v13675_v34 = vmax.f32 %v10099_v58, 0.0  ;;  %7962 = vmatprep.subr.bf16.mxu0 %v7961_v3 }
 0x102   : > { %v13671_v57 = vmax.f32 %v13670_v13, 0.0  ;;  %v10414_v44 = vsub.f32 %v13672_v21, %v10195_v47  ;;  %v4056_v46 = vmul.f32 %v13659_v2, %v3982_v56  ;;  %8058 = vmatprep.subr.bf16.mxu1 %v8057_v23  ;;  %v13676_v47 = vld [vmem:[#allocation23_spill] sm:$0xff]  ;;  %v4355_v13 = vld [vmem:[%s13138_s2 + $0x38] sm:$0xff]  ;;  %v13679_v58 = vld [vmem:[#allocation26_spill] sm:$0xff]  ;;  %v1177_v9 = vsub.f32 %v9982_v8, %v13286_v18 }
 0x103   : > { %v10419_v14 = vsub.f32 %v13673_v42, %v10217_v6  ;;  %v10427_v5 = vsub.f32 %v13675_v34, %v10256_v60  ;;  %v4284_v10 = vmul.f32 %v13676_v47, %v10421_v53  ;;  %v13677_v6 = vld [vmem:[#allocation62_spill] sm:$0xff]  ;;  %v4286_v60 = vmul.f32 %v13679_v58, %v10421_v53  ;;  %v13680_v23 = vld [vmem:[#allocation63_spill] sm:$0xff]  ;;  %4393 = vperm.xlu0 %9184, %v4355_v13  }
 0x104   : > { %v10409_v29 = vsub.f32 %v13671_v57, %v13669_v22  ;;  %v13291_v22 = vand.u32 4294901760, %v13677_v6  ;;  %v13678_v57 = vld [vmem:[#allocation24_spill] sm:$0xff]  ;;  %v1189_v3 = vsub.f32 %v13674_v19, %v13289_v24  ;;  %v13293_v21 = vand.u32 4294901760, %v13680_v23 }
 0x105   : > { %997 = vmatmul.mubr.f32.vlgmr.msra.gmra.mrb[0].mxu0 %v13678_v57  ;;  %2379 = vmatmul.mubr.f32.vlgmr.msra.gmra.mrb[0].mxu1 %v13678_v57  ;;  %v13294_v34 = vand.u32 4294901760, %v10170_v7  ;;  %v13297_v57 = vand.u32 4294901760, %v10390_v35  ;;  %v13681_v38 = vmov 0.0   ;;  %v1178_v18 = vand.u32 4294901760, %v1177_v9 }
 0x106   : > { %v2559_v42 = vsub.f32 %v13677_v6, %v13291_v22  ;;  %1002 = vmatprep.mubr.f32.mxu0 %v13681_v38  ;;  %2384 = vmatprep.mubr.f32.mxu1 %v13681_v38  ;;  %v1190_v8 = vand.u32 4294901760, %v1189_v3  ;;  %v2571_v24 = vsub.f32 %v13680_v23, %v13293_v21  ;;  %v13303_v19 = vand.u32 4294901760, %v10395_v48  ;;  %v10473_v21 = vld [vmem:[%s13140_s4 + $0x8] sm:$0xff] }
 0x107   : > { %v13682_v58 = vmov 1   ;;  %v1195_v1 = vsub.f32 %v10170_v7, %v13294_v34  ;;  %v1207_v6 = vsub.f32 %v10390_v35, %v13297_v57  ;;  %v13683_v9 = vand.u32 4294901760, %v10280_v32  ;;  %v13684_v7 = vld [vmem:[#allocation28_spill] sm:$0xff]  ;;  %789 = vperm.xlu0 %9184, %v10473_v21  }
 0x108   : > { %9180 = vset.pattern.permute.xlu1 %v13682_v58  ;;  %v2560_v22 = vand.u32 4294901760, %v2559_v42  ;;  %v7963_v13 = vpack.c.bf16 %v1190_v8, %v1178_v18  ;;  %v2572_v42 = vand.u32 4294901760, %v2571_v24  ;;  %v2589_v34 = vsub.f32 %v10395_v48, %v13303_v19  ;;  %v13686_v35 = vld [vmem:[#allocation20_spill] sm:$0xff] }
 0x109   : > { %v2577_v3 = vsub.f32 %v10280_v32, %v13683_v9  ;;  %4101 = vperm.xlu1 %9180, %v10363_v36   ;;  %1008 = vmatmul.mubr.f32.gmra.mrb[2].mxu0 %v13684_v7  ;;  %v10480_v57 = vadd.f32 %v4284_v10, %v4184_v15  ;;  %v13685_v9 = vmax.f32 %v10107_v17, 0.0  ;;  %v10488_v23 = vmul.f32 %v13686_v35, %v3982_v56 }
 0x10a   : > { %2390 = vmatmul.mubr.f32.gmra.mrb[2].mxu1 %v13684_v7  ;;  %v1196_v8 = vand.u32 4294901760, %v1195_v1  ;;  %v1208_v18 = vand.u32 4294901760, %v1207_v6  ;;  %1013 = vmatprep.mubr.f32.mxu0 %v13681_v38  ;;  %v8059_v24 = vpack.c.bf16 %v2572_v42, %v2560_v22  ;;  %v2590_v7 = vand.u32 4294901760, %v2589_v34 }
 0x10b   : > { %v10485_v32 = vsub.f32 %v13685_v9, %v10275_v12  ;;  %2395 = vmatprep.mubr.f32.mxu1 %v13681_v38  ;;  %7964 = vmatpush1.bf16.msra.mxu0 %v7963_v13  ;;  %v2578_v19 = vand.u32 4294901760, %v2577_v3  ;;  %v10492_v15 = vadd.f32 %v4286_v60, %v4186_v49  ;;  %v10496_v17 = vmul.f32 %v13660_v41, %v3982_v56  ;;  %v13687_v12 = vld [vmem:[#allocation22_spill] sm:$0xff]  ;;  %v13690_v13 = vld [vmem:[#allocation36_spill] sm:$0xff] }
 0x10c   : > { %v10499_v10 = vmul.f32 %v13687_v12, %v3982_v56  ;;  %v7965_v1 = vpack.c.bf16 %v1208_v18, %v1196_v8  ;;  %v13317_v6 = vand.u32 4294901760, %v10368_v61  ;;  %v13688_v9 = vmov 2   ;;  %8060 = vmatpush1.bf16.msra.mxu1 %v8059_v24 }
 0x10d   : > { %9181 = vset.pattern.permute.xlu1 %v13688_v9  ;;  %v13689_v22 = vmax.f32 %v10202_v27, 0.0  ;;  %v10509_v49 = vadd.f32 %v10118_v26, %v4056_v46  ;;  %v8061_v60 = vpack.c.bf16 %v2590_v7, %v2578_v19  ;;  %v13316_v34 = vand.u32 4294901760, %v10401_v11  ;;  %1019 = vmatmul.mubr.f32.gmra.mrb[4].mxu0 %v13690_v13  ;;  %v10532_v19 = vld [vmem:[%s13140_s4 + $0x18] sm:$0xff] }
 0x10e   : > { %v10515_v56 = vmul.f32 %v13686_v35, %v10263_v37  ;;  %v13691_v42 = vmax.f32 %v10206_v25, 0.0  ;;  %7966 = vmatprep.subr.bf16.mxu0 %v7965_v1  ;;  %v1201_v26 = vsub.f32 %v10368_v61, %v13317_v6  ;;  %v13311_v27 = vand.u32 4294901760, %v10373_v55  ;;  %2401 = vmatmul.mubr.f32.gmra.mrb[4].mxu1 %v13690_v13 }
 0x10f   : > { %v10506_v3 = vsub.f32 %v13689_v22, %v10238_v28  ;;  %v10527_v28 = vpop.permute.xlu1 %4221  ;;  %v10536_v25 = vmul.f32 %v13687_v12, %v10263_v37  ;;  %8062 = vmatprep.subr.bf16.mxu1 %v8061_v60  ;;  %v1213_v18 = vsub.f32 %v10401_v11, %v13316_v34  ;;  %v13307_v24 = vand.u32 4294901760, %v10409_v29  ;;  %1024 = vmatprep.mubr.f32.mxu0 %v13681_v38  ;;  %v13711_v12 = vld [vmem:[#allocation80_spill] sm:$0xff] }
 0x110   : > { %v10520_v8 = vsub.f32 %v13691_v42, %v10242_v50  ;;  %v13692_v50 = vmax.f32 %v10200_v63, 0.0  ;;  %v13693_v7 = vmax.f32 %v10204_v33, 0.0  ;;  %v13694_v37 = vmax.f32 %v10198_v62, 0.0  ;;  %2406 = vmatprep.mubr.f32.mxu1 %v13681_v38  ;;  %4233 = vperm.xlu1 %9181, %v10363_v36  }
 0x111   : > { %v13306_v22 = vand.u32 4294901760, %v10414_v44  ;;  %v1202_v60 = vand.u32 4294901760, %v1201_v26  ;;  %v1214_v13 = vand.u32 4294901760, %v1213_v18  ;;  %v2595_v33 = vsub.f32 %v10409_v29, %v13307_v24  ;;  %799 = vperm.xlu0 %9184, %v10532_v19  }
 0x112   : > { %v10541_v46 = vsub.f32 %v13692_v50, %v10246_v0  ;;  %v10551_v1 = vsub.f32 %v13693_v7, %v10250_v54  ;;  %v10556_v63 = vsub.f32 %v13694_v37, %v10301_v30  ;;  %v2583_v0 = vsub.f32 %v10373_v55, %v13311_v27  ;;  %v13695_v54 = vld [vmem:[#allocation53_spill] sm:$0xff] }
 0x113   : > { %v13305_v62 = vand.u32 4294901760, %v10506_v3  ;;  %1030 = vmatmul.mubr.f32.gmra.mrb[6].mxu0 %v13695_v54  ;;  %v13696_v30 = vmax.f32 %v10228_v39, 0.0  ;;  %v13697_v36 = vmax.f32 %v10209_v4, 0.0  ;;  %v1219_v50 = vsub.f32 %v10414_v44, %v13306_v22  ;;  %2412 = vmatmul.mubr.f32.gmra.mrb[6].mxu1 %v13695_v54  ;;  %v10589_v39 = vld [vmem:[%s13140_s4 + $0x28] sm:$0xff] }
 0x114   : > { %v13304_v18 = vand.u32 4294901760, %v10419_v14  ;;  %1035 = vmatprep.mubr.f32.mxu0 %v13681_v38  ;;  %13698 = vst [vmem:[#allocation9_spill] sm:$0xff] %v10589_v39  ;;  %v2584_v7 = vand.u32 4294901760, %v2583_v0  ;;  %v2596_v4 = vand.u32 4294901760, %v2595_v33  ;;  %2417 = vmatprep.mubr.f32.mxu1 %v13681_v38  ;;  %v13699_v37 = vmax.f32 %v10232_v59, 0.0  ;;  %v9188_v33 = vld [vmem:[%s13137_s1 + $0x28] sm:$0xff] }
 0x115   : > { %v10573_v42 = vsub.f32 %v13696_v30, %v10297_v51  ;;  %v10578_v26 = vsub.f32 %v13697_v36, %v10309_v45  ;;  %v7967_v51 = vpack.c.bf16 %v1214_v13, %v1202_v60  ;;  %v1231_v45 = vsub.f32 %v10506_v3, %v13305_v62  ;;  %v10609_v13 = vpop.permute.xlu1 %3991  ;;  %4237 = vperm.xlu1 %9181, %v9188_v33   ;;  %v13702_v59 = vld [vmem:[#allocation51_spill] sm:$0xff] }
 0x116   : > { %v10598_v54 = vsub.f32 %v13699_v37, %v10305_v40  ;;  %v13700_v30 = vmax.f32 %v10221_v52, 0.0  ;;  %v2601_v0 = vsub.f32 %v10419_v14, %v13304_v18  ;;  %v13309_v60 = vand.u32 4294901760, %v10520_v8  ;;  %13701 = vst [vmem:[#allocation10_spill] sm:$0xff] %v10609_v13  ;;  %809 = vperm.xlu0 %9184, %v10589_v39   ;;  %v13704_v18 = vld [vmem:[#allocation70_spill] sm:$0xff] }
 0x117   : > { %v13703_v40 = vmax.f32 %v13702_v59, 0.0  ;;  %7968 = vmatpush1.bf16.msra.mxu0 %v7967_v51  ;;  %v8063_v52 = vpack.c.bf16 %v2596_v4, %v2584_v7  ;;  %v13705_v62 = vmax.f32 %v13704_v18, 0.0  ;;  %v13308_v59 = vand.u32 4294901760, %v10427_v5 }
 0x118   : > { %v10603_v36 = vsub.f32 %v13700_v30, %v10335_v16  ;;  %v1220_v16 = vand.u32 4294901760, %v1219_v50  ;;  %v1232_v30 = vand.u32 4294901760, %v1231_v45  ;;  %v2602_v24 = vand.u32 4294901760, %v2601_v0 }
 0x119   : > { %v10617_v37 = vsub.f32 %v13703_v40, %v10323_v43  ;;  %v10623_v22 = vsub.f32 %v13705_v62, %v10339_v20  ;;  %v2613_v33 = vsub.f32 %v10520_v8, %v13309_v60  ;;  %v4351_v43 = vld [vmem:[%s13138_s2 + $0x18] sm:$0xff]  ;;  %8064 = vmatpush1.bf16.msra.mxu1 %v8063_v52  ;;  %v13310_v51 = vand.u32 4294901760, %v10541_v46  ;;  %v10662_v27 = vpop.permute.xlu1 %4093 }
 0x11a   : > { %v7969_v50 = vpack.c.bf16 %v1232_v30, %v1220_v16  ;;  %v13315_v7 = vand.u32 4294901760, %v10485_v32  ;;  %v13312_v20 = vand.u32 4294901760, %v10551_v1  ;;  %v10638_v62 = vld [vmem:[%s13140_s4 + $0x38] sm:$0xff]  ;;  %v1225_v4 = vsub.f32 %v10427_v5, %v13308_v59  ;;  %13708 = vst [vmem:[#allocation28_spill] sm:$0xff] %v10662_v27 }
 0x11b   : > { %13706 = vst [vmem:[#allocation24_spill] sm:$0xff] %v10638_v62  ;;  %v2614_v18 = vand.u32 4294901760, %v2613_v33  ;;  %v13314_v45 = vand.u32 4294901760, %v10573_v42  ;;  %v13313_v0 = vand.u32 4294901760, %v10556_v63  ;;  %v13707_v40 = vmov 0   ;;  %819 = vperm.xlu0 %9184, %v10638_v62  }
 0x11c   : > { %9182 = vset.pattern.permute.xlu1 %v13707_v40  ;;  %7970 = vmatprep.subr.bf16.mxu0 %v7969_v50  ;;  %v1237_v52 = vsub.f32 %v10541_v46, %v13310_v51  ;;  %v2607_v16 = vsub.f32 %v10485_v32, %v13315_v7  ;;  %v2619_v30 = vsub.f32 %v10551_v1, %v13312_v20  ;;  %v13319_v33 = vand.u32 4294901760, %v10598_v54  ;;  %v10668_v20 = vld [vmem:[%s13137_s1 + $0x30] sm:$0xff] }
 0x11d   : > { %4373 = vperm.xlu1 %9182, %v4351_v43   ;;  %v8065_v59 = vpack.c.bf16 %v2614_v18, %v2602_v24  ;;  %v1226_v60 = vand.u32 4294901760, %v1225_v4  ;;  %v1243_v50 = vsub.f32 %v10573_v42, %v13314_v45  ;;  %v1255_v51 = vsub.f32 %v10556_v63, %v13313_v0  ;;  %v10676_v0 = vld [vmem:[%s13140_s4 + $0x48] sm:$0xff]  ;;  %v10678_v45 = vpop.permute.xlu0 %3986 }
 0x11e   : > { %v1238_v43 = vand.u32 4294901760, %v1237_v52  ;;  %v2608_v24 = vand.u32 4294901760, %v2607_v16  ;;  %v2620_v18 = vand.u32 4294901760, %v2619_v30  ;;  %v2625_v4 = vsub.f32 %v10598_v54, %v13319_v33  ;;  %13709 = vst [vmem:[#allocation36_spill] sm:$0xff] %v10678_v45  ;;  %v13710_v16 = vld [vmem:[#allocation15_spill] sm:$0xff]  ;;  %v13712_v33 = vld [vmem:[#allocation44_spill] sm:$0xff] }
 0x11f   : > { %8066 = vmatprep.subr.bf16.mxu1 %v8065_v59  ;;  %v1244_v7 = vand.u32 4294901760, %v1243_v50  ;;  %v1256_v34 = vand.u32 4294901760, %v1255_v51  ;;  %v13325_v6 = vand.u32 4294901760, %v10578_v26  ;;  %v4064_v52 = vmul.f32 %v13659_v2, %v10609_v13  ;;  %829 = vperm.xlu0 %9184, %v10676_v0   ;;  %v13726_v45 = vld [vmem:[#allocation38_spill] sm:$0xff] }
 0x120   : > { %v4153_v30 = vmul.f32 %v13710_v16, %v10327_v31  ;;  %v13713_v35 = vmax.f32 %v13712_v33, 0.0  ;;  %v7971_v62 = vpack.c.bf16 %v1238_v43, %v1226_v60  ;;  %v8067_v39 = vpack.c.bf16 %v2620_v18, %v2608_v24  ;;  %v13714_v16 = vld [vmem:[#allocation18_spill] sm:$0xff]  ;;  %v13718_v18 = vld [vmem:[#allocation52_spill] sm:$0xff] }
 0x121   : > { %4006 = vperm.xlu1 %9182, %v10668_v20   ;;  %v7973_v59 = vpack.c.bf16 %v1256_v34, %v1244_v7  ;;  %v2626_v50 = vand.u32 4294901760, %v2625_v4  ;;  %v2637_v51 = vsub.f32 %v10578_v26, %v13325_v6  ;;  %v4066_v2 = vmul.f32 %v13660_v41, %v10609_v13  ;;  %v13717_v7 = vld [vmem:[#allocation25_spill] sm:$0xff] }
 0x122   : > { %v10688_v27 = vsub.f32 %v13713_v35, %v13711_v12  ;;  %v4155_v33 = vmul.f32 %v13714_v16, %v10327_v31  ;;  %7972 = vmatpush1.bf16.msra.mxu0 %v7971_v62  ;;  %8068 = vmatpush1.bf16.msra.mxu1 %v8067_v39  ;;  %v13715_v35 = vld [vmem:[#allocation69_spill] sm:$0xff]  ;;  %v13328_v34 = vand.u32 4294901760, %v10617_v37  ;;  %v13329_v60 = vand.u32 4294901760, %v10603_v36  ;;  %v10710_v31 = vpop.permute.xlu1 %4225  ;;  %v10715_v39 = vld [vmem:[%s13140_s4 + $0x58] sm:$0xff]  ;;  %v13721_v62 = vld [vmem:[#allocation27_spill] sm:$0xff] }
 0x123   : > { %v10700_v12 = vadd.f32 %v13715_v35, %v4064_v52  ;;  %v4285_v43 = vmul.f32 %v13717_v7, %v10421_v53  ;;  %7974 = vmatprep.subr.bf16.mxu0 %v7973_v59  ;;  %v2638_v24 = vand.u32 4294901760, %v2637_v51  ;;  %v10707_v4 = vadd.f32 %v13718_v18, %v4066_v2  ;;  %13720 = vst [vmem:[#allocation70_spill] sm:$0xff] %v10710_v31  ;;  %v4359_v18 = vpop.permute.xlu0 %4358  ;;  %v13724_v13 = vld [vmem:[#allocation45_spill] sm:$0xff] }
 0x124   : > { %v4287_v52 = vmul.f32 %v13721_v62, %v10421_v53  ;;  %v1249_v59 = vsub.f32 %v10617_v37, %v13328_v34  ;;  %v1261_v2 = vsub.f32 %v10603_v36, %v13329_v60  ;;  %v13332_v51 = vand.u32 4294901760, %v10688_v27  ;;  %839 = vperm.xlu0 %9184, %v10715_v39   ;;  %v758_v41 = vld [vmem:[%s13139_s3 + $0x40] sm:$0xff] }
 0x125   : > { %13716 = vst [vmem:[#allocation53_spill] sm:$0xff] %v10700_v12  ;;  %13719 = vst [vmem:[#allocation51_spill] sm:$0xff] %v10707_v4  ;;  %9183 = vset.pattern.permute.xlu1 %v13682_v58  ;;  %v4185_v35 = vadd.f32 %v4153_v30, %v10515_v56  ;;  %v8069_v6 = vpack.c.bf16 %v2638_v24, %v2626_v50  ;;  %v13722_v4 = vand.u32 4294901760, %v10623_v22  ;;  %v13723_v12 = vld [vmem:[#allocation54_spill] sm:$0xff] }
 0x126   : > { %v1039_v16 = vsub.f32 %v13724_v13, %v13723_v12  ;;  %4109 = vperm.xlu1 %9183, %v10668_v20   ;;  %v4187_v34 = vadd.f32 %v4155_v33, %v10536_v25  ;;  %v1250_v60 = vand.u32 4294901760, %v1249_v59  ;;  %v1262_v31 = vand.u32 4294901760, %v1261_v2  ;;  %v13725_v56 = vld [vmem:[#allocation34_spill] sm:$0xff]  ;;  %v13727_v12 = vld [vmem:[#allocation39_spill] sm:$0xff] }
 0x127   : > { %v2631_v53 = vsub.f32 %v10623_v22, %v13722_v4  ;;  %v2643_v58 = vsub.f32 %v10688_v27, %v13332_v51  ;;  %v4190_v30 = vadd.f32 %v13725_v56, %v10496_v17  ;;  %v4317_v50 = vadd.f32 %v4285_v43, %v4185_v35  ;;  %8070 = vmatprep.subr.bf16.mxu1 %v8069_v6  ;;  %v13728_v6 = vld [vmem:[#allocation55_spill] sm:$0xff]  ;;  %v10753_v35 = vpop.permute.xlu1 %4229  ;;  %v13734_v56 = vld [vmem:[#allocation33_spill] sm:$0xff] }
 0x128   : > { %v1040_v4 = vand.u32 4294901760, %v1039_v16  ;;  %v4319_v25 = vadd.f32 %v4287_v52, %v4187_v34  ;;  %v10745_v33 = vadd.f32 %v4359_v18, %v10480_v57  ;;  %v7975_v59 = vpack.c.bf16 %v1262_v31, %v1250_v60  ;;  %v13729_v16 = vld [vmem:[#allocation46_spill] sm:$0xff]  ;;  %13730 = vst [vmem:[#allocation80_spill] sm:$0xff] %v10753_v35  ;;  %v13735_v35 = vld [vmem:[#allocation40_spill] sm:$0xff] }
 0x129   : > { %v2632_v24 = vand.u32 4294901760, %v2631_v53  ;;  %v2644_v2 = vand.u32 4294901760, %v2643_v58  ;;  %v4288_v51 = vmul.f32 %v13676_v47, %v10527_v28  ;;  %v7977_v17 = vpack.c.bf16 %v13727_v12, %v13726_v45  ;;  %v13731_v53 = vld [vmem:[#allocation32_spill] sm:$0xff]  ;;  %v13733_v60 = vld [vmem:[#allocation26_spill] sm:$0xff]  ;;  %v13736_v47 = vld [vmem:[#allocation59_spill] sm:$0xff] }
 0x12a   : > { %1041 = vmatmul.mubr.f32.gmra.mrb[8].mxu0 %v1040_v4  ;;  %2423 = vmatmul.mubr.f32.gmra.mrb[8].mxu1 %v1040_v4  ;;  %v1050_v43 = vsub.f32 %v13729_v16, %v13728_v6  ;;  %v10756_v34 = vand.u32 4294901760, %v13731_v53  ;;  %v10759_v57 = vadd.f32 %v4359_v18, %v10492_v15  ;;  %v4290_v31 = vmul.f32 %v13733_v60, %v10527_v28  ;;  %v13737_v16 = vld [vmem:[#allocation35_spill] sm:$0xff] }
 0x12b   : > { %7976 = vmatpush1.bf16.msra.mxu0 %v7975_v59  ;;  %v8071_v52 = vpack.c.bf16 %v2644_v2, %v2632_v24  ;;  %1046 = vmatprep.mubr.f32.mxu0 %v13681_v38  ;;  %v888_v58 = vsel %vm862_vm0, %v758_v41, 0  ;;  %v4189_v4 = vadd.f32 %v13734_v56, %v10488_v23  ;;  %v8073_v6 = vpack.c.bf16 %v13736_v47, %v13735_v35  ;;  %v13738_v41 = vld [vmem:[#allocation56_spill] sm:$0xff]  ;;  %v13739_v59 = vld [vmem:[#allocation47_spill] sm:$0xff]  ;;  %v759_v23 = vld [vmem:[%s13139_s3 + $0x48] sm:$0xff]  ;;  %v4364_v56 = vpop.permute.xlu1 %4363 }
 0x12c   : > { %13732 = vst [vmem:[#allocation44_spill] sm:$0xff] %v10756_v34  ;;  %7978 = vmatprep.subr.bf16.mxu0 %v7977_v17  ;;  %2428 = vmatprep.mubr.f32.mxu1 %v13681_v38  ;;  %v1051_v15 = vand.u32 4294901760, %v1050_v43  ;;  %v4191_v13 = vadd.f32 %v13737_v16, %v10499_v10  ;;  %v10772_v60 = vadd.f32 %v4359_v18, %v4317_v50  ;;  %v10788_v16 = vand.u32 4294901760, %v888_v58  ;;  %v10793_v43 = vld [vmem:[%s13140_s4 + $0x68] sm:$0xff] }
 0x12d   : > { %v4289_v24 = vmul.f32 %v13717_v7, %v10527_v28  ;;  %8072 = vmatpush1.bf16.msra.mxu1 %v8071_v52  ;;  %v1061_v2 = vsub.f32 %v13739_v59, %v13738_v41  ;;  %v10781_v17 = vadd.f32 %v4359_v18, %v4319_v25  ;;  %v10785_v10 = vsub.f32 %v13731_v53, %v10756_v34 }
 0x12e   : > { %8074 = vmatprep.subr.bf16.mxu1 %v8073_v6  ;;  %1052 = vmatmul.mubr.f32.gmra.mrb[10].mxu0 %v1051_v15  ;;  %v4320_v50 = vadd.f32 %v4288_v51, %v10509_v49  ;;  %13741 = vst [vmem:[#allocation52_spill] sm:$0xff] %v10788_v16  ;;  %v4322_v6 = vadd.f32 %v4290_v31, %v4190_v30  ;;  %v760_v49 = vld [vmem:[%s13139_s3 + $0x50] sm:$0xff]  ;;  %v13747_v30 = vmax.f32 %v10759_v57, 0.0  ;;  %v13790_v34 = vand.u32 4294901760, %v10395_v48 }
 0x12f   : > { %13740 = vst [vmem:[#allocation69_spill] sm:$0xff] %v10785_v10  ;;  %2434 = vmatmul.mubr.f32.gmra.mrb[10].mxu1 %v1051_v15  ;;  %1057 = vmatprep.mubr.f32.mxu0 %v13681_v38  ;;  %v1062_v25 = vand.u32 4294901760, %v1061_v2  ;;  %v4291_v51 = vmul.f32 %v13721_v62, %v10527_v28  ;;  %v10805_v53 = vand.u32 4294901760, %v10785_v10  ;;  %v10808_v18 = vsub.f32 %v888_v58, %v10788_v16  ;;  %v13774_v16 = vld [vmem:[#allocation74_spill] sm:$0xff] }
 0x130   : > { %2439 = vmatprep.mubr.f32.mxu1 %v13681_v38  ;;  %v891_v15 = vsel %vm862_vm0, %v759_v23, 0  ;;  %9185 = vset.pattern.permute.xlu1 %v13688_v9  ;;  %v4321_v31 = vadd.f32 %v4289_v24, %v4189_v4  ;;  %v894_v9 = vsel %vm862_vm0, %v760_v49, 0  ;;  %v761_v4 = vld [vmem:[%s13139_s3 + $0x58] sm:$0xff]  ;;  %v13746_v23 = vmax.f32 %v10745_v33, 0.0 }
 0x131   : > { %13742 = vst [vmem:[#allocation34_spill] sm:$0xff] %v10805_v53  ;;  %13743 = vst [vmem:[#allocation32_spill] sm:$0xff] %v10808_v18  ;;  %v10813_v2 = vand.u32 4294901760, %v891_v15  ;;  %4241 = vperm.xlu1 %9185, %v10668_v20   ;;  %849 = vperm.xlu0 %9184, %v10793_v43   ;;  %v1072_v58 = vsub.f32 %v10785_v10, %v10805_v53  ;;  %v10821_v52 = vand.u32 4294901760, %v10808_v18  ;;  %v762_v20 = vld [vmem:[%s13139_s3 + $0x60] sm:$0xff]  ;;  %v10833_v24 = vld [vmem:[%s13140_s4 + $0x78] sm:$0xff] }
 0x132   : > { %1063 = vmatmul.mubr.f32.gmra.mrb[12].mxu0 %v1062_v25  ;;  %v10837_v28 = vand.u32 4294901760, %v13746_v23  ;;  %v10841_v49 = vand.u32 4294901760, %v13747_v30  ;;  %v10844_v62 = vadd.f32 %v4364_v56, %v4320_v50  ;;  %v4323_v41 = vadd.f32 %v4291_v51, %v4191_v13  ;;  %v764_v13 = vld [vmem:[%s13139_s3 + $0x70] sm:$0xff]  ;;  %v13751_v51 = vld [vmem:[#allocation81_spill] sm:$0xff] }
 0x133   : > { %13744 = vst [vmem:[#allocation33_spill] sm:$0xff] %v10813_v2  ;;  %13745 = vst [vmem:[#allocation35_spill] sm:$0xff] %v10821_v52  ;;  %2445 = vmatmul.mubr.f32.gmra.mrb[12].mxu1 %v1062_v25  ;;  %1068 = vmatprep.mubr.f32.mxu0 %v13681_v38  ;;  %v10847_v7 = vsub.f32 %v891_v15, %v10813_v2  ;;  %v1073_v53 = vand.u32 4294901760, %v1072_v58  ;;  %v1083_v23 = vsub.f32 %v10808_v18, %v10821_v52  ;;  %v763_v25 = vld [vmem:[%s13139_s3 + $0x68] sm:$0xff] }
 0x134   : > { %2450 = vmatprep.mubr.f32.mxu1 %v13681_v38  ;;  %v10852_v10 = vand.u32 4294901760, %v894_v9  ;;  %v10857_v30 = vadd.f32 %v4364_v56, %v4321_v31  ;;  %v897_v15 = vsel %vm862_vm0, %v761_v4, 0  ;;  %v900_v59 = vsel %vm862_vm0, %v762_v20, 0 }
 0x135   : > { %13748 = vst [vmem:[#allocation85_spill] sm:$0xff] %v10847_v7  ;;  %v10860_v50 = vand.u32 4294901760, %v10847_v7  ;;  %4245 = vperm.xlu1 %9185, %v13751_v51   ;;  %859 = vperm.xlu0 %9184, %v10833_v24   ;;  %v10869_v58 = vadd.f32 %v4364_v56, %v4322_v6  ;;  %v1084_v31 = vand.u32 4294901760, %v1083_v23  ;;  %v10874_v18 = vand.u32 4294901760, %v897_v15  ;;  %v765_v6 = vld [vmem:[%s13139_s3 + $0x78] sm:$0xff] }
 0x136   : > { %13749 = vst [vmem:[#allocation86_spill] sm:$0xff] %v10852_v10  ;;  %1074 = vmatmul.mubr.f32.gmra.mrb[14].mxu0 %v1073_v53  ;;  %v10872_v52 = vsub.f32 %v894_v9, %v10852_v10  ;;  %v4432_v4 = vmax.f32 %v10844_v62, 0.0  ;;  %v10880_v51 = vand.u32 4294901760, %v900_v59  ;;  %v903_v47 = vsel %vm862_vm0, %v763_v25, 0  ;;  %v4353_v9 = vld [vmem:[%s13138_s2 + $0x28] sm:$0xff]  ;;  %v13773_v10 = vld [vmem:[#allocation84_spill] sm:$0xff] }
 0x137   : > { %13750 = vst [vmem:[#allocation87_spill] sm:$0xff] %v10860_v50  ;;  %13753 = vst [vmem:[#allocation88_spill] sm:$0xff] %v10874_v18  ;;  %2456 = vmatmul.mubr.f32.gmra.mrb[14].mxu1 %v1073_v53  ;;  %1079 = vmatprep.mubr.f32.mxu0 %v13681_v38  ;;  %v1094_v20 = vsub.f32 %v10847_v7, %v10860_v50  ;;  %v10894_v53 = vsub.f32 %v897_v15, %v10874_v18  ;;  %v10896_v23 = vand.u32 4294901760, %v903_v47  ;;  %v13772_v18 = vld [vmem:[#allocation50_spill] sm:$0xff] }
 0x138   : > { %13752 = vst [vmem:[#allocation81_spill] sm:$0xff] %v10872_v52  ;;  %13754 = vst [vmem:[#allocation89_spill] sm:$0xff] %v10880_v51  ;;  %2461 = vmatprep.mubr.f32.mxu1 %v13681_v38  ;;  %v10891_v62 = vand.u32 4294901760, %v10872_v52  ;;  %v906_v25 = vsel %vm862_vm0, %v764_v13, 0  ;;  %v13758_v50 = vmax.f32 %v10745_v33, 0.0  ;;  %v10904_v35 = vadd.f32 %v4364_v56, %v4323_v41  ;;  %v13766_v56 = vld [vmem:[#allocation61_spill] sm:$0xff] }
 0x139   : > { %13756 = vst [vmem:[#allocation91_spill] sm:$0xff] %v10894_v53  ;;  %13757 = vst [vmem:[#allocation92_spill] sm:$0xff] %v10896_v23  ;;  %v1095_v12 = vand.u32 4294901760, %v1094_v20  ;;  %v10907_v45 = vsub.f32 %v900_v59, %v10880_v51  ;;  %9186 = vset.pattern.permute.xlu1 %v13707_v40  ;;  %4499 = vperm.xlu0 %9184, %v10473_v21   ;;  %v10914_v13 = vand.u32 4294901760, %v10894_v53  ;;  %v10916_v33 = vand.u32 4294901760, %v906_v25  ;;  %v13765_v40 = vld [vmem:[#allocation60_spill] sm:$0xff] }
 0x13a   : > { %13755 = vst [vmem:[#allocation90_spill] sm:$0xff] %v10891_v62  ;;  %v10902_v7 = vsub.f32 %v13758_v50, %v10837_v28  ;;  %1085 = vmatmul.mubr.f32.gmra.mrb[16].mxu0 %v1084_v31  ;;  %v1105_v15 = vsub.f32 %v10872_v52, %v10891_v62  ;;  %v909_v41 = vsel %vm862_vm0, %v765_v6, 0  ;;  %4383 = vperm.xlu1 %9186, %v4353_v9   ;;  %v13767_v20 = vld [vmem:[#allocation62_spill] sm:$0xff]  ;;  %v13768_v62 = vld [vmem:[#allocation63_spill] sm:$0xff]  ;;  %v10971_v50 = vld [vmem:[%s13140_s4] sm:$0xff] }
 0x13b   : > { %13760 = vst [vmem:[#allocation94_spill] sm:$0xff] %v10907_v45  ;;  %13761 = vst [vmem:[#allocation95_spill] sm:$0xff] %v10914_v13  ;;  %2467 = vmatmul.mubr.f32.gmra.mrb[16].mxu1 %v1084_v31  ;;  %1090 = vmatprep.mubr.f32.mxu0 %v13681_v38  ;;  %v10921_v59 = vand.u32 4294901760, %v10907_v45  ;;  %v10924_v21 = vsub.f32 %v903_v47, %v10896_v23  ;;  %v4354_v6 = vld [vmem:[%s13138_s2 + $0x30] sm:$0xff]  ;;  %v13769_v31 = vmax.f32 %v10759_v57, 0.0  ;;  %v4434_v47 = vmax.f32 %v10869_v58, 0.0 }
 0x13c   : > { %13759 = vst [vmem:[#allocation93_spill] sm:$0xff] %v10902_v7  ;;  %13762 = vst [vmem:[#allocation96_spill] sm:$0xff] %v10916_v33  ;;  %v10940_v23 = vand.u32 4294901760, %v4432_v4  ;;  %2472 = vmatprep.mubr.f32.mxu1 %v13681_v38  ;;  %v10944_v52 = vand.u32 4294901760, %v909_v41  ;;  %v1116_v58 = vsub.f32 %v10894_v53, %v10914_v13  ;;  %v10954_v51 = vsub.f32 %v906_v25, %v10916_v33 }
 0x13d   : > { %13763 = vst [vmem:[#allocation97_spill] sm:$0xff] %v10921_v59  ;;  %13764 = vst [vmem:[#allocation98_spill] sm:$0xff] %v10924_v21  ;;  %v10936_v9 = vsub.f32 %v13769_v31, %v10841_v49  ;;  %4509 = vperm.xlu0 %9184, %v10532_v19   ;;  %v1106_v31 = vand.u32 4294901760, %v1105_v15  ;;  %v1127_v57 = vsub.f32 %v10907_v45, %v10921_v59  ;;  %v10962_v19 = vand.u32 4294901760, %v10924_v21  ;;  %v13778_v45 = vld [vmem:[#allocation9_spill] sm:$0xff] }
 0x13e   : > { %13771 = vst [vmem:[#allocation61_spill] sm:$0xff] %v10944_v52  ;;  %1096 = vmatmul.mubr.f32.gmra.mrb[18].mxu0 %v1095_v12  ;;  %4388 = vperm.xlu1 %9186, %v4354_v6   ;;  %13776 = vst [vmem:[#allocation63_spill] sm:$0xff] %v10971_v50  ;;  %v6008_v6 = vand.u32 4294901760, %v4434_v47  ;;  %v10982_v59 = vsub.f32 %v909_v41, %v10944_v52  ;;  %v1117_v53 = vand.u32 4294901760, %v1116_v58  ;;  %v10992_v2 = vand.u32 4294901760, %v10954_v51  ;;  %v11005_v58 = vld [vmem:[%s13140_s4 + $0x10] sm:$0xff] }
 0x13f   : > { %13770 = vst [vmem:[#allocation60_spill] sm:$0xff] %v10936_v9  ;;  %2478 = vmatmul.mubr.f32.gmra.mrb[18].mxu1 %v1095_v12  ;;  %1101 = vmatprep.mubr.f32.mxu0 %v13681_v38  ;;  %13775 = vst [vmem:[#allocation62_spill] sm:$0xff] %v10962_v19  ;;  %v10974_v12 = vsub.f32 %v4432_v4, %v10940_v23  ;;  %v1128_v13 = vand.u32 4294901760, %v1127_v57  ;;  %v13780_v4 = vand.u32 4294901760, %v13765_v40  ;;  %v13781_v41 = vand.u32 4294901760, %v13766_v56 }
 0x140   : > { %2483 = vmatprep.mubr.f32.mxu1 %v13681_v38  ;;  %13779 = vst [vmem:[#allocation84_spill] sm:$0xff] %v10992_v2  ;;  %v13783_v15 = vand.u32 4294901760, %v13767_v20  ;;  %v13786_v57 = vand.u32 4294901760, %v13772_v18  ;;  %v13789_v33 = vand.u32 4294901760, %v13774_v16 }
 0x141   : > { %13777 = vst [vmem:[#allocation50_spill] sm:$0xff] %v10974_v12  ;;  %4519 = vperm.xlu0 %9184, %v13778_v45   ;;  %v1138_v45 = vsub.f32 %v10924_v21, %v10962_v19  ;;  %v11011_v25 = vpack.c.bf16 %v13781_v41, %v13780_v4  ;;  %v13787_v19 = vand.u32 4294901760, %v13773_v10  ;;  %v13792_v41 = vand.u32 4294901760, %v10368_v61 }
 0x142   : > { %1107 = vmatmul.mubr.f32.gmra.mrb[20].mxu0 %v1106_v31  ;;  %784 = vperm.xlu1 %9186, %v10971_v50   ;;  %v11030_v4 = vpack.c.bf16 %v13790_v34, %v13789_v33  ;;  %v13802_v33 = vand.u32 4294901760, %v10419_v14 }
 0x143   : > { %2489 = vmatmul.mubr.f32.gmra.mrb[20].mxu1 %v1106_v31  ;;  %1112 = vmatprep.mubr.f32.mxu0 %v13681_v38  ;;  %13782 = vst [vmem:[#allocation74_spill] sm:$0xff] %v11011_v25  ;;  %v13784_v31 = vand.u32 4294901760, %v13768_v62  ;;  %v11024_v21 = vpack.c.bf16 %v13787_v19, %v13786_v57  ;;  %v13793_v25 = vand.u32 4294901760, %v10401_v11  ;;  %v13798_v19 = vld [vmem:[#allocation24_spill] sm:$0xff]  ;;  %v13799_v57 = vand.u32 4294901760, %v10414_v44 }
 0x144   : > { %2494 = vmatprep.mubr.f32.mxu1 %v13681_v38  ;;  %13791 = vst [vmem:[#allocation100_spill] sm:$0xff] %v11030_v4  ;;  %v13803_v4 = vand.u32 4294901760, %v10520_v8 }
 0x145   : > { %v11017_v52 = vpack.c.bf16 %v13784_v31, %v13783_v15  ;;  %13788 = vst [vmem:[#allocation99_spill] sm:$0xff] %v11024_v21  ;;  %v11036_v15 = vpack.c.bf16 %v13793_v25, %v13792_v41  ;;  %v13795_v31 = vand.u32 4294901760, %v10373_v55  ;;  %4529 = vperm.xlu0 %9184, %v13798_v19   ;;  %v13800_v21 = vand.u32 4294901760, %v10506_v3 }
 0x146   : > { %v11055_v25 = vpack.c.bf16 %v13803_v4, %v13802_v33  ;;  %v13805_v41 = vand.u32 4294901760, %v10427_v5  ;;  %v13809_v19 = vand.u32 4294901760, %v10551_v1  ;;  %1118 = vmatmul.mubr.f32.gmra.mrb[22].mxu0 %v1117_v53  ;;  %794 = vperm.xlu1 %9186, %v11005_v58   ;;  %v13812_v4 = vand.u32 4294901760, %v10556_v63 }
 0x147   : > { %13785 = vst [vmem:[#allocation9_spill] sm:$0xff] %v11017_v52  ;;  %13794 = vst [vmem:[#allocation101_spill] sm:$0xff] %v11036_v15  ;;  %v13796_v52 = vand.u32 4294901760, %v10409_v29  ;;  %v11049_v34 = vpack.c.bf16 %v13800_v21, %v13799_v57  ;;  %v13806_v15 = vand.u32 4294901760, %v10541_v46  ;;  %v13811_v21 = vand.u32 4294901760, %v10573_v42  ;;  %2500 = vmatmul.mubr.f32.gmra.mrb[22].mxu1 %v1117_v53  ;;  %1123 = vmatprep.mubr.f32.mxu0 %v13681_v38 }
 0x148   : > { %13804 = vst [vmem:[#allocation103_spill] sm:$0xff] %v11055_v25  ;;  %v13813_v33 = vand.u32 4294901760, %v10598_v54  ;;  %2505 = vmatprep.mubr.f32.mxu1 %v13681_v38 }
 0x149   : > { %v11042_v50 = vpack.c.bf16 %v13796_v52, %v13795_v31  ;;  %13801 = vst [vmem:[#allocation24_spill] sm:$0xff] %v11049_v34  ;;  %v11061_v52 = vpack.c.bf16 %v13806_v15, %v13805_v41  ;;  %v13808_v31 = vand.u32 4294901760, %v10485_v32  ;;  %v11074_v57 = vpack.c.bf16 %v13812_v4, %v13811_v21  ;;  %v11098_v21 = vld [vmem:[%s13140_s4 + $0x20] sm:$0xff]  ;;  %4539 = vperm.xlu0 %9184, %v10676_v0   ;;  %v11150_v0 = vld [vmem:[%s13140_s4 + $0x30] sm:$0xff] }
 0x14a   : > { %v13814_v15 = vand.u32 4294901760, %v10578_v26  ;;  %v11092_v34 = vsub.f32 %v4434_v47, %v6008_v6  ;;  %v13822_v4 = vand.u32 4294901760, %v10623_v22  ;;  %v13827_v47 = vmax.f32 %v10904_v35, 0.0  ;;  %1129 = vmatmul.mubr.f32.gmra.mrb[24].mxu0 %v1128_v13  ;;  %804 = vperm.xlu1 %9186, %v11098_v21  }
 0x14b   : > { %13797 = vst [vmem:[#allocation102_spill] sm:$0xff] %v11042_v50  ;;  %13807 = vst [vmem:[#allocation104_spill] sm:$0xff] %v11061_v52  ;;  %v11067_v50 = vpack.c.bf16 %v13809_v19, %v13808_v31  ;;  %v13816_v52 = vand.u32 4294901760, %v10617_v37  ;;  %v13817_v31 = vand.u32 4294901760, %v10603_v36  ;;  %2511 = vmatmul.mubr.f32.gmra.mrb[24].mxu1 %v1128_v13  ;;  %1134 = vmatprep.mubr.f32.mxu0 %v13681_v38 }
 0x14c   : > { %v11080_v41 = vpack.c.bf16 %v13814_v15, %v13813_v33  ;;  %13821 = vst [vmem:[#allocation109_spill] sm:$0xff] %v11092_v34  ;;  %v13823_v33 = vand.u32 4294901760, %v10688_v27  ;;  %v13825_v15 = vmax.f32 %v10772_v60, 0.0  ;;  %v11112_v53 = vand.u32 4294901760, %v13827_v47  ;;  %2516 = vmatprep.mubr.f32.mxu1 %v13681_v38 }
 0x14d   : > { %13810 = vst [vmem:[#allocation105_spill] sm:$0xff] %v11067_v50  ;;  %v11086_v19 = vpack.c.bf16 %v13817_v31, %v13816_v52  ;;  %v13819_v50 = vmax.f32 %v10857_v30, 0.0  ;;  %v13829_v31 = vmax.f32 %v10781_v17, 0.0  ;;  %v11129_v47 = vand.u32 4294901760, %v10982_v59  ;;  %4549 = vperm.xlu0 %9184, %v10715_v39  }
 0x14e   : > { %13815 = vst [vmem:[#allocation106_spill] sm:$0xff] %v11080_v41  ;;  %v11104_v52 = vpack.c.bf16 %v13823_v33, %v13822_v4  ;;  %13828 = vst [vmem:[#allocation112_spill] sm:$0xff] %v11112_v53  ;;  %v11121_v41 = vpack.c.bf16 %v10940_v23, %v10837_v28  ;;  %v11124_v4 = vpack.c.bf16 %v6008_v6, %v10841_v49  ;;  %v1139_v33 = vand.u32 4294901760, %v1138_v45 }
 0x14f   : > { %13818 = vst [vmem:[#allocation107_spill] sm:$0xff] %v11086_v19  ;;  %v11090_v25 = vand.u32 4294901760, %v13819_v50  ;;  %v11108_v50 = vand.u32 4294901760, %v13825_v15  ;;  %v11117_v19 = vand.u32 4294901760, %v13829_v31  ;;  %v1149_v15 = vsub.f32 %v10954_v51, %v10992_v2  ;;  %13833 = vst [vmem:[#allocation116_spill] sm:$0xff] %v11129_v47  ;;  %814 = vperm.xlu1 %9186, %v11150_v0  }
 0x150   : > { %13824 = vst [vmem:[#allocation110_spill] sm:$0xff] %v11104_v52  ;;  %13831 = vst [vmem:[#allocation114_spill] sm:$0xff] %v11121_v41  ;;  %v13834_v31 = vmax.f32 %v10857_v30, 0.0  ;;  %v13836_v28 = vmax.f32 %v10904_v35, 0.0  ;;  %v4885_v23 = vand.u32 4294901760, %v10902_v7  ;;  %v4897_v6 = vand.u32 4294901760, %v10974_v12  ;;  %1140 = vmatmul.mubr.f32.gmra.mrb[26].mxu0 %v1139_v33  ;;  %2522 = vmatmul.mubr.f32.gmra.mrb[26].mxu1 %v1139_v33 }
 0x151   : > { %13820 = vst [vmem:[#allocation108_spill] sm:$0xff] %v11090_v25  ;;  %13826 = vst [vmem:[#allocation111_spill] sm:$0xff] %v11108_v50  ;;  %v6267_v45 = vand.u32 4294901760, %v10936_v9  ;;  %v13838_v30 = vmax.f32 %v10772_v60, 0.0  ;;  %v1160_v60 = vsub.f32 %v10982_v59, %v11129_v47  ;;  %1145 = vmatprep.mubr.f32.mxu0 %v13681_v38  ;;  %v11178_v47 = vld [vmem:[%s13140_s4 + $0x40] sm:$0xff]  ;;  %2527 = vmatprep.mubr.f32.mxu1 %v13681_v38  ;;  %v13956_v33 = vld [vmem:[#allocation20_spill] sm:$0xff] }
 0x152   : > { %13830 = vst [vmem:[#allocation113_spill] sm:$0xff] %v11117_v19  ;;  %13832 = vst [vmem:[#allocation115_spill] sm:$0xff] %v11124_v4  ;;  %v11135_v52 = vsub.f32 %v13834_v31, %v11090_v25  ;;  %v11141_v49 = vsub.f32 %v13836_v28, %v11112_v53  ;;  %v6279_v31 = vand.u32 4294901760, %v11092_v34  ;;  %v13840_v28 = vmax.f32 %v10781_v17, 0.0  ;;  %4559 = vperm.xlu0 %9184, %v10793_v43  }
 0x153   : > { %v11155_v35 = vsub.f32 %v13838_v30, %v11108_v50  ;;  %v4886_v4 = vsub.f32 %v10902_v7, %v4885_v23  ;;  %v4898_v41 = vsub.f32 %v10974_v12, %v4897_v6  ;;  %v6268_v53 = vsub.f32 %v10936_v9, %v6267_v45  ;;  %824 = vperm.xlu1 %9186, %v11178_v47   ;;  %v13958_v9 = vld [vmem:[#allocation23_spill] sm:$0xff]  ;;  %v13959_v7 = vld [vmem:[#allocation22_spill] sm:$0xff] }
 0x154   : > { %13835 = vst [vmem:[#allocation117_spill] sm:$0xff] %v11135_v52  ;;  %13837 = vst [vmem:[#allocation118_spill] sm:$0xff] %v11141_v49  ;;  %v11162_v13 = vsub.f32 %v13840_v28, %v11117_v19  ;;  %v6280_v25 = vsub.f32 %v11092_v34, %v6279_v31  ;;  %v1150_v50 = vand.u32 4294901760, %v1149_v15  ;;  %v13845_v15 = vand.u32 4294901760, %v11135_v52  ;;  %v13960_v12 = vld [vmem:[#allocation18_spill] sm:$0xff] }
 0x155   : > { %13839 = vst [vmem:[#allocation119_spill] sm:$0xff] %v11155_v35  ;;  %v4887_v28 = vand.u32 4294901760, %v4886_v4  ;;  %v4899_v19 = vand.u32 4294901760, %v4898_v41  ;;  %v6269_v30 = vand.u32 4294901760, %v6268_v53  ;;  %v13844_v53 = vand.u32 4294901760, %v11155_v35  ;;  %v13962_v52 = vld [vmem:[#allocation62_spill] sm:$0xff] }
 0x156   : > { %13841 = vst [vmem:[#allocation120_spill] sm:$0xff] %v11162_v13  ;;  %v6281_v2 = vand.u32 4294901760, %v6280_v25  ;;  %1151 = vmatmul.mubr.f32.gmra.mrb[28].mxu0 %v1150_v50  ;;  %v13848_v17 = vand.u32 4294901760, %v11141_v49  ;;  %2533 = vmatmul.mubr.f32.gmra.mrb[28].mxu1 %v1150_v50  ;;  %v11226_v50 = vld [vmem:[%s13140_s4 + $0x60] sm:$0xff]  ;;  %v4002_v49 = vpop.permute.xlu0 %4001 }
 0x157   : > { %v11185_v41 = vpack.c.bf16 %v4899_v19, %v4887_v28  ;;  %v11200_v4 = vpack.c.bf16 %v13845_v15, %v13844_v53  ;;  %v1161_v19 = vand.u32 4294901760, %v1160_v60  ;;  %v13847_v28 = vand.u32 4294901760, %v11162_v13  ;;  %1156 = vmatprep.mubr.f32.mxu0 %v13681_v38  ;;  %v11217_v15 = vld [vmem:[%s13140_s4 + $0x50] sm:$0xff]  ;;  %2538 = vmatprep.mubr.f32.mxu1 %v13681_v38  ;;  %v13888_v60 = vld [vmem:[#allocation64_spill] sm:$0xff]  ;;  %v13961_v13 = vld [vmem:[#allocation26_spill] sm:$0xff] }
 0x158   : > { %v11192_v39 = vpack.c.bf16 %v6281_v2, %v6269_v30  ;;  %v11209_v2 = vpack.c.bf16 %v4897_v6, %v4885_v23  ;;  %v11211_v30 = vpack.c.bf16 %v6279_v31, %v6267_v45  ;;  %4569 = vperm.xlu0 %9184, %v10833_v24   ;;  %834 = vperm.xlu1 %9186, %v11217_v15   ;;  %v13852_v23 = vld [vmem:[#allocation5_spill] sm:$0xff]  ;;  %v13890_v53 = vld [vmem:[#allocation8_spill] sm:$0xff] }
 0x159   : > { %13842 = vst [vmem:[#allocation121_spill] sm:$0xff] %v11185_v41  ;;  %13846 = vst [vmem:[#allocation123_spill] sm:$0xff] %v11200_v4  ;;  %v11207_v43 = vpack.c.bf16 %v13848_v17, %v13847_v28  ;;  %v13853_v24 = vpack.c.bf16 %v13766_v56, %v13765_v40  ;;  %v13854_v6 = vpack.c.bf16 %v13768_v62, %v13767_v20  ;;  %v13857_v40 = vld [vmem:[#allocation6_spill] sm:$0xff]  ;;  %v13882_v62 = vld [vmem:[#allocation92_spill] sm:$0xff] }
 0x15a   : > { %13843 = vst [vmem:[#allocation122_spill] sm:$0xff] %v11192_v39  ;;  %13850 = vst [vmem:[#allocation125_spill] sm:$0xff] %v11209_v2  ;;  %1162 = vmatmul.mubr.f32.gmra.mrb[30].mxu0 %v1161_v19  ;;  %2544 = vmatmul.mubr.f32.gmra.mrb[30].mxu1 %v1161_v19  ;;  %v13855_v45 = vpack.c.bf16 %v13773_v10, %v13772_v18  ;;  %v13856_v31 = vpack.c.bf16 %v10395_v48, %v13774_v16  ;;  %v13881_v18 = vld [vmem:[#allocation89_spill] sm:$0xff]  ;;  %v13883_v20 = vld [vmem:[#allocation96_spill] sm:$0xff] }
 0x15b   : > { %13849 = vst [vmem:[#allocation124_spill] sm:$0xff] %v11207_v43  ;;  %13851 = vst [vmem:[#allocation126_spill] sm:$0xff] %v11211_v30  ;;  %1312 = vmatprep.mubr.f32.mxu0 %v13681_v38  ;;  %2694 = vmatprep.mubr.f32.mxu1 %v13681_v38  ;;  %v13858_v56 = vpack.c.bf16 %v10401_v11, %v10368_v61  ;;  %v13859_v10 = vpack.c.bf16 %v10409_v29, %v10373_v55  ;;  %v13862_v61 = vld [vmem:[#allocation13_spill] sm:$0xff]  ;;  %v13891_v19 = vld [vmem:[#allocation66_spill] sm:$0xff] }
 0x15c   : > { %844 = vperm.xlu1 %9186, %v11226_v50   ;;  %v13860_v48 = vpack.c.bf16 %v10506_v3, %v10414_v44  ;;  %v13861_v16 = vpack.c.bf16 %v10520_v8, %v10419_v14  ;;  %v13863_v11 = vpack.c.bf16 %v10541_v46, %v10427_v5  ;;  %v13864_v55 = vpack.c.bf16 %v10551_v1, %v10485_v32  ;;  %v13867_v14 = vld [vmem:[#allocation30_spill] sm:$0xff]  ;;  %v13870_v3 = vld [vmem:[#allocation48_spill] sm:$0xff]  ;;  %v13871_v8 = vld [vmem:[#allocation49_spill] sm:$0xff] }
 0x15d   : > { %v13865_v29 = vpack.c.bf16 %v10556_v63, %v10573_v42  ;;  %v13866_v44 = vpack.c.bf16 %v10578_v26, %v10598_v54  ;;  %v13868_v5 = vpack.c.bf16 %v10603_v36, %v10617_v37  ;;  %v13869_v32 = vpack.c.bf16 %v10688_v27, %v10623_v22  ;;  %v780_v46 = vld [vmem:[%s13140_s4 + $0x70] sm:$0xff]  ;;  %v13872_v1 = vld [vmem:[#allocation41_spill] sm:$0xff]  ;;  %v13873_v27 = vld [vmem:[#allocation42_spill] sm:$0xff] }
 0x15e   : > { %1314 = vmatmul.mubr.f32.vlgmr.msra.gmra.mrb[0].mxu0 %v13852_v23  ;;  %2696 = vmatmul.mubr.f32.vlgmr.msra.gmra.mrb[0].mxu1 %v13852_v23  ;;  %v13874_v63 = vld [vmem:[#allocation63_spill] sm:$0xff]  ;;  %v13876_v42 = vld [vmem:[#allocation44_spill] sm:$0xff]  ;;  %v13878_v54 = vld [vmem:[#allocation33_spill] sm:$0xff] }
 0x15f   : > { %7980 = vmatpush1.bf16.msra.mxu0 %v13853_v24  ;;  %8076 = vmatpush1.bf16.msra.mxu1 %v13854_v6  ;;  %v13875_v22 = vld [vmem:[#allocation43_spill] sm:$0xff]  ;;  %v13877_v26 = vld [vmem:[#allocation52_spill] sm:$0xff]  ;;  %v13879_v36 = vld [vmem:[#allocation86_spill] sm:$0xff] }
 0x160   : > { %7982 = vmatprep.subr.bf16.mxu0 %v13855_v45  ;;  %8078 = vmatprep.subr.bf16.mxu1 %v13856_v31  ;;  %v13880_v37 = vld [vmem:[#allocation88_spill] sm:$0xff]  ;;  %v13889_v17 = vld [vmem:[#allocation65_spill] sm:$0xff]  ;;  %v13892_v28 = vld [vmem:[#allocation67_spill] sm:$0xff] }
 0x161   : > { %1319 = vmatprep.mubr.f32.mxu0 %v13681_v38  ;;  %2701 = vmatprep.mubr.f32.mxu1 %v13681_v38  ;;  %v13895_v24 = vld [vmem:[#allocation16_spill] sm:$0xff]  ;;  %v13896_v6 = vld [vmem:[#allocation75_spill] sm:$0xff]  ;;  %v13898_v31 = vld [vmem:[#allocation78_spill] sm:$0xff] }
 0x162   : > { %1321 = vmatmul.mubr.f32.gmra.mrb[2].mxu0 %v13857_v40  ;;  %2703 = vmatmul.mubr.f32.gmra.mrb[2].mxu1 %v13857_v40  ;;  %v13897_v45 = vld [vmem:[#allocation76_spill] sm:$0xff]  ;;  %v13957_v4 = vld [vmem:[#allocation70_spill] sm:$0xff] }
 0x163   : > { %7984 = vmatpush1.bf16.msra.mxu0 %v13858_v56  ;;  %8080 = vmatpush1.bf16.msra.mxu1 %v13859_v10  ;;  %v13899_v56 = vld [vmem:[#allocation79_spill] sm:$0xff]  ;;  %v4292_v34 = vmul.f32 %v13958_v9, %v13957_v4  ;;  %v4294_v35 = vmul.f32 %v13961_v13, %v13957_v4 }
 0x164   : > { %7986 = vmatprep.subr.bf16.mxu0 %v13860_v48  ;;  %8082 = vmatprep.subr.bf16.mxu1 %v13861_v16  ;;  %v13900_v10 = vld [vmem:[#allocation31_spill] sm:$0xff]  ;;  %v13901_v48 = vld [vmem:[#allocation38_spill] sm:$0xff] }
 0x165   : > { %1326 = vmatprep.mubr.f32.mxu0 %v13681_v38  ;;  %2708 = vmatprep.mubr.f32.mxu1 %v13681_v38  ;;  %v13902_v16 = vand.u32 4294901760, %v13901_v48  ;;  %v13913_v48 = vld [vmem:[#allocation47_spill] sm:$0xff] }
 0x166   : > { %1328 = vmatmul.mubr.f32.gmra.mrb[4].mxu0 %v13862_v61  ;;  %2710 = vmatmul.mubr.f32.gmra.mrb[4].mxu1 %v13862_v61 }
 0x167   : > { %7988 = vmatpush1.bf16.msra.mxu0 %v13863_v11  ;;  %8084 = vmatpush1.bf16.msra.mxu1 %v13864_v55  ;;  %v13903_v11 = vld [vmem:[#allocation39_spill] sm:$0xff] }
 0x168   : > { %7990 = vmatprep.subr.bf16.mxu0 %v13865_v29  ;;  %8086 = vmatprep.subr.bf16.mxu1 %v13866_v44  ;;  %v13904_v55 = vand.u32 4294901760, %v13903_v11  ;;  %v13905_v44 = vld [vmem:[#allocation82_spill] sm:$0xff]  ;;  %v13915_v11 = vld [vmem:[#allocation32_spill] sm:$0xff] }
 0x169   : > { %1333 = vmatprep.mubr.f32.mxu0 %v13681_v38  ;;  %2715 = vmatprep.mubr.f32.mxu1 %v13681_v38 }
 0x16a   : > { %1335 = vmatmul.mubr.f32.gmra.mrb[6].mxu0 %v13867_v14  ;;  %2717 = vmatmul.mubr.f32.gmra.mrb[6].mxu1 %v13867_v14  ;;  %v8009_v29 = vpack.c.bf16 %v13904_v55, %v13902_v16  ;;  %v13914_v16 = vld [vmem:[#allocation69_spill] sm:$0xff]  ;;  %v13971_v14 = vld [vmem:[#allocation116_spill] sm:$0xff] }
 0x16b   : > { %7992 = vmatpush1.bf16.msra.mxu0 %v13868_v5  ;;  %8088 = vmatpush1.bf16.msra.mxu1 %v13869_v32  ;;  %v13906_v5 = vld [vmem:[#allocation40_spill] sm:$0xff]  ;;  %v13916_v55 = vld [vmem:[#allocation85_spill] sm:$0xff] }
 0x16c   : > { %7994 = vmatprep.subr.bf16.mxu0 %v13870_v3  ;;  %8090 = vmatprep.subr.bf16.mxu1 %v13871_v8  ;;  %v13907_v32 = vand.u32 4294901760, %v13906_v5  ;;  %v13918_v5 = vld [vmem:[#allocation91_spill] sm:$0xff] }
 0x16d   : > { %1340 = vmatprep.mubr.f32.mxu0 %v13681_v38  ;;  %2722 = vmatprep.mubr.f32.mxu1 %v13681_v38 }
 0x16e   : > { %1342 = vmatmul.mubr.f32.gmra.mrb[8].mxu0 %v13872_v1  ;;  %2724 = vmatmul.mubr.f32.gmra.mrb[8].mxu1 %v13872_v1  ;;  %v13968_v1 = vld [vmem:[#allocation84_spill] sm:$0xff] }
 0x16f   : > { %1347 = vmatprep.mubr.f32.mxu0 %v13681_v38  ;;  %2729 = vmatprep.mubr.f32.mxu1 %v13681_v38 }
 0x170   : > { %854 = vperm.xlu1 %9186, %v780_v46  }
 0x172   : > { %1349 = vmatmul.mubr.f32.gmra.mrb[10].mxu0 %v13873_v27  ;;  %2731 = vmatmul.mubr.f32.gmra.mrb[10].mxu1 %v13873_v27 }
 0x173   : > { %1354 = vmatprep.mubr.f32.mxu0 %v13681_v38  ;;  %2736 = vmatprep.mubr.f32.mxu1 %v13681_v38 }
 0x174   : > { %4494 = vperm.xlu1 %9186, %v13874_v63  }
 0x176   : > { %1356 = vmatmul.mubr.f32.gmra.mrb[12].mxu0 %v13875_v22  ;;  %2738 = vmatmul.mubr.f32.gmra.mrb[12].mxu1 %v13875_v22 }
 0x177   : > { %1361 = vmatprep.mubr.f32.mxu0 %v13681_v38  ;;  %2743 = vmatprep.mubr.f32.mxu1 %v13681_v38 }
 0x178   : > { %4504 = vperm.xlu1 %9186, %v11005_v58   ;;  %v13884_v58 = vld [vmem:[#allocation61_spill] sm:$0xff] }
 0x17a   : > { %1363 = vmatmul.mubr.f32.gmra.mrb[14].mxu0 %v13876_v42  ;;  %2745 = vmatmul.mubr.f32.gmra.mrb[14].mxu1 %v13876_v42 }
 0x17b   : > { %1368 = vmatprep.mubr.f32.mxu0 %v13681_v38  ;;  %2750 = vmatprep.mubr.f32.mxu1 %v13681_v38 }
 0x17c   : > { %4514 = vperm.xlu1 %9186, %v11098_v21   ;;  %v13885_v21 = vld [vmem:[#allocation7_spill] sm:$0xff] }
 0x17e   : > { %1370 = vmatmul.mubr.f32.gmra.mrb[16].mxu0 %v13877_v26  ;;  %2752 = vmatmul.mubr.f32.gmra.mrb[16].mxu1 %v13877_v26 }
 0x17f   : > { %1375 = vmatprep.mubr.f32.mxu0 %v13681_v38  ;;  %2757 = vmatprep.mubr.f32.mxu1 %v13681_v38 }
 0x180   : > { %4524 = vperm.xlu1 %9186, %v11150_v0   ;;  %v13887_v0 = vld [vmem:[#allocation58_spill] sm:$0xff] }
 0x182   : > { %1377 = vmatmul.mubr.f32.gmra.mrb[18].mxu0 %v13878_v54  ;;  %2759 = vmatmul.mubr.f32.gmra.mrb[18].mxu1 %v13878_v54 }
 0x183   : > { %1382 = vmatprep.mubr.f32.mxu0 %v13681_v38  ;;  %2764 = vmatprep.mubr.f32.mxu1 %v13681_v38 }
 0x184   : > { %4534 = vperm.xlu1 %9186, %v11178_v47   ;;  %v13886_v47 = vld [vmem:[#allocation57_spill] sm:$0xff] }
 0x186   : > { %1384 = vmatmul.mubr.f32.gmra.mrb[20].mxu0 %v13879_v36  ;;  %2766 = vmatmul.mubr.f32.gmra.mrb[20].mxu1 %v13879_v36 }
 0x187   : > { %1389 = vmatprep.mubr.f32.mxu0 %v13681_v38  ;;  %2771 = vmatprep.mubr.f32.mxu1 %v13681_v38 }
 0x188   : > { %4544 = vperm.xlu1 %9186, %v11217_v15   ;;  %v13893_v15 = vld [vmem:[#allocation72_spill] sm:$0xff] }
 0x18a   : > { %1391 = vmatmul.mubr.f32.gmra.mrb[22].mxu0 %v13880_v37  ;;  %2773 = vmatmul.mubr.f32.gmra.mrb[22].mxu1 %v13880_v37 }
 0x18b   : > { %1396 = vmatprep.mubr.f32.mxu0 %v13681_v38  ;;  %2778 = vmatprep.mubr.f32.mxu1 %v13681_v38 }
 0x18c   : > { %4554 = vperm.xlu1 %9186, %v11226_v50   ;;  %v13894_v50 = vld [vmem:[#allocation73_spill] sm:$0xff] }
 0x18e   : > { %1398 = vmatmul.mubr.f32.gmra.mrb[24].mxu0 %v13881_v18  ;;  %2780 = vmatmul.mubr.f32.gmra.mrb[24].mxu1 %v13881_v18  ;;  %v13965_v18 = vld [vmem:[#allocation77_spill] sm:$0xff] }
 0x18f   : > { %1403 = vmatprep.mubr.f32.mxu0 %v13681_v38  ;;  %2785 = vmatprep.mubr.f32.mxu1 %v13681_v38 }
 0x190   : > { %4564 = vperm.xlu1 %9186, %v780_v46   ;;  %v13908_v46 = vld [vmem:[#allocation59_spill] sm:$0xff] }
 0x191   : > { %v13909_v63 = vand.u32 4294901760, %v13908_v46  ;;  %v13920_v46 = vld [vmem:[#allocation98_spill] sm:$0xff] }
 0x192   : > { %1405 = vmatmul.mubr.f32.gmra.mrb[26].mxu0 %v13882_v62  ;;  %2787 = vmatmul.mubr.f32.gmra.mrb[26].mxu1 %v13882_v62 }
 0x193   : > { %1410 = vmatprep.mubr.f32.mxu0 %v13681_v38  ;;  %2792 = vmatprep.mubr.f32.mxu1 %v13681_v38 }
 0x196   : > { %1412 = vmatmul.mubr.f32.gmra.mrb[28].mxu0 %v13883_v20  ;;  %2794 = vmatmul.mubr.f32.gmra.mrb[28].mxu1 %v13883_v20  ;;  %v13964_v20 = vld [vmem:[#allocation10_spill] sm:$0xff] }
 0x197   : > { %1417 = vmatprep.mubr.f32.mxu0 %v13681_v38  ;;  %2799 = vmatprep.mubr.f32.mxu1 %v13681_v38  ;;  %v4065_v62 = vmul.f32 %v13956_v33, %v13964_v20 }
 0x19a   : > { %1419 = vmatmul.mubr.f32.gmra.mrb[30].mxu0 %v13884_v58  ;;  %2801 = vmatmul.mubr.f32.gmra.mrb[30].mxu1 %v13884_v58 }
 0x19b   : > { %1521 = vmatprep.mubr.f32.mxu0 %v13681_v38  ;;  %2903 = vmatprep.mubr.f32.mxu1 %v13681_v38 }
 0x19e   : > { %1524 = vmatmul.mubr.f32.vlgmr.msra.gmra.mrb[0].mxu0 %v13885_v21  ;;  %2906 = vmatmul.mubr.f32.vlgmr.msra.gmra.mrb[0].mxu1 %v13885_v21  ;;  %v8105_v21 = vpack.c.bf16 %v13909_v63, %v13907_v32  ;;  %v13919_v32 = vld [vmem:[#allocation94_spill] sm:$0xff]  ;;  %v13921_v63 = vld [vmem:[#allocation11_spill] sm:$0xff] }
 0x19f   : > { %7996 = vmatpush1.bf16.msra.mxu0 %v13886_v47  ;;  %8092 = vmatpush1.bf16.msra.mxu1 %v13887_v0 }
 0x1a0   : > { %7998 = vmatprep.subr.bf16.mxu0 %v13888_v60  ;;  %8094 = vmatprep.subr.bf16.mxu1 %v13889_v17 }
 0x1a1   : > { %1529 = vmatprep.mubr.f32.mxu0 %v13681_v38  ;;  %2911 = vmatprep.mubr.f32.mxu1 %v13681_v38 }
 0x1a2   : > { %1532 = vmatmul.mubr.f32.gmra.mrb[2].mxu0 %v13890_v53  ;;  %2914 = vmatmul.mubr.f32.gmra.mrb[2].mxu1 %v13890_v53  ;;  %v13910_v53 = vld [vmem:[#allocation83_spill] sm:$0xff] }
 0x1a3   : > { %8000 = vmatpush1.bf16.msra.mxu0 %v13891_v19  ;;  %8096 = vmatpush1.bf16.msra.mxu1 %v13892_v28 }
 0x1a4   : > { %8002 = vmatprep.subr.bf16.mxu0 %v13893_v15  ;;  %8098 = vmatprep.subr.bf16.mxu1 %v13894_v50 }
 0x1a5   : > { %1537 = vmatprep.mubr.f32.mxu0 %v13681_v38  ;;  %2919 = vmatprep.mubr.f32.mxu1 %v13681_v38 }
 0x1a6   : > { %1540 = vmatmul.mubr.f32.gmra.mrb[4].mxu0 %v13895_v24  ;;  %2922 = vmatmul.mubr.f32.gmra.mrb[4].mxu1 %v13895_v24  ;;  %v13911_v24 = vld [vmem:[#allocation45_spill] sm:$0xff] }
 0x1a7   : > { %8004 = vmatpush1.bf16.msra.mxu0 %v13896_v6  ;;  %8100 = vmatpush1.bf16.msra.mxu1 %v13897_v45 }
 0x1a8   : > { %8006 = vmatprep.subr.bf16.mxu0 %v13898_v31  ;;  %8102 = vmatprep.subr.bf16.mxu1 %v13899_v56  ;;  %v13973_v56 = vld [vmem:[#allocation108_spill] sm:$0xff] }
 0x1a9   : > { %1545 = vmatprep.mubr.f32.mxu0 %v13681_v38  ;;  %2927 = vmatprep.mubr.f32.mxu1 %v13681_v38 }
 0x1aa   : > { %1548 = vmatmul.mubr.f32.gmra.mrb[6].mxu0 %v13900_v10  ;;  %2930 = vmatmul.mubr.f32.gmra.mrb[6].mxu1 %v13900_v10  ;;  %v13912_v10 = vld [vmem:[#allocation46_spill] sm:$0xff] }
 0x1ab   : > { %8008 = vmatpush1.bf16.msra.mxu0 %v13905_v44  ;;  %8104 = vmatpush1.bf16.msra.mxu1 %v13910_v53  ;;  %v11571_v44 = vmul.f32 %v13960_v12, %v13965_v18 }
 0x1ac   : > { %8010 = vmatprep.subr.bf16.mxu0 %v8009_v29  ;;  %8106 = vmatprep.subr.bf16.mxu1 %v8105_v21  ;;  %v13917_v29 = vld [vmem:[#allocation81_spill] sm:$0xff]  ;;  %v13922_v21 = vld [vmem:[#allocation74_spill] sm:$0xff] }
 0x1ad   : > { %1553 = vmatprep.mubr.f32.mxu0 %v13681_v38  ;;  %2935 = vmatprep.mubr.f32.mxu1 %v13681_v38 }
 0x1ae   : > { %1556 = vmatmul.mubr.f32.gmra.mrb[8].mxu0 %v13911_v24  ;;  %2938 = vmatmul.mubr.f32.gmra.mrb[8].mxu1 %v13911_v24  ;;  %v13923_v24 = vld [vmem:[#allocation9_spill] sm:$0xff] }
 0x1af   : > { %1561 = vmatprep.mubr.f32.mxu0 %v13681_v38  ;;  %2943 = vmatprep.mubr.f32.mxu1 %v13681_v38 }
 0x1b2   : > { %1564 = vmatmul.mubr.f32.gmra.mrb[10].mxu0 %v13912_v10  ;;  %2946 = vmatmul.mubr.f32.gmra.mrb[10].mxu1 %v13912_v10  ;;  %v13925_v10 = vld [vmem:[#allocation100_spill] sm:$0xff] }
 0x1b3   : > { %1569 = vmatprep.mubr.f32.mxu0 %v13681_v38  ;;  %2951 = vmatprep.mubr.f32.mxu1 %v13681_v38 }
 0x1b6   : > { %1572 = vmatmul.mubr.f32.gmra.mrb[12].mxu0 %v13913_v48  ;;  %2954 = vmatmul.mubr.f32.gmra.mrb[12].mxu1 %v13913_v48  ;;  %v13927_v48 = vld [vmem:[#allocation101_spill] sm:$0xff] }
 0x1b7   : > { %1577 = vmatprep.mubr.f32.mxu0 %v13681_v38  ;;  %2959 = vmatprep.mubr.f32.mxu1 %v13681_v38 }
 0x1ba   : > { %1580 = vmatmul.mubr.f32.gmra.mrb[14].mxu0 %v13914_v16  ;;  %2962 = vmatmul.mubr.f32.gmra.mrb[14].mxu1 %v13914_v16  ;;  %v13928_v16 = vld [vmem:[#allocation102_spill] sm:$0xff] }
 0x1bb   : > { %1585 = vmatprep.mubr.f32.mxu0 %v13681_v38  ;;  %2967 = vmatprep.mubr.f32.mxu1 %v13681_v38 }
 0x1be   : > { %1588 = vmatmul.mubr.f32.gmra.mrb[16].mxu0 %v13915_v11  ;;  %2970 = vmatmul.mubr.f32.gmra.mrb[16].mxu1 %v13915_v11  ;;  %v13929_v11 = vld [vmem:[#allocation24_spill] sm:$0xff] }
 0x1bf   : > { %1593 = vmatprep.mubr.f32.mxu0 %v13681_v38  ;;  %2975 = vmatprep.mubr.f32.mxu1 %v13681_v38 }
 0x1c2   : > { %1596 = vmatmul.mubr.f32.gmra.mrb[18].mxu0 %v13916_v55  ;;  %2978 = vmatmul.mubr.f32.gmra.mrb[18].mxu1 %v13916_v55  ;;  %v13930_v55 = vld [vmem:[#allocation103_spill] sm:$0xff] }
 0x1c3   : > { %1601 = vmatprep.mubr.f32.mxu0 %v13681_v38  ;;  %2983 = vmatprep.mubr.f32.mxu1 %v13681_v38 }
 0x1c6   : > { %1604 = vmatmul.mubr.f32.gmra.mrb[20].mxu0 %v13917_v29  ;;  %2986 = vmatmul.mubr.f32.gmra.mrb[20].mxu1 %v13917_v29  ;;  %v13931_v29 = vld [vmem:[#allocation29_spill] sm:$0xff] }
 0x1c7   : > { %1609 = vmatprep.mubr.f32.mxu0 %v13681_v38  ;;  %2991 = vmatprep.mubr.f32.mxu1 %v13681_v38 }
 0x1ca   : > { %1612 = vmatmul.mubr.f32.gmra.mrb[22].mxu0 %v13918_v5  ;;  %2994 = vmatmul.mubr.f32.gmra.mrb[22].mxu1 %v13918_v5  ;;  %v13932_v5 = vld [vmem:[#allocation104_spill] sm:$0xff] }
 0x1cb   : > { %1617 = vmatprep.mubr.f32.mxu0 %v13681_v38  ;;  %2999 = vmatprep.mubr.f32.mxu1 %v13681_v38 }
 0x1ce   : > { %1620 = vmatmul.mubr.f32.gmra.mrb[24].mxu0 %v13919_v32  ;;  %3002 = vmatmul.mubr.f32.gmra.mrb[24].mxu1 %v13919_v32  ;;  %v13933_v32 = vld [vmem:[#allocation105_spill] sm:$0xff] }
 0x1cf   : > { %1625 = vmatprep.mubr.f32.mxu0 %v13681_v38  ;;  %3007 = vmatprep.mubr.f32.mxu1 %v13681_v38 }
 0x1d2   : > { %1628 = vmatmul.mubr.f32.gmra.mrb[26].mxu0 %v13920_v46  ;;  %3010 = vmatmul.mubr.f32.gmra.mrb[26].mxu1 %v13920_v46  ;;  %v13934_v46 = vld [vmem:[#allocation106_spill] sm:$0xff] }
 0x1d3   : > { %1633 = vmatprep.mubr.f32.mxu0 %v13681_v38  ;;  %3015 = vmatprep.mubr.f32.mxu1 %v13681_v38 }
 0x1d6   : > { %1636 = vmatmul.mubr.f32.gmra.mrb[28].mxu0 %v10954_v51  ;;  %3018 = vmatmul.mubr.f32.gmra.mrb[28].mxu1 %v10954_v51  ;;  %v13924_v51 = vld [vmem:[#allocation99_spill] sm:$0xff] }
 0x1d7   : > { %1641 = vmatprep.mubr.f32.mxu0 %v13681_v38  ;;  %3023 = vmatprep.mubr.f32.mxu1 %v13681_v38 }
 0x1da   : > { %1644 = vmatmul.mubr.f32.gmra.mrb[30].mxu0 %v10982_v59  ;;  %3026 = vmatmul.mubr.f32.gmra.mrb[30].mxu1 %v10982_v59  ;;  %v13926_v59 = vld [vmem:[#allocation12_spill] sm:$0xff] }
 0x1db   : > { %1730 = vmatprep.mubr.f32.mxu0 %v13681_v38  ;;  %3112 = vmatprep.mubr.f32.mxu1 %v13681_v38 }
 0x1de   : > { %1734 = vmatmul.mubr.f32.vlgmr.msra.gmra.mrb[0].mxu0 %v13921_v63  ;;  %3116 = vmatmul.mubr.f32.vlgmr.msra.gmra.mrb[0].mxu1 %v13921_v63  ;;  %v13935_v63 = vld [vmem:[#allocation37_spill] sm:$0xff] }
 0x1df   : > { %8012 = vmatpush1.bf16.msra.mxu0 %v13922_v21  ;;  %8108 = vmatpush1.bf16.msra.mxu1 %v13923_v24  ;;  %v13936_v21 = vld [vmem:[#allocation107_spill] sm:$0xff]  ;;  %v13937_v24 = vld [vmem:[#allocation110_spill] sm:$0xff] }
 0x1e0   : > { %8014 = vmatprep.subr.bf16.mxu0 %v13924_v51  ;;  %8110 = vmatprep.subr.bf16.mxu1 %v13925_v10  ;;  %v13939_v51 = vld [vmem:[#allocation55_spill] sm:$0xff]  ;;  %v11482_v10 = vpop.permute.xlu1 %3996 }
 0x1e1   : > { %1739 = vmatprep.mubr.f32.mxu0 %v13681_v38  ;;  %3121 = vmatprep.mubr.f32.mxu1 %v13681_v38 }
 0x1e2   : > { %1743 = vmatmul.mubr.f32.gmra.mrb[2].mxu0 %v13926_v59  ;;  %3125 = vmatmul.mubr.f32.gmra.mrb[2].mxu1 %v13926_v59  ;;  %v13942_v59 = vld [vmem:[#allocation35_spill] sm:$0xff] }
 0x1e3   : > { %8016 = vmatpush1.bf16.msra.mxu0 %v13927_v48  ;;  %8112 = vmatpush1.bf16.msra.mxu1 %v13928_v16  ;;  %v13943_v48 = vld [vmem:[#allocation87_spill] sm:$0xff] }
 0x1e4   : > { %8018 = vmatprep.subr.bf16.mxu0 %v13929_v11  ;;  %8114 = vmatprep.subr.bf16.mxu1 %v13930_v55  ;;  %v11489_v16 = vpop.permute.xlu1 %4101  ;;  %v13944_v11 = vld [vmem:[#allocation90_spill] sm:$0xff] }
 0x1e5   : > { %1748 = vmatprep.mubr.f32.mxu0 %v13681_v38  ;;  %3130 = vmatprep.mubr.f32.mxu1 %v13681_v38 }
 0x1e6   : > { %1752 = vmatmul.mubr.f32.gmra.mrb[4].mxu0 %v13931_v29  ;;  %3134 = vmatmul.mubr.f32.gmra.mrb[4].mxu1 %v13931_v29  ;;  %v13945_v29 = vld [vmem:[#allocation95_spill] sm:$0xff] }
 0x1e7   : > { %8020 = vmatpush1.bf16.msra.mxu0 %v13932_v5  ;;  %8116 = vmatpush1.bf16.msra.mxu1 %v13933_v32  ;;  %v13946_v5 = vld [vmem:[#allocation36_spill] sm:$0xff]  ;;  %v13947_v32 = vld [vmem:[#allocation19_spill] sm:$0xff] }
 0x1e8   : > { %8022 = vmatprep.subr.bf16.mxu0 %v11074_v57  ;;  %8118 = vmatprep.subr.bf16.mxu1 %v13934_v46  ;;  %v13938_v57 = vld [vmem:[#allocation54_spill] sm:$0xff]  ;;  %v11498_v55 = vpop.permute.xlu1 %4233  ;;  %v4060_v46 = vmul.f32 %v13947_v32, %v13946_v5  ;;  %v4061_v30 = vmul.f32 %v13956_v33, %v13946_v5 }
 0x1e9   : > { %1757 = vmatprep.mubr.f32.mxu0 %v13681_v38  ;;  %3139 = vmatprep.mubr.f32.mxu1 %v13681_v38 }
 0x1ea   : > { %1761 = vmatmul.mubr.f32.gmra.mrb[6].mxu0 %v13935_v63  ;;  %3143 = vmatmul.mubr.f32.gmra.mrb[6].mxu1 %v13935_v63  ;;  %v13948_v63 = vld [vmem:[#allocation28_spill] sm:$0xff] }
 0x1eb   : > { %8024 = vmatpush1.bf16.msra.mxu0 %v13936_v21  ;;  %8120 = vmatpush1.bf16.msra.mxu1 %v13937_v24  ;;  %v13949_v21 = vld [vmem:[#allocation14_spill] sm:$0xff]  ;;  %v4163_v39 = vmul.f32 %v13960_v12, %v13948_v63 }
 0x1ec   : > { %8026 = vmatprep.subr.bf16.mxu0 %v13870_v3  ;;  %8122 = vmatprep.subr.bf16.mxu1 %v13871_v8  ;;  %v13940_v3 = vld [vmem:[#allocation56_spill] sm:$0xff]  ;;  %v13941_v8 = vld [vmem:[#allocation34_spill] sm:$0xff]  ;;  %v4160_v24 = vmul.f32 %v13949_v21, %v13948_v63 }
 0x1ed   : > { %1766 = vmatprep.mubr.f32.mxu0 %v13681_v38  ;;  %3148 = vmatprep.mubr.f32.mxu1 %v13681_v38 }
 0x1ee   : > { %1770 = vmatmul.mubr.f32.gmra.mrb[8].mxu0 %v13938_v57  ;;  %3152 = vmatmul.mubr.f32.gmra.mrb[8].mxu1 %v13938_v57  ;;  %v13950_v57 = vld [vmem:[#allocation21_spill] sm:$0xff]  ;;  %v4192_v43 = vadd.f32 %v4160_v24, %v4060_v46  ;;  %v13963_v46 = vld [vmem:[#allocation71_spill] sm:$0xff] }
 0x1ef   : > { %1775 = vmatprep.mubr.f32.mxu0 %v13681_v38  ;;  %3157 = vmatprep.mubr.f32.mxu1 %v13681_v38  ;;  %v4172_v24 = vmul.f32 %v13949_v21, %v13963_v46 }
 0x1f0   : > { %v4324_v54 = vadd.f32 %v4292_v34, %v4192_v43  ;;  %v4369_v43 = vpop.permute.xlu0 %4368 }
 0x1f2   : > { %1779 = vmatmul.mubr.f32.gmra.mrb[10].mxu0 %v13939_v51  ;;  %3161 = vmatmul.mubr.f32.gmra.mrb[10].mxu1 %v13939_v51  ;;  %v4062_v51 = vmul.f32 %v13950_v57, %v13946_v5 }
 0x1f3   : > { %1784 = vmatprep.mubr.f32.mxu0 %v13681_v38  ;;  %3166 = vmatprep.mubr.f32.mxu1 %v13681_v38 }
 0x1f6   : > { %1788 = vmatmul.mubr.f32.gmra.mrb[12].mxu0 %v13940_v3  ;;  %3170 = vmatmul.mubr.f32.gmra.mrb[12].mxu1 %v13940_v3  ;;  %v13951_v3 = vld [vmem:[#allocation17_spill] sm:$0xff] }
 0x1f7   : > { %1793 = vmatprep.mubr.f32.mxu0 %v13681_v38  ;;  %3175 = vmatprep.mubr.f32.mxu1 %v13681_v38  ;;  %v11567_v53 = vmul.f32 %v13951_v3, %v13965_v18 }
 0x1fa   : > { %1797 = vmatmul.mubr.f32.gmra.mrb[14].mxu0 %v13941_v8  ;;  %3179 = vmatmul.mubr.f32.gmra.mrb[14].mxu1 %v13941_v8  ;;  %v4162_v8 = vmul.f32 %v13951_v3, %v13948_v63 }
 0x1fb   : > { %1802 = vmatprep.mubr.f32.mxu0 %v13681_v38  ;;  %3184 = vmatprep.mubr.f32.mxu1 %v13681_v38 }
 0x1fc   : > { %v4194_v41 = vadd.f32 %v4162_v8, %v4062_v51  ;;  %v4175_v51 = vmul.f32 %v13960_v12, %v13963_v46  ;;  %v4067_v8 = vmul.f32 %v13959_v7, %v13964_v20  ;;  %v13967_v20 = vld [vmem:[#allocation27_spill] sm:$0xff] }
 0x1fd   : > { %v4295_v22 = vmul.f32 %v13967_v20, %v13957_v4 }
 0x1fe   : > { %1806 = vmatmul.mubr.f32.gmra.mrb[16].mxu0 %v13942_v59  ;;  %3188 = vmatmul.mubr.f32.gmra.mrb[16].mxu1 %v13942_v59  ;;  %v13952_v59 = vld [vmem:[#allocation97_spill] sm:$0xff]  ;;  %v4326_v27 = vadd.f32 %v4294_v35, %v4194_v41  ;;  %v4073_v41 = vmul.f32 %v13956_v33, %v4002_v49 }
 0x1ff   : > { %1811 = vmatprep.mubr.f32.mxu0 %v13681_v38  ;;  %3193 = vmatprep.mubr.f32.mxu1 %v13681_v38 }
 0x202   : > { %1815 = vmatmul.mubr.f32.gmra.mrb[18].mxu0 %v13943_v48  ;;  %3197 = vmatmul.mubr.f32.gmra.mrb[18].mxu1 %v13943_v48  ;;  %v11513_v48 = vpop.permute.xlu1 %4237 }
 0x203   : > { %1820 = vmatprep.mubr.f32.mxu0 %v13681_v38  ;;  %3202 = vmatprep.mubr.f32.mxu1 %v13681_v38  ;;  %13953 = vst [vmem:[#allocation6_spill] sm:$0xff] %v11513_v48 }
 0x206   : > { %1824 = vmatmul.mubr.f32.gmra.mrb[20].mxu0 %v13944_v11  ;;  %3206 = vmatmul.mubr.f32.gmra.mrb[20].mxu1 %v13944_v11  ;;  %v13954_v11 = vld [vmem:[#allocation68_spill] sm:$0xff] }
 0x207   : > { %1829 = vmatprep.mubr.f32.mxu0 %v13681_v38  ;;  %3211 = vmatprep.mubr.f32.mxu1 %v13681_v38  ;;  %v4167_v58 = vmul.f32 %v13960_v12, %v13954_v11 }
 0x209   : > { %v11577_v34 = vadd.f32 %v4167_v58, %v4067_v8  ;;  %v11594_v8 = vadd.f32 %v4369_v43, %v4326_v27 }
 0x20a   : > { %1833 = vmatmul.mubr.f32.gmra.mrb[22].mxu0 %v13945_v29  ;;  %3215 = vmatmul.mubr.f32.gmra.mrb[22].mxu1 %v13945_v29  ;;  %v13955_v29 = vld [vmem:[#allocation15_spill] sm:$0xff] }
 0x20b   : > { %1838 = vmatprep.mubr.f32.mxu0 %v13681_v38  ;;  %3220 = vmatprep.mubr.f32.mxu1 %v13681_v38  ;;  %v4165_v25 = vmul.f32 %v13955_v29, %v13954_v11  ;;  %v4161_v2 = vmul.f32 %v13955_v29, %v13948_v63  ;;  %v4174_v63 = vmul.f32 %v13951_v3, %v13963_v46  ;;  %v11550_v11 = vpop.permute.xlu1 %4373 }
 0x20c   : > { %v11558_v37 = vmul.f32 %v13955_v29, %v13965_v18  ;;  %13969 = vst [vmem:[#allocation13_spill] sm:$0xff] %v11577_v34 }
 0x20d   : > { %v4193_v36 = vadd.f32 %v4161_v2, %v4061_v30  ;;  %v11573_v2 = vadd.f32 %v4165_v25, %v4065_v62  ;;  %v4075_v62 = vmul.f32 %v13959_v7, %v4002_v49 }
 0x20e   : > { %1842 = vmatmul.mubr.f32.gmra.mrb[24].mxu0 %v13952_v59  ;;  %3224 = vmatmul.mubr.f32.gmra.mrb[24].mxu1 %v13952_v59  ;;  %v4063_v59 = vmul.f32 %v13959_v7, %v13946_v5  ;;  %v4173_v5 = vmul.f32 %v13955_v29, %v13963_v46  ;;  %v13966_v46 = vld [vmem:[#allocation25_spill] sm:$0xff] }
 0x20f   : > { %1847 = vmatprep.mubr.f32.mxu0 %v13681_v38  ;;  %3229 = vmatprep.mubr.f32.mxu1 %v13681_v38  ;;  %v4293_v42 = vmul.f32 %v13966_v46, %v13957_v4  ;;  %v4072_v4 = vmul.f32 %v13947_v32, %v4002_v49  ;;  %v11597_v34 = vpop.permute.xlu1 %4006 }
 0x210   : > { %v4195_v26 = vadd.f32 %v4163_v39, %v4063_v59  ;;  %v13970_v39 = vld [vmem:[#allocation80_spill] sm:$0xff] }
 0x211   : > { %v4296_v35 = vmul.f32 %v13958_v9, %v13970_v39  ;;  %v11586_v25 = vmul.f32 %v13966_v46, %v13970_v39  ;;  %v4298_v30 = vmul.f32 %v13961_v13, %v13970_v39  ;;  %v4325_v58 = vadd.f32 %v4293_v42, %v4193_v36 }
 0x212   : > { %1851 = vmatmul.mubr.f32.gmra.mrb[26].mxu0 %v13962_v52  ;;  %3233 = vmatmul.mubr.f32.gmra.mrb[26].mxu1 %v13962_v52  ;;  %v11554_v52 = vmul.f32 %v13949_v21, %v13965_v18  ;;  %v11591_v18 = vadd.f32 %v4369_v43, %v4324_v54  ;;  %v4327_v59 = vadd.f32 %v4295_v22, %v4195_v26  ;;  %v13972_v54 = vld [vmem:[#allocation111_spill] sm:$0xff]  ;;  %v13976_v22 = vld [vmem:[#allocation112_spill] sm:$0xff] }
 0x213   : > { %1856 = vmatprep.mubr.f32.mxu0 %v13681_v38  ;;  %3238 = vmatprep.mubr.f32.mxu1 %v13681_v38  ;;  %v11601_v48 = vmul.f32 %v13967_v20, %v13970_v39  ;;  %v11607_v31 = vpack.c.bf16 %v13973_v56, %v13972_v54  ;;  %v11613_v42 = vadd.f32 %v4172_v24, %v4072_v4 }
 0x214   : > { %v11615_v26 = vadd.f32 %v4173_v5, %v4073_v41  ;;  %v4068_v36 = vmul.f32 %v13947_v32, %v11482_v10  ;;  %v4436_v56 = vmax.f32 %v11591_v18, 0.0  ;;  %v4070_v54 = vmul.f32 %v13950_v57, %v11482_v10 }
 0x215   : > { %13974 = vst [vmem:[#allocation48_spill] sm:$0xff] %v11607_v31  ;;  %v4170_v24 = vmul.f32 %v13951_v3, %v11489_v16  ;;  %v11629_v5 = vadd.f32 %v4175_v51, %v4075_v62  ;;  %v11631_v4 = vadd.f32 %v4369_v43, %v4325_v58  ;;  %v11633_v41 = vadd.f32 %v4369_v43, %v4327_v59  ;;  %v13979_v62 = vld [vmem:[#allocation53_spill] sm:$0xff]  ;;  %v11650_v59 = vpop.permute.xlu1 %4109 }
 0x216   : > { %1860 = vmatmul.mubr.f32.gmra.mrb[28].mxu0 %v13968_v1  ;;  %3242 = vmatmul.mubr.f32.gmra.mrb[28].mxu1 %v13968_v1  ;;  %v4074_v1 = vmul.f32 %v13950_v57, %v4002_v49  ;;  %v13975_v49 = vld [vmem:[#allocation113_spill] sm:$0xff]  ;;  %v4169_v18 = vmul.f32 %v13955_v29, %v11489_v16  ;;  %v4171_v51 = vmul.f32 %v13960_v12, %v11489_v16 }
 0x217   : > { %1865 = vmatprep.mubr.f32.mxu0 %v13681_v38  ;;  %3247 = vmatprep.mubr.f32.mxu1 %v13681_v38  ;;  %v11611_v27 = vpack.c.bf16 %v13976_v22, %v13975_v49  ;;  %13978 = vst [vmem:[#allocation63_spill] sm:$0xff] %v11629_v5  ;;  %v4438_v49 = vmax.f32 %v11594_v8, 0.0  ;;  %v4328_v58 = vadd.f32 %v4296_v35, %v13979_v62  ;;  %v4012_v8 = vpop.permute.xlu0 %4011 }
 0x218   : > { %v11622_v39 = vadd.f32 %v4174_v63, %v4074_v1  ;;  %v4069_v63 = vmul.f32 %v13956_v33, %v11482_v10  ;;  %v4071_v1 = vmul.f32 %v13959_v7, %v11482_v10  ;;  %v11652_v10 = vand.u32 4294901760, %v4436_v56 }
 0x219   : > { %13977 = vst [vmem:[#allocation49_spill] sm:$0xff] %v11611_v27  ;;  %v4202_v22 = vadd.f32 %v4170_v24, %v4070_v54  ;;  %v4082_v35 = vmul.f32 %v13950_v57, %v4012_v8  ;;  %v13980_v54 = vld [vmem:[#allocation51_spill] sm:$0xff]  ;;  %v4301_v62 = vmul.f32 %v13966_v46, %v11498_v55  ;;  %v11674_v5 = vadd.f32 %v11550_v11, %v4328_v58  ;;  %v13985_v58 = vld [vmem:[#allocation6_spill] sm:$0xff] }
 0x21a   : > { %1869 = vmatmul.mubr.f32.gmra.mrb[30].mxu0 %v13971_v14  ;;  %3251 = vmatmul.mubr.f32.gmra.mrb[30].mxu1 %v13971_v14  ;;  %v4168_v14 = vmul.f32 %v13949_v21, %v11489_v16  ;;  %v11660_v16 = vand.u32 4294901760, %v4438_v49  ;;  %v4330_v24 = vadd.f32 %v4298_v30, %v13980_v54  ;;  %v4076_v54 = vmul.f32 %v13947_v32, %v11597_v34 }
 0x21b   : > { %1987 = vmatprep.mubr.f32.mxu0 %v13681_v38  ;;  %3369 = vmatprep.mubr.f32.mxu1 %v13681_v38 }
 0x21c   : > { %v4200_v43 = vadd.f32 %v4168_v14, %v4068_v36  ;;  %v4083_v36 = vmul.f32 %v13959_v7, %v4012_v8  ;;  %v4201_v14 = vadd.f32 %v4169_v18, %v4069_v63  ;;  %v4303_v63 = vmul.f32 %v13967_v20, %v11498_v55 }
 0x21e   : > { %1989 = vmatmul.mubr.f32.vlgmr.msra.gmra.mrb[0].mxu0 %v13852_v23  ;;  %3371 = vmatmul.mubr.f32.vlgmr.msra.gmra.mrb[0].mxu1 %v13852_v23  ;;  %v4302_v23 = vmul.f32 %v13961_v13, %v11498_v55 }
 0x21f   : > { %8028 = vmatpush1.bf16.msra.mxu0 %v13886_v47  ;;  %8124 = vmatpush1.bf16.msra.mxu1 %v13887_v0  ;;  %v4300_v47 = vmul.f32 %v13958_v9, %v11498_v55  ;;  %v4080_v0 = vmul.f32 %v13947_v32, %v4012_v8  ;;  %v11699_v55 = vadd.f32 %v11550_v11, %v4330_v24 }
 0x220   : > { %8030 = vmatprep.subr.bf16.mxu0 %v13888_v60  ;;  %8126 = vmatprep.subr.bf16.mxu1 %v13889_v17  ;;  %v4081_v60 = vmul.f32 %v13956_v33, %v4012_v8  ;;  %v4203_v17 = vadd.f32 %v4171_v51, %v4071_v1  ;;  %v4334_v30 = vadd.f32 %v4302_v23, %v4202_v22 }
 0x221   : > { %1994 = vmatprep.mubr.f32.mxu0 %v13681_v38  ;;  %3376 = vmatprep.mubr.f32.mxu1 %v13681_v38  ;;  %v4332_v18 = vadd.f32 %v4300_v47, %v4200_v43  ;;  %v11686_v1 = vsub.f32 %v4438_v49, %v11660_v16  ;;  %v4212_v23 = vadd.f32 %v11554_v52, %v4080_v0  ;;  %v4440_v52 = vmax.f32 %v11674_v5, 0.0  ;;  %v13987_v47 = vld [vmem:[#allocation30_spill] sm:$0xff] }
 0x222   : > { %1996 = vmatmul.mubr.f32.gmra.mrb[2].mxu0 %v13857_v40  ;;  %3378 = vmatmul.mubr.f32.gmra.mrb[2].mxu1 %v13857_v40  ;;  %v11709_v49 = vadd.f32 %v4301_v62, %v4201_v14  ;;  %v11714_v51 = vadd.f32 %v4303_v63, %v4203_v17  ;;  %v4437_v43 = vmax.f32 %v11631_v4, 0.0  ;;  %v4304_v5 = vmul.f32 %v13958_v9, %v13985_v58  ;;  %v13988_v14 = vld [vmem:[#allocation82_spill] sm:$0xff]  ;;  %v13989_v62 = vld [vmem:[#allocation83_spill] sm:$0xff] }
 0x223   : > { %8032 = vmatpush1.bf16.msra.mxu0 %v13891_v19  ;;  %8128 = vmatpush1.bf16.msra.mxu1 %v13892_v28  ;;  %v11683_v19 = vsub.f32 %v4436_v56, %v11652_v10  ;;  %13982 = vst [vmem:[#allocation57_spill] sm:$0xff] %v11686_v1  ;;  %v4329_v28 = vadd.f32 %v11586_v25, %v11573_v2  ;;  %v11707_v56 = vpop.permute.xlu0 %4378 }
 0x224   : > { %8034 = vmatprep.subr.bf16.mxu0 %v13893_v15  ;;  %8130 = vmatprep.subr.bf16.mxu1 %v13894_v50  ;;  %v11692_v15 = vpop.permute.xlu1 %4241  ;;  %v11696_v50 = vadd.f32 %v11558_v37, %v4081_v60  ;;  %v4214_v2 = vadd.f32 %v11567_v53, %v4082_v35  ;;  %v11705_v25 = vadd.f32 %v11571_v44, %v4083_v36  ;;  %v13983_v37 = vld [vmem:[#allocation78_spill] sm:$0xff]  ;;  %v13984_v44 = vld [vmem:[#allocation79_spill] sm:$0xff]  ;;  %v4442_v36 = vmax.f32 %v11699_v55, 0.0 }
 0x225   : > { %2001 = vmatprep.mubr.f32.mxu0 %v13681_v38  ;;  %13981 = vst [vmem:[#allocation7_spill] sm:$0xff] %v11683_v19  ;;  %3383 = vmatprep.mubr.f32.mxu1 %v13681_v38  ;;  %v11720_v53 = vadd.f32 %v11707_v56, %v4334_v30  ;;  %v11730_v22 = vadd.f32 %v11550_v11, %v4329_v28 }
 0x226   : > { %2003 = vmatmul.mubr.f32.gmra.mrb[4].mxu0 %v13862_v61  ;;  %3385 = vmatmul.mubr.f32.gmra.mrb[4].mxu1 %v13862_v61  ;;  %v4305_v0 = vmul.f32 %v13966_v46, %v13985_v58  ;;  %v4306_v60 = vmul.f32 %v13961_v13, %v13985_v58  ;;  %v4307_v35 = vmul.f32 %v13967_v20, %v13985_v58 }
 0x227   : > { %8036 = vmatpush1.bf16.msra.mxu0 %v13896_v6  ;;  %8132 = vmatpush1.bf16.msra.mxu1 %v13897_v45  ;;  %v11717_v6 = vadd.f32 %v11707_v56, %v4332_v18  ;;  %v13986_v45 = vld [vmem:[#allocation13_spill] sm:$0xff]  ;;  %v4078_v24 = vmul.f32 %v13950_v57, %v11597_v34  ;;  %v4176_v17 = vmul.f32 %v13949_v21, %v11650_v59  ;;  %v13993_v18 = vld [vmem:[#allocation42_spill] sm:$0xff] }
 0x228   : > { %8038 = vmatprep.subr.bf16.mxu0 %v13983_v37  ;;  %8134 = vmatprep.subr.bf16.mxu1 %v13984_v44  ;;  %v4331_v8 = vadd.f32 %v11601_v48, %v13986_v45  ;;  %v11743_v48 = vand.u32 4294901760, %v4440_v52  ;;  %v4246_v63 = vpop.permute.xlu1 %4245  ;;  %v4178_v30 = vmul.f32 %v13951_v3, %v11650_v59  ;;  %v4441_v37 = vmax.f32 %v11730_v22, 0.0  ;;  %v13990_v3 = vld [vmem:[#allocation41_spill] sm:$0xff] }
 0x229   : > { %2008 = vmatprep.mubr.f32.mxu0 %v13681_v38  ;;  %3390 = vmatprep.mubr.f32.mxu1 %v13681_v38  ;;  %v4312_v32 = vmul.f32 %v13958_v9, %v4246_v63  ;;  %v4314_v28 = vmul.f32 %v13961_v13, %v4246_v63  ;;  %v11768_v44 = vand.u32 4294901760, %v4442_v36  ;;  %v4077_v58 = vmul.f32 %v13956_v33, %v11597_v34 }
 0x22a   : > { %2010 = vmatmul.mubr.f32.gmra.mrb[6].mxu0 %v13987_v47  ;;  %3392 = vmatmul.mubr.f32.gmra.mrb[6].mxu1 %v13987_v47  ;;  %v11763_v55 = vadd.f32 %v11550_v11, %v4331_v8  ;;  %v4336_v45 = vadd.f32 %v4304_v5, %v11613_v42  ;;  %v11777_v11 = vsub.f32 %v4440_v52, %v11743_v48 }
 0x22b   : > { %8040 = vmatpush1.bf16.msra.mxu0 %v13988_v14  ;;  %8136 = vmatpush1.bf16.msra.mxu1 %v13989_v62  ;;  %v4338_v14 = vadd.f32 %v4306_v60, %v11622_v39  ;;  %v4079_v8 = vmul.f32 %v13959_v7, %v11597_v34  ;;  %v4177_v62 = vmul.f32 %v13955_v29, %v11650_v59  ;;  %v13992_v34 = vld [vmem:[#allocation63_spill] sm:$0xff] }
 0x22c   : > { %8138 = vmatprep.subr.bf16.mxu0 %v11607_v31  ;;  %8234 = vmatprep.subr.bf16.mxu1 %v11611_v27  ;;  %13991 = vst [vmem:[#allocation58_spill] sm:$0xff] %v11777_v11  ;;  %v4179_v33 = vmul.f32 %v13960_v12, %v11650_v59  ;;  %v4208_v57 = vadd.f32 %v4176_v17, %v4076_v54  ;;  %v4384_v21 = vpop.permute.xlu1 %4383  ;;  %v4443_v12 = vmax.f32 %v11763_v55, 0.0 }
 0x22d   : > { %2015 = vmatprep.mubr.f32.mxu0 %v13681_v38  ;;  %3397 = vmatprep.mubr.f32.mxu1 %v13681_v38  ;;  %v4210_v42 = vadd.f32 %v4178_v30, %v4078_v24  ;;  %v4344_v5 = vadd.f32 %v4312_v32, %v4212_v23  ;;  %v4346_v39 = vadd.f32 %v4314_v28, %v4214_v2 }
 0x22e   : > { %2017 = vmatmul.mubr.f32.gmra.mrb[8].mxu0 %v13990_v3  ;;  %3399 = vmatmul.mubr.f32.gmra.mrb[8].mxu1 %v13990_v3  ;;  %v4308_v60 = vmul.f32 %v13958_v9, %v11692_v15  ;;  %v4310_v52 = vmul.f32 %v13961_v13, %v11692_v15  ;;  %v4337_v7 = vadd.f32 %v4305_v0, %v11615_v26  ;;  %v4394_v9 = vpop.permute.xlu0 %4393 }
 0x22f   : > { %2022 = vmatprep.mubr.f32.mxu0 %v13681_v38  ;;  %3404 = vmatprep.mubr.f32.mxu1 %v13681_v38  ;;  %v4339_v29 = vadd.f32 %v4307_v35, %v13992_v34  ;;  %v11795_v59 = vsub.f32 %v4442_v36, %v11768_v44  ;;  %v4416_v23 = vadd.f32 %v4384_v21, %v4336_v45 }
 0x230   : > { %v4418_v2 = vadd.f32 %v4384_v21, %v4338_v14  ;;  %v4209_v13 = vadd.f32 %v4177_v62, %v4077_v58  ;;  %v4211_v54 = vadd.f32 %v4179_v33, %v4079_v8  ;;  %v4309_v26 = vmul.f32 %v13966_v46, %v11692_v15  ;;  %v13995_v58 = vld [vmem:[#allocation43_spill] sm:$0xff] }
 0x231   : > { %13994 = vst [vmem:[#allocation64_spill] sm:$0xff] %v11795_v59  ;;  %v4311_v0 = vmul.f32 %v13967_v20, %v11692_v15  ;;  %v4313_v35 = vmul.f32 %v13966_v46, %v4246_v63  ;;  %v4315_v36 = vmul.f32 %v13967_v20, %v4246_v63  ;;  %v11806_v24 = vadd.f32 %v4394_v9, %v4344_v5 }
 0x232   : > { %2024 = vmatmul.mubr.f32.gmra.mrb[10].mxu0 %v13993_v18  ;;  %3406 = vmatmul.mubr.f32.gmra.mrb[10].mxu1 %v13993_v18  ;;  %v11808_v17 = vadd.f32 %v4394_v9, %v4346_v39  ;;  %v11810_v30 = vadd.f32 %v4384_v21, %v4337_v7  ;;  %v11812_v32 = vadd.f32 %v4384_v21, %v4339_v29  ;;  %v4448_v45 = vmax.f32 %v4416_v23, 0.0  ;;  %v4389_v39 = vpop.permute.xlu1 %4388  ;;  %v13997_v29 = vld [vmem:[#allocation44_spill] sm:$0xff] }
 0x233   : > { %2029 = vmatprep.mubr.f32.mxu0 %v13681_v38  ;;  %3411 = vmatprep.mubr.f32.mxu1 %v13681_v38  ;;  %v4340_v28 = vadd.f32 %v4308_v60, %v4208_v57  ;;  %v4342_v55 = vadd.f32 %v4310_v52, %v4210_v42  ;;  %v4450_v15 = vmax.f32 %v4418_v2, 0.0  ;;  %v11819_v46 = vand.u32 4294901760, %v4437_v43 }
 0x234   : > { %v11823_v20 = vand.u32 4294901760, %v4441_v37  ;;  %v4341_v63 = vadd.f32 %v4309_v26, %v4209_v13  ;;  %v4343_v21 = vadd.f32 %v4311_v0, %v4211_v54  ;;  %v13996_v57 = vmax.f32 %v11633_v41, 0.0 }
 0x235   : > { %v11830_v8 = vand.u32 4294901760, %v4443_v12  ;;  %v4345_v62 = vadd.f32 %v4313_v35, %v11696_v50  ;;  %v4347_v33 = vadd.f32 %v4315_v36, %v11705_v25  ;;  %v4449_v60 = vmax.f32 %v11810_v30, 0.0  ;;  %v14001_v30 = vld [vmem:[#allocation52_spill] sm:$0xff] }
 0x236   : > { %2031 = vmatmul.mubr.f32.gmra.mrb[12].mxu0 %v13995_v58  ;;  %3413 = vmatmul.mubr.f32.gmra.mrb[12].mxu1 %v13995_v58  ;;  %v11828_v14 = vand.u32 4294901760, %v13996_v57  ;;  %v4451_v52 = vmax.f32 %v11812_v32, 0.0  ;;  %v11838_v7 = vadd.f32 %v4389_v39, %v4340_v28  ;;  %v11840_v34 = vadd.f32 %v4389_v39, %v4342_v55 }
 0x237   : > { %2036 = vmatprep.mubr.f32.mxu0 %v13681_v38  ;;  %3418 = vmatprep.mubr.f32.mxu1 %v13681_v38  ;;  %v11843_v23 = vand.u32 4294901760, %v4448_v45  ;;  %v11845_v50 = vand.u32 4294901760, %v4450_v15  ;;  %v11852_v25 = vsub.f32 %v4437_v43, %v11819_v46  ;;  %v11857_v2 = vsub.f32 %v4441_v37, %v11823_v20 }
 0x238   : > { %v11859_v13 = vadd.f32 %v4389_v39, %v4341_v63  ;;  %v11861_v54 = vadd.f32 %v4389_v39, %v4343_v21  ;;  %v13998_v26 = vmov %v13996_v57  ;;  %v11870_v4 = vsub.f32 %v4443_v12, %v11830_v8 }
 0x239   : > { %v11867_v0 = vsub.f32 %v13998_v26, %v11828_v14  ;;  %v11873_v43 = vsub.f32 %v4448_v45, %v11843_v23  ;;  %v11876_v22 = vsub.f32 %v4450_v15, %v11845_v50  ;;  %v4413_v37 = vadd.f32 %v11707_v56, %v11709_v49 }
 0x23a   : > { %2038 = vmatmul.mubr.f32.gmra.mrb[14].mxu0 %v13997_v29  ;;  %3420 = vmatmul.mubr.f32.gmra.mrb[14].mxu1 %v13997_v29  ;;  %14000 = vst [vmem:[#allocation8_spill] sm:$0xff] %v11870_v4  ;;  %v4415_v35 = vadd.f32 %v11707_v56, %v11714_v51  ;;  %v4452_v36 = vmax.f32 %v11838_v7, 0.0  ;;  %v13430_v41 = vmax.f32 %v11840_v34, 0.0  ;;  %v4425_v12 = vadd.f32 %v4394_v9, %v4345_v62 }
 0x23b   : > { %2043 = vmatprep.mubr.f32.mxu0 %v13681_v38  ;;  %3425 = vmatprep.mubr.f32.mxu1 %v13681_v38  ;;  %13999 = vst [vmem:[#allocation65_spill] sm:$0xff] %v11867_v0  ;;  %v4427_v28 = vadd.f32 %v4394_v9, %v4347_v33  ;;  %v13425_v49 = vand.u32 4294901760, %v11852_v25  ;;  %v13424_v55 = vand.u32 4294901760, %v11857_v2  ;;  %v13423_v51 = vand.u32 4294901760, %v11867_v0  ;;  %v14002_v33 = vld [vmem:[#allocation33_spill] sm:$0xff] }
 0x23c   : > { %v13422_v45 = vand.u32 4294901760, %v11870_v4  ;;  %v4445_v9 = vmax.f32 %v4413_v37, 0.0  ;;  %v4447_v21 = vmax.f32 %v4415_v35, 0.0  ;;  %v13427_v57 = vand.u32 4294901760, %v11683_v19  ;;  %v14023_v4 = vld [vmem:[#allocation89_spill] sm:$0xff] }
 0x23d   : > { %v13426_v62 = vand.u32 4294901760, %v11777_v11  ;;  %v13429_v39 = vand.u32 4294901760, %v11686_v1  ;;  %v13428_v7 = vand.u32 4294901760, %v11795_v59  ;;  %v11909_v26 = vpack.c.bf16 %v13424_v55, %v13425_v49  ;;  %v14018_v1 = vld [vmem:[#allocation88_spill] sm:$0xff] }
 0x23e   : > { %2045 = vmatmul.mubr.f32.gmra.mrb[16].mxu0 %v14001_v30  ;;  %3427 = vmatmul.mubr.f32.gmra.mrb[16].mxu1 %v14001_v30  ;;  %v11915_v37 = vpack.c.bf16 %v13422_v45, %v13423_v51  ;;  %v4453_v35 = vmax.f32 %v11859_v13, 0.0  ;;  %v4455_v63 = vmax.f32 %v11861_v54, 0.0  ;;  %v11921_v15 = vand.u32 4294901760, %v4449_v60 }
 0x23f   : > { %2050 = vmatprep.mubr.f32.mxu0 %v13681_v38  ;;  %3432 = vmatprep.mubr.f32.mxu1 %v13681_v38  ;;  %14003 = vst [vmem:[#allocation66_spill] sm:$0xff] %v11909_v26  ;;  %v11927_v56 = vpack.c.bf16 %v13426_v62, %v13427_v57  ;;  %v11930_v32 = vand.u32 4294901760, %v4451_v52  ;;  %v4457_v45 = vmax.f32 %v4425_v12, 0.0  ;;  %v4459_v13 = vmax.f32 %v4427_v28, 0.0  ;;  %v14008_v28 = vld [vmem:[#allocation86_spill] sm:$0xff] }
 0x240   : > { %14004 = vst [vmem:[#allocation67_spill] sm:$0xff] %v11915_v37  ;;  %v11936_v54 = vpack.c.bf16 %v13428_v7, %v13429_v39  ;;  %v11938_v51 = vand.u32 4294901760, %v4452_v36  ;;  %v11940_v55 = vand.u32 4294901760, %v4445_v9  ;;  %v11942_v49 = vand.u32 4294901760, %v4447_v21 }
 0x241   : > { %14005 = vst [vmem:[#allocation72_spill] sm:$0xff] %v11927_v56  ;;  %v14007_v62 = vmax.f32 %v11717_v6, 0.0  ;;  %v11950_v12 = vand.u32 4294901760, %v13430_v41  ;;  %v11954_v5 = vsub.f32 %v4449_v60, %v11921_v15  ;;  %v11957_v7 = vsub.f32 %v4451_v52, %v11930_v32 }
 0x242   : > { %2052 = vmatmul.mubr.f32.gmra.mrb[18].mxu0 %v14002_v33  ;;  %3434 = vmatmul.mubr.f32.gmra.mrb[18].mxu1 %v14002_v33  ;;  %14006 = vst [vmem:[#allocation73_spill] sm:$0xff] %v11936_v54  ;;  %v14010_v39 = vmax.f32 %v11720_v53, 0.0  ;;  %v11969_v41 = vsub.f32 %v4447_v21, %v11942_v49  ;;  %v14012_v60 = vmax.f32 %v11717_v6, 0.0  ;;  %v11976_v52 = vand.u32 4294901760, %v4453_v35 }
 0x243   : > { %2057 = vmatprep.mubr.f32.mxu0 %v13681_v38  ;;  %3439 = vmatprep.mubr.f32.mxu1 %v13681_v38  ;;  %v11946_v57 = vand.u32 4294901760, %v14007_v62  ;;  %14009 = vst [vmem:[#allocation16_spill] sm:$0xff] %v11957_v7  ;;  %v11966_v62 = vsub.f32 %v4445_v9, %v11940_v55  ;;  %v11981_v56 = vand.u32 4294901760, %v4455_v63  ;;  %v11983_v37 = vand.u32 4294901760, %v4459_v13 }
 0x244   : > { %v11961_v42 = vand.u32 4294901760, %v14010_v39  ;;  %v11979_v39 = vand.u32 4294901760, %v4457_v45  ;;  %v14013_v9 = vmax.f32 %v11806_v24, 0.0  ;;  %v11990_v21 = vsub.f32 %v4452_v36, %v11938_v51 }
 0x245   : > { %14011 = vst [vmem:[#allocation75_spill] sm:$0xff] %v11966_v62  ;;  %v11974_v54 = vsub.f32 %v14012_v60, %v11946_v57  ;;  %v14015_v6 = vmax.f32 %v11720_v53, 0.0  ;;  %v11998_v27 = vsub.f32 %v4453_v35, %v11976_v52  ;;  %v14017_v31 = vmax.f32 %v11808_v17, 0.0 }
 0x246   : > { %2059 = vmatmul.mubr.f32.gmra.mrb[20].mxu0 %v14008_v28  ;;  %3441 = vmatmul.mubr.f32.gmra.mrb[20].mxu1 %v14008_v28  ;;  %v11987_v26 = vand.u32 4294901760, %v14013_v9  ;;  %14014 = vst [vmem:[#allocation76_spill] sm:$0xff] %v11990_v21  ;;  %v12006_v9 = vsub.f32 %v4457_v45, %v11979_v39  ;;  %v12009_v36 = vsub.f32 %v4455_v63, %v11981_v56  ;;  %v14020_v53 = vmax.f32 %v11806_v24, 0.0 }
 0x247   : > { %2064 = vmatprep.mubr.f32.mxu0 %v13681_v38  ;;  %3446 = vmatprep.mubr.f32.mxu1 %v13681_v38  ;;  %v11995_v60 = vsub.f32 %v14015_v6, %v11961_v42  ;;  %14016 = vst [vmem:[#allocation31_spill] sm:$0xff] %v11998_v27  ;;  %v12002_v59 = vand.u32 4294901760, %v14017_v31  ;;  %v12012_v11 = vsub.f32 %v4459_v13, %v11983_v37  ;;  %v14021_v13 = vmax.f32 %v11840_v34, 0.0 }
 0x248   : > { %14019 = vst [vmem:[#allocation38_spill] sm:$0xff] %v12006_v9  ;;  %v12017_v35 = vsub.f32 %v14020_v53, %v11987_v26  ;;  %v14024_v19 = vmov %v14017_v31  ;;  %v14026_v45 = vand.u32 4294901760, %v11966_v62  ;;  %v14027_v31 = vand.u32 4294901760, %v11954_v5 }
 0x249   : > { %v12041_v24 = vsub.f32 %v14021_v13, %v11950_v12  ;;  %v12047_v53 = vsub.f32 %v14024_v19, %v12002_v59  ;;  %v14029_v13 = vand.u32 4294901760, %v11969_v41  ;;  %v14030_v63 = vand.u32 4294901760, %v11957_v7 }
 0x24a   : > { %2066 = vmatmul.mubr.f32.gmra.mrb[22].mxu0 %v14018_v1  ;;  %3448 = vmatmul.mubr.f32.gmra.mrb[22].mxu1 %v14018_v1  ;;  %v12053_v6 = vpack.c.bf16 %v14027_v31, %v14026_v45  ;;  %v14032_v19 = vand.u32 4294901760, %v11974_v54  ;;  %v14033_v17 = vand.u32 4294901760, %v11873_v43  ;;  %v14035_v31 = vand.u32 4294901760, %v11995_v60 }
 0x24b   : > { %2071 = vmatprep.mubr.f32.mxu0 %v13681_v38  ;;  %3453 = vmatprep.mubr.f32.mxu1 %v13681_v38  ;;  %14022 = vst [vmem:[#allocation39_spill] sm:$0xff] %v12041_v24  ;;  %14025 = vst [vmem:[#allocation40_spill] sm:$0xff] %v12047_v53  ;;  %v12062_v0 = vpack.c.bf16 %v14030_v63, %v14029_v13  ;;  %v14036_v45 = vand.u32 4294901760, %v11876_v22  ;;  %v13453_v63 = vand.u32 4294901760, %v12012_v11  ;;  %v14044_v7 = vand.u32 4294901760, %v11990_v21 }
 0x24c   : > { %14028 = vst [vmem:[#allocation59_spill] sm:$0xff] %v12053_v6  ;;  %v12068_v62 = vpack.c.bf16 %v14033_v17, %v14032_v19  ;;  %v14039_v19 = vand.u32 4294901760, %v11998_v27  ;;  %v14040_v17 = vand.u32 4294901760, %v12006_v9  ;;  %v14045_v13 = vand.u32 4294901760, %v12017_v35 }
 0x24d   : > { %14031 = vst [vmem:[#allocation45_spill] sm:$0xff] %v12062_v0  ;;  %v12074_v6 = vpack.c.bf16 %v14036_v45, %v14035_v31  ;;  %v14038_v45 = vld [vmem:[#allocation92_spill] sm:$0xff]  ;;  %v14042_v31 = vand.u32 4294901760, %v12009_v36  ;;  %v14048_v9 = vand.u32 4294901760, %v12047_v53 }
 0x24e   : > { %2073 = vmatmul.mubr.f32.gmra.mrb[24].mxu0 %v14023_v4  ;;  %3455 = vmatmul.mubr.f32.gmra.mrb[24].mxu1 %v14023_v4  ;;  %14034 = vst [vmem:[#allocation46_spill] sm:$0xff] %v12068_v62  ;;  %v12099_v0 = vpack.c.bf16 %v14040_v17, %v14039_v19  ;;  %v14047_v62 = vand.u32 4294901760, %v12041_v24  ;;  %v14050_v17 = vld [vmem:[#allocation96_spill] sm:$0xff] }
 0x24f   : > { %2078 = vmatprep.mubr.f32.mxu0 %v13681_v38  ;;  %14037 = vst [vmem:[#allocation47_spill] sm:$0xff] %v12074_v6  ;;  %3460 = vmatprep.mubr.f32.mxu1 %v13681_v38  ;;  %v12105_v34 = vpack.c.bf16 %v13453_v63, %v14042_v31  ;;  %v12111_v6 = vpack.c.bf16 %v14045_v13, %v14044_v7  ;;  %v14051_v31 = vld [vmem:[#allocation61_spill] sm:$0xff]  ;;  %v14056_v63 = vld [vmem:[#allocation115_spill] sm:$0xff] }
 0x250   : > { %14041 = vst [vmem:[#allocation69_spill] sm:$0xff] %v12099_v0  ;;  %v12118_v19 = vpack.c.bf16 %v14048_v9, %v14047_v62  ;;  %v14052_v7 = vld [vmem:[#allocation5_spill] sm:$0xff]  ;;  %v12131_v62 = vpack.c.bf16 %v11823_v20, %v11819_v46  ;;  %v14054_v9 = vld [vmem:[#allocation114_spill] sm:$0xff]  ;;  %v12137_v13 = vpack.c.bf16 %v11830_v8, %v11828_v14  ;;  %v12149_v46 = vpack.c.bf16 %v11743_v48, %v11652_v10  ;;  %v14091_v0 = vld [vmem:[#allocation64_spill] sm:$0xff] }
 0x251   : > { %14043 = vst [vmem:[#allocation32_spill] sm:$0xff] %v12105_v34  ;;  %14046 = vst [vmem:[#allocation85_spill] sm:$0xff] %v12111_v6  ;;  %v12153_v20 = vpack.c.bf16 %v11930_v32, %v11942_v49  ;;  %v12159_v14 = vpack.c.bf16 %v11768_v44, %v11660_v16  ;;  %v14061_v8 = vld [vmem:[#allocation117_spill] sm:$0xff]  ;;  %v12168_v10 = vpack.c.bf16 %v11843_v23, %v11946_v57  ;;  %v14064_v48 = vld [vmem:[#allocation118_spill] sm:$0xff] }
 0x252   : > { %2080 = vmatmul.mubr.f32.gmra.mrb[26].mxu0 %v14038_v45  ;;  %3462 = vmatmul.mubr.f32.gmra.mrb[26].mxu1 %v14038_v45  ;;  %14049 = vst [vmem:[#allocation81_spill] sm:$0xff] %v12118_v19  ;;  %14053 = vst [vmem:[#allocation91_spill] sm:$0xff] %v12131_v62  ;;  %v12143_v19 = vpack.c.bf16 %v11921_v15, %v11940_v55  ;;  %v14062_v55 = vand.u32 4294901760, %v14061_v8  ;;  %v14065_v32 = vand.u32 4294901760, %v14064_v48  ;;  %v14068_v44 = vld [vmem:[#allocation119_spill] sm:$0xff] }
 0x253   : > { %2085 = vmatprep.mubr.f32.mxu0 %v13681_v38  ;;  %3467 = vmatprep.mubr.f32.mxu1 %v13681_v38  ;;  %14055 = vst [vmem:[#allocation94_spill] sm:$0xff] %v12137_v13  ;;  %14058 = vst [vmem:[#allocation11_spill] sm:$0xff] %v12149_v46  ;;  %v12177_v16 = vpack.c.bf16 %v11845_v50, %v11961_v42  ;;  %v12190_v57 = vpack.c.bf16 %v11983_v37, %v11981_v56 }
 0x254   : > { %14057 = vst [vmem:[#allocation98_spill] sm:$0xff] %v12143_v19  ;;  %14059 = vst [vmem:[#allocation74_spill] sm:$0xff] %v12153_v20  ;;  %v4892_v15 = vsub.f32 %v14061_v8, %v14062_v55  ;;  %v6274_v49 = vsub.f32 %v14064_v48, %v14065_v32  ;;  %v14071_v55 = vld [vmem:[#allocation120_spill] sm:$0xff]  ;;  %v12207_v56 = vpack.c.bf16 %v12002_v59, %v11950_v12  ;;  %v4461_v59 = vld [vmem:[%s13139_s3 + $0x8] sm:$0xff] }
 0x255   : > { %14060 = vst [vmem:[#allocation9_spill] sm:$0xff] %v12159_v14  ;;  %14063 = vst [vmem:[#allocation99_spill] sm:$0xff] %v12168_v10  ;;  %v14072_v32 = vand.u32 4294901760, %v14071_v55 }
 0x256   : > { %2087 = vmatmul.mubr.f32.gmra.mrb[28].mxu0 %v14050_v17  ;;  %3469 = vmatmul.mubr.f32.gmra.mrb[28].mxu1 %v14050_v17  ;;  %14066 = vst [vmem:[#allocation100_spill] sm:$0xff] %v12177_v16  ;;  %14070 = vst [vmem:[#allocation101_spill] sm:$0xff] %v12190_v57  ;;  %v4893_v50 = vand.u32 4294901760, %v4892_v15 }
 0x257   : > { %2092 = vmatprep.mubr.f32.mxu0 %v13681_v38  ;;  %3474 = vmatprep.mubr.f32.mxu1 %v13681_v38  ;;  %v6262_v42 = vsub.f32 %v14071_v55, %v14072_v32  ;;  %14074 = vst [vmem:[#allocation24_spill] sm:$0xff] %v12207_v56  ;;  %v4463_v32 = vld [vmem:[%s13139_s3 + $0x18] sm:$0xff] }
 0x258   : > { %v4582_v6 = vsel %vm862_vm0, %v4463_v32, 0  ;;  %v14093_v32 = vld [vmem:[#allocation75_spill] sm:$0xff] }
 0x25a   : > { %2094 = vmatmul.mubr.f32.gmra.mrb[30].mxu0 %v14051_v31  ;;  %3476 = vmatmul.mubr.f32.gmra.mrb[30].mxu1 %v14051_v31 }
 0x25b   : > { %2180 = vmatprep.mubr.f32.mxu0 %v13681_v38  ;;  %3562 = vmatprep.mubr.f32.mxu1 %v13681_v38 }
 0x25e   : > { %2182 = vmatmul.mubr.f32.vlgmr.msra.gmra.mrb[0].mxu0 %v14052_v7  ;;  %3564 = vmatmul.mubr.f32.vlgmr.msra.gmra.mrb[0].mxu1 %v14052_v7  ;;  %v14069_v7 = vand.u32 4294901760, %v14068_v44 }
 0x25f   : > { %8140 = vmatpush1.bf16.msra.mxu0 %v14054_v9  ;;  %8236 = vmatpush1.bf16.msra.mxu1 %v14056_v63  ;;  %v14109_v9 = vld [vmem:[#allocation38_spill] sm:$0xff] }
 0x260   : > { %8142 = vmatprep.subr.bf16.mxu0 %v12131_v62  ;;  %8238 = vmatprep.subr.bf16.mxu1 %v12137_v13  ;;  %v4880_v23 = vsub.f32 %v14068_v44, %v14069_v7  ;;  %v14107_v13 = vand.u32 4294901760, %v11876_v22 }
 0x261   : > { %2187 = vmatprep.mubr.f32.mxu0 %v13681_v38  ;;  %3569 = vmatprep.mubr.f32.mxu1 %v13681_v38 }
 0x262   : > { %2189 = vmatmul.mubr.f32.gmra.mrb[2].mxu0 %v13857_v40  ;;  %3571 = vmatmul.mubr.f32.gmra.mrb[2].mxu1 %v13857_v40  ;;  %v12181_v40 = vpack.c.bf16 %v11979_v39, %v11976_v52  ;;  %v12201_v52 = vpack.c.bf16 %v11987_v26, %v11938_v51  ;;  %v6275_v39 = vand.u32 4294901760, %v6274_v49  ;;  %v4881_v37 = vand.u32 4294901760, %v4880_v23 }
 0x263   : > { %8144 = vmatpush1.bf16.msra.mxu0 %v12149_v46  ;;  %8240 = vmatpush1.bf16.msra.mxu1 %v12159_v14 }
 0x264   : > { %8146 = vmatprep.subr.bf16.mxu0 %v12143_v19  ;;  %14067 = vst [vmem:[#allocation12_spill] sm:$0xff] %v12181_v40  ;;  %8242 = vmatprep.subr.bf16.mxu1 %v12153_v20  ;;  %14073 = vst [vmem:[#allocation102_spill] sm:$0xff] %v12201_v52  ;;  %v8153_v51 = vpack.c.bf16 %v4893_v50, %v4881_v37  ;;  %v14082_v37 = vld [vmem:[#allocation8_spill] sm:$0xff] }
 0x265   : > { %2194 = vmatprep.mubr.f32.mxu0 %v13681_v38  ;;  %3576 = vmatprep.mubr.f32.mxu1 %v13681_v38 }
 0x266   : > { %2196 = vmatmul.mubr.f32.gmra.mrb[4].mxu0 %v13862_v61  ;;  %3578 = vmatmul.mubr.f32.gmra.mrb[4].mxu1 %v13862_v61  ;;  %v6263_v61 = vand.u32 4294901760, %v6262_v42  ;;  %v14080_v42 = vld [vmem:[#allocation65_spill] sm:$0xff] }
 0x267   : > { %8148 = vmatpush1.bf16.msra.mxu0 %v12168_v10  ;;  %8244 = vmatpush1.bf16.msra.mxu1 %v12177_v16  ;;  %v14081_v50 = vand.u32 4294901760, %v14080_v42 }
 0x268   : > { %8150 = vmatprep.subr.bf16.mxu0 %v12181_v40  ;;  %8246 = vmatprep.subr.bf16.mxu1 %v12190_v57  ;;  %v8249_v26 = vpack.c.bf16 %v6275_v39, %v6263_v61  ;;  %v14083_v61 = vand.u32 4294901760, %v14082_v37  ;;  %v4464_v57 = vld [vmem:[%s13139_s3 + $0x20] sm:$0xff]  ;;  %v14095_v40 = vand.u32 4294901760, %v11954_v5 }
 0x269   : > { %2201 = vmatprep.mubr.f32.mxu0 %v13681_v38  ;;  %3583 = vmatprep.mubr.f32.mxu1 %v13681_v38  ;;  %v6286_v39 = vsub.f32 %v14080_v42, %v14081_v50 }
 0x26a   : > { %2203 = vmatmul.mubr.f32.gmra.mrb[6].mxu0 %v13987_v47  ;;  %3585 = vmatmul.mubr.f32.gmra.mrb[6].mxu1 %v13987_v47  ;;  %v4460_v47 = vld [vmem:[%s13139_s3] sm:$0xff] }
 0x26b   : > { %8152 = vmatpush1.bf16.msra.mxu0 %v12201_v52  ;;  %8248 = vmatpush1.bf16.msra.mxu1 %v12207_v56  ;;  %v14094_v52 = vand.u32 4294901760, %v14093_v32 }
 0x26c   : > { %8154 = vmatprep.subr.bf16.mxu0 %v8153_v51  ;;  %8250 = vmatprep.subr.bf16.mxu1 %v8249_v26  ;;  %v6298_v51 = vsub.f32 %v14082_v37, %v14083_v61  ;;  %v14089_v61 = vld [vmem:[#allocation57_spill] sm:$0xff] }
 0x26d   : > { %2208 = vmatprep.mubr.f32.mxu0 %v13681_v38  ;;  %3590 = vmatprep.mubr.f32.mxu1 %v13681_v38  ;;  %v14090_v34 = vand.u32 4294901760, %v14089_v61 }
 0x26e   : > { %2210 = vmatmul.mubr.f32.gmra.mrb[8].mxu0 %v13990_v3  ;;  %3592 = vmatmul.mubr.f32.gmra.mrb[8].mxu1 %v13990_v3  ;;  %v6299_v56 = vand.u32 4294901760, %v6298_v51 }
 0x26f   : > { %2215 = vmatprep.mubr.f32.mxu0 %v13681_v38  ;;  %3597 = vmatprep.mubr.f32.mxu1 %v13681_v38 }
 0x272   : > { %2217 = vmatmul.mubr.f32.gmra.mrb[10].mxu0 %v13993_v18  ;;  %3599 = vmatmul.mubr.f32.gmra.mrb[10].mxu1 %v13993_v18  ;;  %v4573_v18 = vsel %vm862_vm0, %v4460_v47, 0 }
 0x273   : > { %2222 = vmatprep.mubr.f32.mxu0 %v13681_v38  ;;  %3604 = vmatprep.mubr.f32.mxu1 %v13681_v38  ;;  %v12246_v3 = vand.u32 4294901760, %v4573_v18 }
 0x276   : > { %2224 = vmatmul.mubr.f32.gmra.mrb[12].mxu0 %v13995_v58  ;;  %3606 = vmatmul.mubr.f32.gmra.mrb[12].mxu1 %v13995_v58  ;;  %v4576_v58 = vsel %vm862_vm0, %v4461_v59, 0  ;;  %v14084_v59 = vld [vmem:[#allocation7_spill] sm:$0xff] }
 0x277   : > { %2229 = vmatprep.mubr.f32.mxu0 %v13681_v38  ;;  %3611 = vmatprep.mubr.f32.mxu1 %v13681_v38 }
 0x27a   : > { %2231 = vmatmul.mubr.f32.gmra.mrb[14].mxu0 %v13997_v29  ;;  %3613 = vmatmul.mubr.f32.gmra.mrb[14].mxu1 %v13997_v29  ;;  %v12257_v29 = vsub.f32 %v4573_v18, %v12246_v3 }
 0x27b   : > { %2236 = vmatprep.mubr.f32.mxu0 %v13681_v38  ;;  %3618 = vmatprep.mubr.f32.mxu1 %v13681_v38 }
 0x27c   : > { %14075 = vst [vmem:[#allocation103_spill] sm:$0xff] %v12257_v29  ;;  %v12269_v12 = vand.u32 4294901760, %v12257_v29 }
 0x27e   : > { %2238 = vmatmul.mubr.f32.gmra.mrb[16].mxu0 %v14001_v30  ;;  %3620 = vmatmul.mubr.f32.gmra.mrb[16].mxu1 %v14001_v30  ;;  %v12262_v30 = vand.u32 4294901760, %v4576_v58  ;;  %14076 = vst [vmem:[#allocation29_spill] sm:$0xff] %v12269_v12 }
 0x27f   : > { %2243 = vmatprep.mubr.f32.mxu0 %v13681_v38  ;;  %3625 = vmatprep.mubr.f32.mxu1 %v13681_v38 }
 0x280   : > { %v12282_v23 = vsub.f32 %v4576_v58, %v12262_v30  ;;  %v14085_v58 = vand.u32 4294901760, %v14084_v59 }
 0x282   : > { %2245 = vmatmul.mubr.f32.gmra.mrb[18].mxu0 %v14002_v33  ;;  %3627 = vmatmul.mubr.f32.gmra.mrb[18].mxu1 %v14002_v33  ;;  %v4462_v33 = vld [vmem:[%s13139_s3 + $0x10] sm:$0xff]  ;;  %14079 = vst [vmem:[#allocation104_spill] sm:$0xff] %v12282_v23 }
 0x283   : > { %2250 = vmatprep.mubr.f32.mxu0 %v13681_v38  ;;  %3632 = vmatprep.mubr.f32.mxu1 %v13681_v38  ;;  %v4579_v7 = vsel %vm862_vm0, %v4462_v33, 0  ;;  %v4910_v33 = vsub.f32 %v14084_v59, %v14085_v58 }
 0x284   : > { %v12296_v47 = vand.u32 4294901760, %v4579_v7 }
 0x285   : > { %v4911_v10 = vand.u32 4294901760, %v4910_v33 }
 0x286   : > { %2252 = vmatmul.mubr.f32.gmra.mrb[20].mxu0 %v14008_v28  ;;  %3634 = vmatmul.mubr.f32.gmra.mrb[20].mxu1 %v14008_v28  ;;  %v14077_v28 = vand.u32 4294901760, %v11852_v25  ;;  %v12328_v16 = vsub.f32 %v4579_v7, %v12296_v47  ;;  %v4585_v7 = vsel %vm862_vm0, %v4464_v57, 0  ;;  %v14102_v57 = vand.u32 4294901760, %v11974_v54 }
 0x287   : > { %2257 = vmatprep.mubr.f32.mxu0 %v13681_v38  ;;  %3639 = vmatprep.mubr.f32.mxu1 %v13681_v38 }
 0x288   : > { %v4904_v15 = vsub.f32 %v11852_v25, %v14077_v28  ;;  %v14086_v28 = vld [vmem:[#allocation58_spill] sm:$0xff]  ;;  %14096 = vst [vmem:[#allocation106_spill] sm:$0xff] %v12328_v16 }
 0x28a   : > { %2259 = vmatmul.mubr.f32.gmra.mrb[22].mxu0 %v14018_v1  ;;  %3641 = vmatmul.mubr.f32.gmra.mrb[22].mxu1 %v14018_v1  ;;  %v14078_v1 = vand.u32 4294901760, %v11857_v2  ;;  %v4905_v26 = vand.u32 4294901760, %v4904_v15  ;;  %v12309_v15 = vand.u32 4294901760, %v12282_v23 }
 0x28b   : > { %2264 = vmatprep.mubr.f32.mxu0 %v13681_v38  ;;  %3646 = vmatprep.mubr.f32.mxu1 %v13681_v38 }
 0x28c   : > { %v4916_v49 = vsub.f32 %v11857_v2, %v14078_v1  ;;  %v14087_v1 = vand.u32 4294901760, %v14086_v28  ;;  %14088 = vst [vmem:[#allocation105_spill] sm:$0xff] %v12309_v15 }
 0x28e   : > { %2266 = vmatmul.mubr.f32.gmra.mrb[24].mxu0 %v14023_v4  ;;  %3648 = vmatmul.mubr.f32.gmra.mrb[24].mxu1 %v14023_v4  ;;  %v4704_v4 = vsub.f32 %v12257_v29, %v12269_v12  ;;  %v4917_v18 = vand.u32 4294901760, %v4916_v49  ;;  %v4922_v50 = vsub.f32 %v14086_v28, %v14087_v1  ;;  %v6292_v49 = vsub.f32 %v14089_v61, %v14090_v34 }
 0x28f   : > { %2271 = vmatprep.mubr.f32.mxu0 %v13681_v38  ;;  %3653 = vmatprep.mubr.f32.mxu1 %v13681_v38  ;;  %v14092_v12 = vand.u32 4294901760, %v14091_v0  ;;  %v6287_v1 = vand.u32 4294901760, %v6286_v39  ;;  %v4940_v34 = vsub.f32 %v11954_v5, %v14095_v40 }
 0x290   : > { %v4705_v39 = vand.u32 4294901760, %v4704_v4  ;;  %v8157_v51 = vpack.c.bf16 %v4917_v18, %v4905_v26  ;;  %v4923_v20 = vand.u32 4294901760, %v4922_v50  ;;  %v6293_v19 = vand.u32 4294901760, %v6292_v49  ;;  %v14099_v18 = vld [vmem:[#allocation16_spill] sm:$0xff]  ;;  %v4465_v50 = vld [vmem:[%s13139_s3 + $0x28] sm:$0xff] }
 0x291   : > { %v6304_v58 = vsub.f32 %v14091_v0, %v14092_v12  ;;  %v12330_v12 = vand.u32 4294901760, %v4582_v6  ;;  %v8253_v14 = vpack.c.bf16 %v6299_v56, %v6287_v1  ;;  %v14098_v4 = vand.u32 4294901760, %v11969_v41 }
 0x292   : > { %2273 = vmatmul.mubr.f32.gmra.mrb[26].mxu0 %v14038_v45  ;;  %3655 = vmatmul.mubr.f32.gmra.mrb[26].mxu1 %v14038_v45  ;;  %v4928_v45 = vsub.f32 %v14093_v32, %v14094_v52  ;;  %v4715_v52 = vsub.f32 %v12282_v23, %v12309_v15  ;;  %v14100_v33 = vand.u32 4294901760, %v14099_v18  ;;  %v4941_v49 = vand.u32 4294901760, %v4940_v34 }
 0x293   : > { %2278 = vmatprep.mubr.f32.mxu0 %v13681_v38  ;;  %3660 = vmatprep.mubr.f32.mxu1 %v13681_v38  ;;  %14097 = vst [vmem:[#allocation37_spill] sm:$0xff] %v12330_v12  ;;  %v6305_v40 = vand.u32 4294901760, %v6304_v58  ;;  %v6310_v26 = vsub.f32 %v11969_v41, %v14098_v4  ;;  %v12349_v58 = vand.u32 4294901760, %v12328_v16  ;;  %v4934_v56 = vsub.f32 %v11974_v54, %v14102_v57 }
 0x294   : > { %v4929_v46 = vand.u32 4294901760, %v4928_v45  ;;  %v12355_v1 = vsub.f32 %v4582_v6, %v12330_v12  ;;  %v8159_v45 = vpack.c.bf16 %v4923_v20, %v4911_v10  ;;  %v14104_v4 = vand.u32 4294901760, %v11873_v43 }
 0x295   : > { %14101 = vst [vmem:[#allocation107_spill] sm:$0xff] %v12349_v58  ;;  %v14105_v15 = vand.u32 4294901760, %v11995_v60  ;;  %v12364_v23 = vand.u32 4294901760, %v4585_v7  ;;  %v4716_v57 = vand.u32 4294901760, %v4715_v52  ;;  %v8255_v6 = vpack.c.bf16 %v6305_v40, %v6293_v19  ;;  %v4466_v19 = vld [vmem:[%s13139_s3 + $0x30] sm:$0xff] }
 0x296   : > { %2280 = vmatmul.mubr.f32.gmra.mrb[28].mxu0 %v14050_v17  ;;  %3662 = vmatmul.mubr.f32.gmra.mrb[28].mxu1 %v14050_v17  ;;  %v6322_v17 = vsub.f32 %v14099_v18, %v14100_v33  ;;  %14103 = vst [vmem:[#allocation110_spill] sm:$0xff] %v12355_v1  ;;  %v4946_v33 = vsub.f32 %v11873_v43, %v14104_v4  ;;  %v4588_v10 = vsel %vm862_vm0, %v4465_v50, 0  ;;  %v6311_v4 = vand.u32 4294901760, %v6310_v26 }
 0x297   : > { %2285 = vmatprep.mubr.f32.mxu0 %v13681_v38  ;;  %3667 = vmatprep.mubr.f32.mxu1 %v13681_v38  ;;  %v6316_v34 = vsub.f32 %v11995_v60, %v14105_v15  ;;  %14106 = vst [vmem:[#allocation54_spill] sm:$0xff] %v12364_v23  ;;  %v6328_v20 = vsub.f32 %v11876_v22, %v14107_v13  ;;  %v14108_v15 = vand.u32 4294901760, %v11998_v27  ;;  %v4935_v40 = vand.u32 4294901760, %v4934_v56 }
 0x298   : > { %v6323_v62 = vand.u32 4294901760, %v6322_v17  ;;  %v8161_v52 = vpack.c.bf16 %v4941_v49, %v4929_v46  ;;  %v4726_v13 = vsub.f32 %v12328_v16, %v12349_v58  ;;  %v12385_v26 = vand.u32 4294901760, %v12355_v1 }
 0x299   : > { %v4952_v63 = vsub.f32 %v11998_v27, %v14108_v15  ;;  %v4947_v17 = vand.u32 4294901760, %v4946_v33  ;;  %v6317_v50 = vand.u32 4294901760, %v6316_v34  ;;  %v12388_v15 = vsub.f32 %v4585_v7, %v12364_v23  ;;  %v4467_v7 = vld [vmem:[%s13139_s3 + $0x38] sm:$0xff]  ;;  %v14116_v34 = vld [vmem:[#allocation122_spill] sm:$0xff] }
 0x29a   : > { %2287 = vmatmul.mubr.f32.gmra.mrb[30].mxu0 %v14051_v31  ;;  %3669 = vmatmul.mubr.f32.gmra.mrb[30].mxu1 %v14051_v31  ;;  %v14110_v31 = vand.u32 4294901760, %v14109_v9  ;;  %14111 = vst [vmem:[#allocation55_spill] sm:$0xff] %v12385_v26  ;;  %v12390_v12 = vand.u32 4294901760, %v4588_v10  ;;  %v6329_v27 = vand.u32 4294901760, %v6328_v20  ;;  %v14114_v46 = vand.u32 4294901760, %v12009_v36 }
 0x29b   : > { %4700 = vmatprep.mubr.f32.mxu0 %v13681_v38  ;;  %6082 = vmatprep.mubr.f32.mxu1 %v13681_v38  ;;  %v14115_v56 = vand.u32 4294901760, %v12012_v11  ;;  %v4591_v33 = vsel %vm862_vm0, %v4466_v19, 0  ;;  %v14117_v20 = vand.u32 4294901760, %v11990_v21  ;;  %v4727_v19 = vand.u32 4294901760, %v4726_v13 }
 0x29c   : > { %v4964_v29 = vsub.f32 %v14109_v9, %v14110_v31  ;;  %14112 = vst [vmem:[#allocation56_spill] sm:$0xff] %v12390_v12  ;;  %v14113_v31 = vld [vmem:[#allocation121_spill] sm:$0xff]  ;;  %v6334_v49 = vsub.f32 %v12009_v36, %v14114_v46  ;;  %v14118_v46 = vand.u32 4294901760, %v12017_v35  ;;  %v12426_v13 = vand.u32 4294901760, %v4591_v33 }
 0x29d   : > { %v6346_v58 = vsub.f32 %v12012_v11, %v14115_v56  ;;  %v4958_v16 = vsub.f32 %v11990_v21, %v14117_v20  ;;  %v4737_v56 = vsub.f32 %v12355_v1, %v12385_v26  ;;  %v12421_v20 = vand.u32 4294901760, %v12388_v15 }
 0x29e   : > { %4706 = vmatmul.mubr.f32.vlgmr.msra.gmra.mrb[32].mxu0 %v4705_v39  ;;  %6088 = vmatmul.mubr.f32.vlgmr.msra.gmra.mrb[32].mxu1 %v4705_v39  ;;  %v4965_v39 = vand.u32 4294901760, %v4964_v29  ;;  %v4970_v23 = vsub.f32 %v12017_v35, %v14118_v46  ;;  %v14120_v29 = vand.u32 4294901760, %v12047_v53  ;;  %v4594_v46 = vsel %vm862_vm0, %v4467_v7, 0 }
 0x29f   : > { %8156 = vmatpush1.bf16.msra.mxu0 %v14113_v31  ;;  %8252 = vmatpush1.bf16.msra.mxu1 %v14116_v34  ;;  %v4953_v31 = vand.u32 4294901760, %v4952_v63  ;;  %v14119_v34 = vand.u32 4294901760, %v12041_v24  ;;  %v8163_v26 = vpack.c.bf16 %v4947_v17, %v4935_v40  ;;  %v6335_v1 = vand.u32 4294901760, %v6334_v49 }
 0x2a0   : > { %8158 = vmatprep.subr.bf16.mxu0 %v8157_v51  ;;  %8254 = vmatprep.subr.bf16.mxu1 %v8253_v14  ;;  %v6352_v51 = vsub.f32 %v12047_v53, %v14120_v29  ;;  %v12424_v14 = vsub.f32 %v4588_v10, %v12390_v12  ;;  %v4468_v29 = vld [vmem:[%s13139_s3 + $0x40] sm:$0xff]  ;;  %v8259_v53 = vpack.c.bf16 %v6329_v27, %v6317_v50  ;;  %v4959_v10 = vand.u32 4294901760, %v4958_v16  ;;  %v4470_v50 = vld [vmem:[%s13139_s3 + $0x50] sm:$0xff] }
 0x2a1   : > { %4711 = vmatprep.mubr.f32.mxu0 %v13681_v38  ;;  %v6340_v63 = vsub.f32 %v12041_v24, %v14119_v34  ;;  %6093 = vmatprep.mubr.f32.mxu1 %v13681_v38  ;;  %v8257_v34 = vpack.c.bf16 %v6323_v62, %v6311_v4  ;;  %v6347_v24 = vand.u32 4294901760, %v6346_v58  ;;  %v8165_v21 = vpack.c.bf16 %v4965_v39, %v4953_v31  ;;  %v4469_v4 = vld [vmem:[%s13139_s3 + $0x48] sm:$0xff] }
 0x2a2   : > { %4717 = vmatmul.mubr.f32.gmra.mrb[34].mxu0 %v4716_v57  ;;  %6099 = vmatmul.mubr.f32.gmra.mrb[34].mxu1 %v4716_v57  ;;  %v4971_v12 = vand.u32 4294901760, %v4970_v23  ;;  %v4738_v7 = vand.u32 4294901760, %v4737_v56  ;;  %v6353_v57 = vand.u32 4294901760, %v6352_v51  ;;  %v12433_v62 = vand.u32 4294901760, %v4594_v46 }
 0x2a3   : > { %8160 = vmatpush1.bf16.msra.mxu0 %v8159_v45  ;;  %8256 = vmatpush1.bf16.msra.mxu1 %v8255_v6  ;;  %v6341_v45 = vand.u32 4294901760, %v6340_v63  ;;  %v4748_v58 = vsub.f32 %v12388_v15, %v12421_v20  ;;  %v12439_v6 = vand.u32 4294901760, %v12424_v14  ;;  %v12442_v27 = vsub.f32 %v4591_v33, %v12426_v13 }
 0x2a4   : > { %8162 = vmatprep.subr.bf16.mxu0 %v8161_v52  ;;  %8258 = vmatprep.subr.bf16.mxu1 %v8257_v34  ;;  %v4597_v16 = vsel %vm862_vm0, %v4468_v29, 0  ;;  %v8261_v23 = vpack.c.bf16 %v6347_v24, %v6335_v1  ;;  %v8167_v52 = vpack.c.bf16 %v4971_v12, %v4959_v10  ;;  %v12450_v40 = vsub.f32 %v4594_v46, %v12433_v62  ;;  %v4472_v29 = vld [vmem:[%s13139_s3 + $0x60] sm:$0xff] }
 0x2a5   : > { %4722 = vmatprep.mubr.f32.mxu0 %v13681_v38  ;;  %6104 = vmatprep.mubr.f32.mxu1 %v13681_v38  ;;  %v12452_v17 = vand.u32 4294901760, %v4597_v16  ;;  %v4749_v24 = vand.u32 4294901760, %v4748_v58  ;;  %v4600_v12 = vsel %vm862_vm0, %v4469_v4, 0  ;;  %v14122_v1 = vpack.c.bf16 %v14061_v8, %v14068_v44 }
 0x2a6   : > { %4728 = vmatmul.mubr.f32.gmra.mrb[36].mxu0 %v4727_v19  ;;  %6110 = vmatmul.mubr.f32.gmra.mrb[36].mxu1 %v4727_v19  ;;  %v14123_v49 = vpack.c.bf16 %v14064_v48, %v14071_v55  ;;  %v12472_v33 = vand.u32 4294901760, %v12450_v40  ;;  %v12480_v39 = vand.u32 4294901760, %v4600_v12  ;;  %v4603_v48 = vsel %vm862_vm0, %v4470_v50, 0  ;;  %v4471_v55 = vld [vmem:[%s13139_s3 + $0x58] sm:$0xff] }
 0x2a7   : > { %8164 = vmatpush1.bf16.msra.mxu0 %v8163_v26  ;;  %8260 = vmatpush1.bf16.msra.mxu1 %v8259_v53  ;;  %14121 = vst [vmem:[#allocation34_spill] sm:$0xff] %v12452_v17  ;;  %v8263_v26 = vpack.c.bf16 %v6353_v57, %v6341_v45  ;;  %v12458_v53 = vand.u32 4294901760, %v12442_v27  ;;  %v12475_v31 = vsub.f32 %v4597_v16, %v12452_v17  ;;  %v12496_v46 = vand.u32 4294901760, %v4603_v48 }
 0x2a8   : > { %8166 = vmatprep.subr.bf16.mxu0 %v8165_v21  ;;  %8262 = vmatprep.subr.bf16.mxu1 %v8261_v23  ;;  %v4759_v21 = vsub.f32 %v12424_v14, %v12439_v6  ;;  %14124 = vst [vmem:[#allocation35_spill] sm:$0xff] %v12480_v39  ;;  %v4781_v19 = vsub.f32 %v12450_v40, %v12472_v33  ;;  %v4606_v34 = vsel %vm862_vm0, %v4471_v55, 0  ;;  %v4609_v16 = vsel %vm862_vm0, %v4472_v29, 0  ;;  %v4473_v23 = vld [vmem:[%s13139_s3 + $0x68] sm:$0xff] }
 0x2a9   : > { %4733 = vmatprep.mubr.f32.mxu0 %v13681_v38  ;;  %6115 = vmatprep.mubr.f32.mxu1 %v13681_v38  ;;  %v4770_v44 = vsub.f32 %v12442_v27, %v12458_v53  ;;  %v12491_v56 = vand.u32 4294901760, %v12475_v31  ;;  %v12494_v51 = vsub.f32 %v4600_v12, %v12480_v39  ;;  %14125 = vst [vmem:[#allocation87_spill] sm:$0xff] %v12496_v46  ;;  %v12504_v10 = vand.u32 4294901760, %v4606_v34 }
 0x2aa   : > { %4739 = vmatmul.mubr.f32.gmra.mrb[38].mxu0 %v4738_v7  ;;  %6121 = vmatmul.mubr.f32.gmra.mrb[38].mxu1 %v4738_v7  ;;  %v4760_v8 = vand.u32 4294901760, %v4759_v21  ;;  %v4782_v7 = vand.u32 4294901760, %v4781_v19  ;;  %v12512_v58 = vsub.f32 %v4603_v48, %v12496_v46  ;;  %v12528_v21 = vand.u32 4294901760, %v4609_v16  ;;  %v4475_v19 = vld [vmem:[%s13139_s3 + $0x78] sm:$0xff] }
 0x2ab   : > { %8168 = vmatpush1.bf16.msra.mxu0 %v8167_v52  ;;  %8264 = vmatpush1.bf16.msra.mxu1 %v8263_v26  ;;  %v4771_v63 = vand.u32 4294901760, %v4770_v44  ;;  %14126 = vst [vmem:[#allocation90_spill] sm:$0xff] %v12504_v10  ;;  %v4792_v45 = vsub.f32 %v12475_v31, %v12491_v56  ;;  %v12509_v57 = vand.u32 4294901760, %v12494_v51  ;;  %v12521_v4 = vsub.f32 %v4606_v34, %v12504_v10 }
 0x2ac   : > { %8170 = vmatprep.subr.bf16.mxu0 %v14122_v1  ;;  %8266 = vmatprep.subr.bf16.mxu1 %v14123_v49  ;;  %14127 = vst [vmem:[#allocation95_spill] sm:$0xff] %v12528_v21  ;;  %v4612_v12 = vsel %vm862_vm0, %v4473_v23, 0  ;;  %v4474_v1 = vld [vmem:[%s13139_s3 + $0x70] sm:$0xff]  ;;  %v12542_v44 = vsub.f32 %v4609_v16, %v12528_v21  ;;  %v4618_v16 = vsel %vm862_vm0, %v4475_v19, 0 }
 0x2ad   : > { %4744 = vmatprep.mubr.f32.mxu0 %v13681_v38  ;;  %6126 = vmatprep.mubr.f32.mxu1 %v13681_v38  ;;  %v4793_v52 = vand.u32 4294901760, %v4792_v45  ;;  %v4803_v26 = vsub.f32 %v12494_v51, %v12509_v57  ;;  %v12537_v50 = vand.u32 4294901760, %v12521_v4  ;;  %v12544_v48 = vand.u32 4294901760, %v4612_v12 }
 0x2ae   : > { %4750 = vmatmul.mubr.f32.gmra.mrb[40].mxu0 %v4749_v24  ;;  %6132 = vmatmul.mubr.f32.gmra.mrb[40].mxu1 %v4749_v24  ;;  %v12526_v24 = vand.u32 4294901760, %v12512_v58  ;;  %v4615_v55 = vsel %vm862_vm0, %v4474_v1, 0  ;;  %v12555_v29 = vand.u32 4294901760, %v12542_v44  ;;  %v12573_v1 = vand.u32 4294901760, %v4618_v16 }
 0x2af   : > { %4755 = vmatprep.mubr.f32.mxu0 %v13681_v38  ;;  %6137 = vmatprep.mubr.f32.mxu1 %v13681_v38  ;;  %v4804_v49 = vand.u32 4294901760, %v4803_v26  ;;  %14128 = vst [vmem:[#allocation36_spill] sm:$0xff] %v12544_v48  ;;  %v12560_v45 = vand.u32 4294901760, %v4615_v55 }
 0x2b0   : > { %14130 = vst [vmem:[#allocation28_spill] sm:$0xff] %v12573_v1 }
 0x2b1   : > { %14129 = vst [vmem:[#allocation19_spill] sm:$0xff] %v12560_v45 }
 0x2b2   : > { %4761 = vmatmul.mubr.f32.gmra.mrb[42].mxu0 %v4760_v8  ;;  %6143 = vmatmul.mubr.f32.gmra.mrb[42].mxu1 %v4760_v8  ;;  %v4814_v8 = vsub.f32 %v12512_v58, %v12526_v24 }
 0x2b3   : > { %4766 = vmatprep.mubr.f32.mxu0 %v13681_v38  ;;  %6148 = vmatprep.mubr.f32.mxu1 %v13681_v38 }
 0x2b4   : > { %v4815_v34 = vand.u32 4294901760, %v4814_v8 }
 0x2b6   : > { %4772 = vmatmul.mubr.f32.gmra.mrb[44].mxu0 %v4771_v63  ;;  %6154 = vmatmul.mubr.f32.gmra.mrb[44].mxu1 %v4771_v63  ;;  %v4825_v63 = vsub.f32 %v12521_v4, %v12537_v50 }
 0x2b7   : > { %4777 = vmatprep.mubr.f32.mxu0 %v13681_v38  ;;  %6159 = vmatprep.mubr.f32.mxu1 %v13681_v38 }
 0x2b8   : > { %v4826_v23 = vand.u32 4294901760, %v4825_v63  ;;  %v12583_v63 = vsub.f32 %v4618_v16, %v12573_v1 }
 0x2ba   : > { %4783 = vmatmul.mubr.f32.gmra.mrb[46].mxu0 %v4782_v7  ;;  %6165 = vmatmul.mubr.f32.gmra.mrb[46].mxu1 %v4782_v7  ;;  %v12558_v7 = vsub.f32 %v4612_v12, %v12544_v48  ;;  %v12571_v12 = vsub.f32 %v4615_v55, %v12560_v45 }
 0x2bb   : > { %4788 = vmatprep.mubr.f32.mxu0 %v13681_v38  ;;  %6170 = vmatprep.mubr.f32.mxu1 %v13681_v38 }
 0x2bc   : > { %v12568_v26 = vand.u32 4294901760, %v12558_v7  ;;  %v12580_v19 = vand.u32 4294901760, %v12571_v12 }
 0x2be   : > { %4794 = vmatmul.mubr.f32.gmra.mrb[48].mxu0 %v4793_v52  ;;  %6176 = vmatmul.mubr.f32.gmra.mrb[48].mxu1 %v4793_v52  ;;  %v4836_v52 = vsub.f32 %v12542_v44, %v12555_v29  ;;  %v4847_v8 = vsub.f32 %v12558_v7, %v12568_v26  ;;  %14131 = vst [vmem:[#allocation14_spill] sm:$0xff] %v12580_v19 }
 0x2bf   : > { %4799 = vmatprep.mubr.f32.mxu0 %v13681_v38  ;;  %6181 = vmatprep.mubr.f32.mxu1 %v13681_v38 }
 0x2c0   : > { %v4848_v55 = vand.u32 4294901760, %v4847_v8 }
 0x2c2   : > { %4805 = vmatmul.mubr.f32.gmra.mrb[50].mxu0 %v4804_v49  ;;  %6187 = vmatmul.mubr.f32.gmra.mrb[50].mxu1 %v4804_v49  ;;  %v4837_v49 = vand.u32 4294901760, %v4836_v52  ;;  %v12590_v52 = vand.u32 4294901760, %v12583_v63 }
 0x2c3   : > { %4810 = vmatprep.mubr.f32.mxu0 %v13681_v38  ;;  %6192 = vmatprep.mubr.f32.mxu1 %v13681_v38 }
 0x2c4   : > { %14132 = vst [vmem:[#allocation21_spill] sm:$0xff] %v12590_v52 }
 0x2c6   : > { %4816 = vmatmul.mubr.f32.gmra.mrb[52].mxu0 %v4815_v34  ;;  %6198 = vmatmul.mubr.f32.gmra.mrb[52].mxu1 %v4815_v34  ;;  %v4858_v34 = vsub.f32 %v12571_v12, %v12580_v19  ;;  %v14139_v19 = vpack.c.bf16 %v11857_v2, %v11852_v25  ;;  %v14142_v25 = vpack.c.bf16 %v14091_v0, %v14089_v61  ;;  %v14147_v0 = vld [vmem:[#allocation31_spill] sm:$0xff]  ;;  %v14156_v61 = vld [vmem:[#allocation48_spill] sm:$0xff] }
 0x2c7   : > { %4821 = vmatprep.mubr.f32.mxu0 %v13681_v38  ;;  %6203 = vmatprep.mubr.f32.mxu1 %v13681_v38  ;;  %v14143_v2 = vpack.c.bf16 %v11954_v5, %v14093_v32  ;;  %v14146_v5 = vpack.c.bf16 %v11876_v22, %v11995_v60  ;;  %v14153_v22 = vld [vmem:[#allocation40_spill] sm:$0xff]  ;;  %v14154_v60 = vld [vmem:[#allocation39_spill] sm:$0xff] }
 0x2c8   : > { %v4859_v16 = vand.u32 4294901760, %v4858_v34  ;;  %v14160_v32 = vld [vmem:[#allocation103_spill] sm:$0xff] }
 0x2ca   : > { %4827 = vmatmul.mubr.f32.gmra.mrb[54].mxu0 %v4826_v23  ;;  %6209 = vmatmul.mubr.f32.gmra.mrb[54].mxu1 %v4826_v23  ;;  %v4869_v23 = vsub.f32 %v12583_v63, %v12590_v52 }
 0x2cb   : > { %4832 = vmatprep.mubr.f32.mxu0 %v13681_v38  ;;  %6214 = vmatprep.mubr.f32.mxu1 %v13681_v38 }
 0x2cc   : > { %v4870_v8 = vand.u32 4294901760, %v4869_v23  ;;  %v14136_v23 = vld [vmem:[#allocation109_spill] sm:$0xff] }
 0x2ce   : > { %4838 = vmatmul.mubr.f32.gmra.mrb[56].mxu0 %v4837_v49  ;;  %6220 = vmatmul.mubr.f32.gmra.mrb[56].mxu1 %v4837_v49  ;;  %v14133_v49 = vld [vmem:[#allocation50_spill] sm:$0xff] }
 0x2cf   : > { %4843 = vmatprep.mubr.f32.mxu0 %v13681_v38  ;;  %6225 = vmatprep.mubr.f32.mxu1 %v13681_v38 }
 0x2d2   : > { %4849 = vmatmul.mubr.f32.gmra.mrb[58].mxu0 %v4848_v55  ;;  %6231 = vmatmul.mubr.f32.gmra.mrb[58].mxu1 %v4848_v55  ;;  %v14134_v55 = vld [vmem:[#allocation93_spill] sm:$0xff] }
 0x2d3   : > { %4854 = vmatprep.mubr.f32.mxu0 %v13681_v38  ;;  %6236 = vmatprep.mubr.f32.mxu1 %v13681_v38  ;;  %v14135_v34 = vpack.c.bf16 %v14133_v49, %v14134_v55  ;;  %v14141_v49 = vpack.c.bf16 %v14086_v28, %v14084_v59  ;;  %v14149_v59 = vpack.c.bf16 %v12012_v11, %v12009_v36  ;;  %v14157_v11 = vld [vmem:[#allocation49_spill] sm:$0xff]  ;;  %v14158_v36 = vld [vmem:[#allocation54_spill] sm:$0xff] }
 0x2d4   : > { %v14164_v55 = vld [vmem:[#allocation94_spill] sm:$0xff] }
 0x2d6   : > { %4860 = vmatmul.mubr.f32.gmra.mrb[60].mxu0 %v4859_v16  ;;  %6242 = vmatmul.mubr.f32.gmra.mrb[60].mxu1 %v4859_v16  ;;  %v14137_v16 = vld [vmem:[#allocation60_spill] sm:$0xff] }
 0x2d7   : > { %4865 = vmatprep.mubr.f32.mxu0 %v13681_v38  ;;  %6247 = vmatprep.mubr.f32.mxu1 %v13681_v38  ;;  %v14138_v52 = vpack.c.bf16 %v14136_v23, %v14137_v16  ;;  %v14166_v23 = vld [vmem:[#allocation11_spill] sm:$0xff]  ;;  %v14167_v16 = vld [vmem:[#allocation9_spill] sm:$0xff] }
 0x2da   : > { %4871 = vmatmul.mubr.f32.gmra.mrb[62].mxu0 %v4870_v8  ;;  %6253 = vmatmul.mubr.f32.gmra.mrb[62].mxu1 %v4870_v8  ;;  %v14140_v8 = vpack.c.bf16 %v14082_v37, %v14080_v42  ;;  %v14144_v42 = vpack.c.bf16 %v14099_v18, %v11969_v41  ;;  %v14145_v37 = vpack.c.bf16 %v11873_v43, %v11974_v54  ;;  %v14150_v43 = vld [vmem:[#allocation37_spill] sm:$0xff]  ;;  %v14151_v54 = vld [vmem:[#allocation76_spill] sm:$0xff]  ;;  %v14161_v18 = vld [vmem:[#allocation114_spill] sm:$0xff] }
 0x2db   : > { %5021 = vmatprep.mubr.f32.mxu0 %v13681_v38  ;;  %6403 = vmatprep.mubr.f32.mxu1 %v13681_v38  ;;  %v14148_v41 = vpack.c.bf16 %v14109_v9, %v14147_v0  ;;  %v14152_v28 = vpack.c.bf16 %v12017_v35, %v14151_v54  ;;  %v14155_v9 = vpack.c.bf16 %v14153_v22, %v14154_v60  ;;  %v14159_v35 = vld [vmem:[#allocation56_spill] sm:$0xff]  ;;  %v14175_v0 = vld [vmem:[#allocation110_spill] sm:$0xff]  ;;  %v14178_v54 = vld [vmem:[#allocation123_spill] sm:$0xff]  ;;  %v785_v22 = vpop.permute.xlu1 %784 }
 0x2de   : > { %5023 = vmatmul.mubr.f32.vlgmr.msra.gmra.mrb[32].mxu0 %v12246_v3  ;;  %6405 = vmatmul.mubr.f32.vlgmr.msra.gmra.mrb[32].mxu1 %v12246_v3 }
 0x2df   : > { %8172 = vmatpush1.bf16.msra.mxu0 %v14135_v34  ;;  %8268 = vmatpush1.bf16.msra.mxu1 %v14138_v52  ;;  %v14163_v52 = vld [vmem:[#allocation91_spill] sm:$0xff]  ;;  %v14165_v34 = vld [vmem:[#allocation104_spill] sm:$0xff] }
 0x2e0   : > { %8174 = vmatprep.subr.bf16.mxu0 %v14139_v19  ;;  %8270 = vmatprep.subr.bf16.mxu1 %v14140_v8  ;;  %v14162_v19 = vld [vmem:[#allocation115_spill] sm:$0xff]  ;;  %v14168_v8 = vld [vmem:[#allocation98_spill] sm:$0xff] }
 0x2e1   : > { %5028 = vmatprep.mubr.f32.mxu0 %v13681_v38  ;;  %6410 = vmatprep.mubr.f32.mxu1 %v13681_v38 }
 0x2e2   : > { %5030 = vmatmul.mubr.f32.gmra.mrb[34].mxu0 %v12262_v30  ;;  %6412 = vmatmul.mubr.f32.gmra.mrb[34].mxu1 %v12262_v30 }
 0x2e3   : > { %8176 = vmatpush1.bf16.msra.mxu0 %v14141_v49  ;;  %8272 = vmatpush1.bf16.msra.mxu1 %v14142_v25  ;;  %v14169_v49 = vld [vmem:[#allocation74_spill] sm:$0xff] }
 0x2e4   : > { %8178 = vmatprep.subr.bf16.mxu0 %v14143_v2  ;;  %8274 = vmatprep.subr.bf16.mxu1 %v14144_v42  ;;  %v14170_v25 = vld [vmem:[#allocation106_spill] sm:$0xff]  ;;  %v14171_v2 = vld [vmem:[#allocation99_spill] sm:$0xff]  ;;  %v14172_v42 = vld [vmem:[#allocation100_spill] sm:$0xff] }
 0x2e5   : > { %5035 = vmatprep.mubr.f32.mxu0 %v13681_v38  ;;  %6417 = vmatprep.mubr.f32.mxu1 %v13681_v38 }
 0x2e6   : > { %5037 = vmatmul.mubr.f32.gmra.mrb[36].mxu0 %v12296_v47  ;;  %6419 = vmatmul.mubr.f32.gmra.mrb[36].mxu1 %v12296_v47 }
 0x2e7   : > { %8180 = vmatpush1.bf16.msra.mxu0 %v14145_v37  ;;  %8276 = vmatpush1.bf16.msra.mxu1 %v14146_v5  ;;  %v14173_v37 = vld [vmem:[#allocation12_spill] sm:$0xff]  ;;  %v14174_v5 = vld [vmem:[#allocation101_spill] sm:$0xff] }
 0x2e8   : > { %8182 = vmatprep.subr.bf16.mxu0 %v14148_v41  ;;  %8278 = vmatprep.subr.bf16.mxu1 %v14149_v59  ;;  %v14176_v41 = vld [vmem:[#allocation102_spill] sm:$0xff]  ;;  %v14177_v59 = vld [vmem:[#allocation24_spill] sm:$0xff] }
 0x2e9   : > { %5042 = vmatprep.mubr.f32.mxu0 %v13681_v38  ;;  %6424 = vmatprep.mubr.f32.mxu1 %v13681_v38 }
 0x2ea   : > { %5044 = vmatmul.mubr.f32.gmra.mrb[38].mxu0 %v14150_v43  ;;  %6426 = vmatmul.mubr.f32.gmra.mrb[38].mxu1 %v14150_v43 }
 0x2eb   : > { %8184 = vmatpush1.bf16.msra.mxu0 %v14152_v28  ;;  %8280 = vmatpush1.bf16.msra.mxu1 %v14155_v9  ;;  %v14179_v28 = vld [vmem:[#allocation124_spill] sm:$0xff] }
 0x2ec   : > { %8186 = vmatprep.subr.bf16.mxu0 %v14156_v61  ;;  %8282 = vmatprep.subr.bf16.mxu1 %v14157_v11 }
 0x2ed   : > { %5049 = vmatprep.mubr.f32.mxu0 %v13681_v38  ;;  %6431 = vmatprep.mubr.f32.mxu1 %v13681_v38 }
 0x2ee   : > { %5051 = vmatmul.mubr.f32.gmra.mrb[40].mxu0 %v14158_v36  ;;  %6433 = vmatmul.mubr.f32.gmra.mrb[40].mxu1 %v14158_v36 }
 0x2ef   : > { %5056 = vmatprep.mubr.f32.mxu0 %v13681_v38  ;;  %6438 = vmatprep.mubr.f32.mxu1 %v13681_v38 }
 0x2f2   : > { %5058 = vmatmul.mubr.f32.gmra.mrb[42].mxu0 %v14159_v35  ;;  %6440 = vmatmul.mubr.f32.gmra.mrb[42].mxu1 %v14159_v35 }
 0x2f3   : > { %5063 = vmatprep.mubr.f32.mxu0 %v13681_v38  ;;  %6445 = vmatprep.mubr.f32.mxu1 %v13681_v38 }
 0x2f6   : > { %5065 = vmatmul.mubr.f32.gmra.mrb[44].mxu0 %v12426_v13  ;;  %6447 = vmatmul.mubr.f32.gmra.mrb[44].mxu1 %v12426_v13 }
 0x2f7   : > { %5070 = vmatprep.mubr.f32.mxu0 %v13681_v38  ;;  %6452 = vmatprep.mubr.f32.mxu1 %v13681_v38 }
 0x2fa   : > { %5072 = vmatmul.mubr.f32.gmra.mrb[46].mxu0 %v12433_v62  ;;  %6454 = vmatmul.mubr.f32.gmra.mrb[46].mxu1 %v12433_v62 }
 0x2fb   : > { %5077 = vmatprep.mubr.f32.mxu0 %v13681_v38  ;;  %6459 = vmatprep.mubr.f32.mxu1 %v13681_v38 }
 0x2fe   : > { %5079 = vmatmul.mubr.f32.gmra.mrb[48].mxu0 %v12452_v17  ;;  %6461 = vmatmul.mubr.f32.gmra.mrb[48].mxu1 %v12452_v17 }
 0x2ff   : > { %5084 = vmatprep.mubr.f32.mxu0 %v13681_v38  ;;  %6466 = vmatprep.mubr.f32.mxu1 %v13681_v38 }
 0x302   : > { %5086 = vmatmul.mubr.f32.gmra.mrb[50].mxu0 %v12480_v39  ;;  %6468 = vmatmul.mubr.f32.gmra.mrb[50].mxu1 %v12480_v39 }
 0x303   : > { %5091 = vmatprep.mubr.f32.mxu0 %v13681_v38  ;;  %6473 = vmatprep.mubr.f32.mxu1 %v13681_v38 }
 0x306   : > { %5093 = vmatmul.mubr.f32.gmra.mrb[52].mxu0 %v12496_v46  ;;  %6475 = vmatmul.mubr.f32.gmra.mrb[52].mxu1 %v12496_v46 }
 0x307   : > { %5098 = vmatprep.mubr.f32.mxu0 %v13681_v38  ;;  %6480 = vmatprep.mubr.f32.mxu1 %v13681_v38 }
 0x30a   : > { %5100 = vmatmul.mubr.f32.gmra.mrb[54].mxu0 %v12504_v10  ;;  %6482 = vmatmul.mubr.f32.gmra.mrb[54].mxu1 %v12504_v10 }
 0x30b   : > { %5105 = vmatprep.mubr.f32.mxu0 %v13681_v38  ;;  %6487 = vmatprep.mubr.f32.mxu1 %v13681_v38 }
 0x30e   : > { %5107 = vmatmul.mubr.f32.gmra.mrb[56].mxu0 %v12528_v21  ;;  %6489 = vmatmul.mubr.f32.gmra.mrb[56].mxu1 %v12528_v21 }
 0x30f   : > { %5112 = vmatprep.mubr.f32.mxu0 %v13681_v38  ;;  %6494 = vmatprep.mubr.f32.mxu1 %v13681_v38 }
 0x312   : > { %5114 = vmatmul.mubr.f32.gmra.mrb[58].mxu0 %v12544_v48  ;;  %6496 = vmatmul.mubr.f32.gmra.mrb[58].mxu1 %v12544_v48 }
 0x313   : > { %5119 = vmatprep.mubr.f32.mxu0 %v13681_v38  ;;  %6501 = vmatprep.mubr.f32.mxu1 %v13681_v38 }
 0x316   : > { %5121 = vmatmul.mubr.f32.gmra.mrb[60].mxu0 %v12560_v45  ;;  %6503 = vmatmul.mubr.f32.gmra.mrb[60].mxu1 %v12560_v45 }
 0x317   : > { %5126 = vmatprep.mubr.f32.mxu0 %v13681_v38  ;;  %6508 = vmatprep.mubr.f32.mxu1 %v13681_v38 }
 0x31a   : > { %5128 = vmatmul.mubr.f32.gmra.mrb[62].mxu0 %v12573_v1  ;;  %6510 = vmatmul.mubr.f32.gmra.mrb[62].mxu1 %v12573_v1  ;;  %v790_v1 = vpop.permute.xlu0 %789 }
 0x31b   : > { %5230 = vmatprep.mubr.f32.mxu0 %v13681_v38  ;;  %6612 = vmatprep.mubr.f32.mxu1 %v13681_v38 }
 0x31e   : > { %5233 = vmatmul.mubr.f32.vlgmr.msra.gmra.mrb[32].mxu0 %v14160_v32  ;;  %6615 = vmatmul.mubr.f32.vlgmr.msra.gmra.mrb[32].mxu1 %v14160_v32 }
 0x31f   : > { %8188 = vmatpush1.bf16.msra.mxu0 %v14161_v18  ;;  %8284 = vmatpush1.bf16.msra.mxu1 %v14162_v19 }
 0x320   : > { %8190 = vmatprep.subr.bf16.mxu0 %v14163_v52  ;;  %8286 = vmatprep.subr.bf16.mxu1 %v14164_v55 }
 0x321   : > { %5238 = vmatprep.mubr.f32.mxu0 %v13681_v38  ;;  %6620 = vmatprep.mubr.f32.mxu1 %v13681_v38 }
 0x322   : > { %5241 = vmatmul.mubr.f32.gmra.mrb[34].mxu0 %v14165_v34  ;;  %6623 = vmatmul.mubr.f32.gmra.mrb[34].mxu1 %v14165_v34 }
 0x323   : > { %8192 = vmatpush1.bf16.msra.mxu0 %v14166_v23  ;;  %8288 = vmatpush1.bf16.msra.mxu1 %v14167_v16 }
 0x324   : > { %8194 = vmatprep.subr.bf16.mxu0 %v14168_v8  ;;  %8290 = vmatprep.subr.bf16.mxu1 %v14169_v49 }
 0x325   : > { %5246 = vmatprep.mubr.f32.mxu0 %v13681_v38  ;;  %6628 = vmatprep.mubr.f32.mxu1 %v13681_v38 }
 0x326   : > { %5249 = vmatmul.mubr.f32.gmra.mrb[36].mxu0 %v14170_v25  ;;  %6631 = vmatmul.mubr.f32.gmra.mrb[36].mxu1 %v14170_v25 }
 0x327   : > { %8196 = vmatpush1.bf16.msra.mxu0 %v14171_v2  ;;  %8292 = vmatpush1.bf16.msra.mxu1 %v14172_v42 }
 0x328   : > { %8198 = vmatprep.subr.bf16.mxu0 %v14173_v37  ;;  %8294 = vmatprep.subr.bf16.mxu1 %v14174_v5 }
 0x329   : > { %5254 = vmatprep.mubr.f32.mxu0 %v13681_v38  ;;  %6636 = vmatprep.mubr.f32.mxu1 %v13681_v38 }
 0x32a   : > { %5257 = vmatmul.mubr.f32.gmra.mrb[38].mxu0 %v14175_v0  ;;  %6639 = vmatmul.mubr.f32.gmra.mrb[38].mxu1 %v14175_v0 }
 0x32b   : > { %8200 = vmatpush1.bf16.msra.mxu0 %v14176_v41  ;;  %8296 = vmatpush1.bf16.msra.mxu1 %v14177_v59 }
 0x32c   : > { %8202 = vmatprep.subr.bf16.mxu0 %v14178_v54  ;;  %8298 = vmatprep.subr.bf16.mxu1 %v14179_v28 }
 0x32d   : > { %5262 = vmatprep.mubr.f32.mxu0 %v13681_v38  ;;  %6644 = vmatprep.mubr.f32.mxu1 %v13681_v38 }
 0x32e   : > { %5265 = vmatmul.mubr.f32.gmra.mrb[40].mxu0 %v12388_v15  ;;  %6647 = vmatmul.mubr.f32.gmra.mrb[40].mxu1 %v12388_v15 }
 0x32f   : > { %5270 = vmatprep.mubr.f32.mxu0 %v13681_v38  ;;  %6652 = vmatprep.mubr.f32.mxu1 %v13681_v38 }
 0x331   : > { %v2183_v60 = vpop.f32.mrb[0].mxu0  ;;  %v3565_v32 = vpop.f32.mrb[0].mxu1 }
 0x332   : > { %v8329_v9 = vadd.f32 %v2183_v60, %v785_v22  ;;  %v2185_v34 = vpop.f32.mrb[1].mxu0  ;;  %5273 = vmatmul.mubr.f32.gmra.mrb[42].mxu0 %v12424_v14  ;;  %v8361_v25 = vadd.f32 %v3565_v32, %v785_v22  ;;  %v3567_v54 = vpop.f32.mrb[1].mxu1  ;;  %6655 = vmatmul.mubr.f32.gmra.mrb[42].mxu1 %v12424_v14 }
 0x333   : > { %v8330_v0 = vadd.f32 %v2185_v34, %v785_v22  ;;  %5278 = vmatprep.mubr.f32.mxu0 %v13681_v38  ;;  %v8362_v28 = vadd.f32 %v3567_v54, %v785_v22  ;;  %6660 = vmatprep.mubr.f32.mxu1 %v13681_v38 }
 0x334   : > { %v3675_v15 = vmax.f32 %v8329_v9, 0.0  ;;  %v3677_v45 = vmax.f32 %v8361_v25, 0.0  ;;  %v795_v25 = vpop.permute.xlu1 %794 }
 0x335   : > { %v3676_v60 = vmax.f32 %v8330_v0, 0.0  ;;  %v2190_v48 = vpop.f32.mrb[2].mxu0  ;;  %v3678_v21 = vmax.f32 %v8362_v28, 0.0  ;;  %v3572_v46 = vpop.f32.mrb[2].mxu1 }
 0x336   : > { %v8331_v10 = vadd.f32 %v2190_v48, %v790_v1  ;;  %v2192_v32 = vpop.f32.mrb[3].mxu0  ;;  %5281 = vmatmul.mubr.f32.gmra.mrb[44].mxu0 %v12442_v27  ;;  %v8363_v39 = vadd.f32 %v3572_v46, %v790_v1  ;;  %v3574_v14 = vpop.f32.mrb[3].mxu1  ;;  %6663 = vmatmul.mubr.f32.gmra.mrb[44].mxu1 %v12442_v27 }
 0x337   : > { %v7880_v34 = vpack.c.bf16 %v3676_v60, %v3675_v15  ;;  %v8332_v17 = vadd.f32 %v2192_v32, %v790_v1  ;;  %5286 = vmatprep.mubr.f32.mxu0 %v13681_v38  ;;  %v7881_v22 = vpack.c.bf16 %v3678_v21, %v3677_v45  ;;  %v8364_v54 = vadd.f32 %v3574_v14, %v790_v1 }
 0x338   : > { %v3679_v9 = vmax.f32 %v8331_v10, 0.0  ;;  %6668 = vmatprep.mubr.f32.mxu1 %v13681_v38  ;;  %v3681_v48 = vmax.f32 %v8363_v39, 0.0 }
 0x339   : > { %3931 = vst [vmem:[%s12757_s12] sm:$0xff] %v7880_v34  ;;  %v3680_v0 = vmax.f32 %v8332_v17, 0.0  ;;  %v2197_v46 = vpop.f32.mrb[4].mxu0  ;;  %3932 = vst [vmem:[%s12757_s12 + $0x8] sm:$0xff] %v7881_v22  ;;  %v3682_v15 = vmax.f32 %v8364_v54, 0.0  ;;  %v3579_v28 = vpop.f32.mrb[4].mxu1 }
 0x33a   : > { %v8333_v27 = vadd.f32 %v2197_v46, %v795_v25  ;;  %v2199_v60 = vpop.f32.mrb[5].mxu0  ;;  %5289 = vmatmul.mubr.f32.gmra.mrb[46].mxu0 %v12450_v40  ;;  %v8365_v21 = vadd.f32 %v3579_v28, %v795_v25  ;;  %v3581_v1 = vpop.f32.mrb[5].mxu1  ;;  %6671 = vmatmul.mubr.f32.gmra.mrb[46].mxu1 %v12450_v40 }
 0x33b   : > { %v7882_v10 = vpack.c.bf16 %v3680_v0, %v3679_v9  ;;  %v8334_v45 = vadd.f32 %v2199_v60, %v795_v25  ;;  %5294 = vmatprep.mubr.f32.mxu0 %v13681_v38  ;;  %v7883_v39 = vpack.c.bf16 %v3682_v15, %v3681_v48  ;;  %v8366_v32 = vadd.f32 %v3581_v1, %v795_v25  ;;  %v800_v34 = vpop.permute.xlu0 %799 }
 0x33c   : > { %v3683_v17 = vmax.f32 %v8333_v27, 0.0  ;;  %6676 = vmatprep.mubr.f32.mxu1 %v13681_v38  ;;  %v3685_v14 = vmax.f32 %v8365_v21, 0.0  ;;  %v805_v21 = vpop.permute.xlu1 %804 }
 0x33d   : > { %3933 = vst [vmem:[%s12757_s12 + $0x20] sm:$0xff] %v7882_v10  ;;  %v3684_v22 = vmax.f32 %v8334_v45, 0.0  ;;  %v2204_v54 = vpop.f32.mrb[6].mxu0  ;;  %3934 = vst [vmem:[%s12757_s12 + $0x28] sm:$0xff] %v7883_v39  ;;  %v3686_v46 = vmax.f32 %v8366_v32, 0.0  ;;  %v3586_v0 = vpop.f32.mrb[6].mxu1 }
 0x33e   : > { %v8335_v9 = vadd.f32 %v2204_v54, %v800_v34  ;;  %v2206_v28 = vpop.f32.mrb[7].mxu0  ;;  %5297 = vmatmul.mubr.f32.gmra.mrb[48].mxu0 %v12475_v31  ;;  %v8367_v48 = vadd.f32 %v3586_v0, %v800_v34  ;;  %v3588_v25 = vpop.f32.mrb[7].mxu1  ;;  %6679 = vmatmul.mubr.f32.gmra.mrb[48].mxu1 %v12475_v31 }
 0x33f   : > { %v7884_v40 = vpack.c.bf16 %v3684_v22, %v3683_v17  ;;  %v8336_v15 = vadd.f32 %v2206_v28, %v800_v34  ;;  %5302 = vmatprep.mubr.f32.mxu0 %v13681_v38  ;;  %v7885_v27 = vpack.c.bf16 %v3686_v46, %v3685_v14  ;;  %v8368_v10 = vadd.f32 %v3588_v25, %v800_v34 }
 0x340   : > { %v3687_v60 = vmax.f32 %v8335_v9, 0.0  ;;  %6684 = vmatprep.mubr.f32.mxu1 %v13681_v38  ;;  %v3689_v45 = vmax.f32 %v8367_v48, 0.0 }
 0x341   : > { %3935 = vst [vmem:[%s12757_s12 + $0x40] sm:$0xff] %v7884_v40  ;;  %v3688_v1 = vmax.f32 %v8336_v15, 0.0  ;;  %v2211_v39 = vpop.f32.mrb[8].mxu0  ;;  %3936 = vst [vmem:[%s12757_s12 + $0x48] sm:$0xff] %v7885_v27  ;;  %v3690_v32 = vmax.f32 %v8368_v10, 0.0  ;;  %v3593_v22 = vpop.f32.mrb[8].mxu1 }
 0x342   : > { %v8337_v17 = vadd.f32 %v2211_v39, %v805_v21  ;;  %v2213_v54 = vpop.f32.mrb[9].mxu0  ;;  %5305 = vmatmul.mubr.f32.gmra.mrb[50].mxu0 %v12494_v51  ;;  %v8369_v14 = vadd.f32 %v3593_v22, %v805_v21  ;;  %v3595_v34 = vpop.f32.mrb[9].mxu1  ;;  %6687 = vmatmul.mubr.f32.gmra.mrb[50].mxu1 %v12494_v51 }
 0x343   : > { %v7886_v31 = vpack.c.bf16 %v3688_v1, %v3687_v60  ;;  %v8338_v46 = vadd.f32 %v2213_v54, %v805_v21  ;;  %5310 = vmatprep.mubr.f32.mxu0 %v13681_v38  ;;  %v7887_v9 = vpack.c.bf16 %v3690_v32, %v3689_v45  ;;  %v8370_v28 = vadd.f32 %v3595_v34, %v805_v21  ;;  %v810_v40 = vpop.permute.xlu0 %809  ;;  %v815_v54 = vpop.permute.xlu1 %814 }
 0x344   : > { %v3691_v0 = vmax.f32 %v8337_v17, 0.0  ;;  %6692 = vmatprep.mubr.f32.mxu1 %v13681_v38  ;;  %v3693_v48 = vmax.f32 %v8369_v14, 0.0 }
 0x345   : > { %3937 = vst [vmem:[%s12757_s12 + $0x60] sm:$0xff] %v7886_v31  ;;  %v3692_v15 = vmax.f32 %v8338_v46, 0.0  ;;  %v2218_v25 = vpop.f32.mrb[10].mxu0  ;;  %3938 = vst [vmem:[%s12757_s12 + $0x68] sm:$0xff] %v7887_v9  ;;  %v3694_v27 = vmax.f32 %v8370_v28, 0.0  ;;  %v3600_v10 = vpop.f32.mrb[10].mxu1 }
 0x346   : > { %v8339_v60 = vadd.f32 %v2218_v25, %v810_v40  ;;  %v2220_v1 = vpop.f32.mrb[11].mxu0  ;;  %5313 = vmatmul.mubr.f32.gmra.mrb[52].mxu0 %v12512_v58  ;;  %v8371_v45 = vadd.f32 %v3600_v10, %v810_v40  ;;  %v3602_v21 = vpop.f32.mrb[11].mxu1  ;;  %6695 = vmatmul.mubr.f32.gmra.mrb[52].mxu1 %v12512_v58 }
 0x347   : > { %v7888_v51 = vpack.c.bf16 %v3692_v15, %v3691_v0  ;;  %v8340_v39 = vadd.f32 %v2220_v1, %v810_v40  ;;  %5318 = vmatprep.mubr.f32.mxu0 %v13681_v38  ;;  %v7889_v32 = vpack.c.bf16 %v3694_v27, %v3693_v48  ;;  %v8372_v22 = vadd.f32 %v3602_v21, %v810_v40  ;;  %v820_v10 = vpop.permute.xlu0 %819 }
 0x348   : > { %v3695_v17 = vmax.f32 %v8339_v60, 0.0  ;;  %6700 = vmatprep.mubr.f32.mxu1 %v13681_v38  ;;  %v3697_v31 = vmax.f32 %v8371_v45, 0.0 }
 0x349   : > { %3939 = vst [vmem:[%s12757_s12 + $0x80] sm:$0xff] %v7888_v51  ;;  %v3696_v14 = vmax.f32 %v8340_v39, 0.0  ;;  %v2225_v46 = vpop.f32.mrb[12].mxu0  ;;  %3940 = vst [vmem:[%s12757_s12 + $0x88] sm:$0xff] %v7889_v32  ;;  %v3698_v34 = vmax.f32 %v8372_v22, 0.0  ;;  %v3607_v0 = vpop.f32.mrb[12].mxu1 }
 0x34a   : > { %v8341_v9 = vadd.f32 %v2225_v46, %v815_v54  ;;  %v2227_v28 = vpop.f32.mrb[13].mxu0  ;;  %5321 = vmatmul.mubr.f32.gmra.mrb[54].mxu0 %v12521_v4  ;;  %v8373_v48 = vadd.f32 %v3607_v0, %v815_v54  ;;  %v3609_v40 = vpop.f32.mrb[13].mxu1  ;;  %6703 = vmatmul.mubr.f32.gmra.mrb[54].mxu1 %v12521_v4 }
 0x34b   : > { %v7890_v58 = vpack.c.bf16 %v3696_v14, %v3695_v17  ;;  %v8342_v15 = vadd.f32 %v2227_v28, %v815_v54  ;;  %5326 = vmatprep.mubr.f32.mxu0 %v13681_v38  ;;  %v7891_v25 = vpack.c.bf16 %v3698_v34, %v3697_v31  ;;  %v8374_v60 = vadd.f32 %v3609_v40, %v815_v54 }
 0x34c   : > { %v3699_v27 = vmax.f32 %v8341_v9, 0.0  ;;  %6708 = vmatprep.mubr.f32.mxu1 %v13681_v38  ;;  %v3701_v1 = vmax.f32 %v8373_v48, 0.0  ;;  %v825_v9 = vpop.permute.xlu1 %824 }
 0x34d   : > { %3941 = vst [vmem:[%s12757_s12 + $0xa0] sm:$0xff] %v7890_v58  ;;  %v3700_v51 = vmax.f32 %v8342_v15, 0.0  ;;  %v2232_v45 = vpop.f32.mrb[14].mxu0  ;;  %3942 = vst [vmem:[%s12757_s12 + $0xa8] sm:$0xff] %v7891_v25  ;;  %v3702_v39 = vmax.f32 %v8374_v60, 0.0  ;;  %v3614_v32 = vpop.f32.mrb[14].mxu1 }
 0x34e   : > { %v8343_v21 = vadd.f32 %v2232_v45, %v820_v10  ;;  %v2234_v17 = vpop.f32.mrb[15].mxu0  ;;  %5329 = vmatmul.mubr.f32.gmra.mrb[56].mxu0 %v12542_v44  ;;  %v8375_v22 = vadd.f32 %v3614_v32, %v820_v10  ;;  %v3616_v54 = vpop.f32.mrb[15].mxu1  ;;  %6711 = vmatmul.mubr.f32.gmra.mrb[56].mxu1 %v12542_v44 }
 0x34f   : > { %v7892_v4 = vpack.c.bf16 %v3700_v51, %v3699_v27  ;;  %v8344_v31 = vadd.f32 %v2234_v17, %v820_v10  ;;  %5334 = vmatprep.mubr.f32.mxu0 %v13681_v38  ;;  %v7893_v14 = vpack.c.bf16 %v3702_v39, %v3701_v1  ;;  %v8376_v34 = vadd.f32 %v3616_v54, %v820_v10  ;;  %v830_v39 = vpop.permute.xlu0 %829 }
 0x350   : > { %v3703_v46 = vmax.f32 %v8343_v21, 0.0  ;;  %6716 = vmatprep.mubr.f32.mxu1 %v13681_v38  ;;  %v3705_v0 = vmax.f32 %v8375_v22, 0.0 }
 0x351   : > { %3943 = vst [vmem:[%s12757_s12 + $0xc0] sm:$0xff] %v7892_v4  ;;  %v3704_v28 = vmax.f32 %v8344_v31, 0.0  ;;  %v2239_v58 = vpop.f32.mrb[16].mxu0  ;;  %3944 = vst [vmem:[%s12757_s12 + $0xc8] sm:$0xff] %v7893_v14  ;;  %v3706_v48 = vmax.f32 %v8376_v34, 0.0  ;;  %v3621_v40 = vpop.f32.mrb[16].mxu1 }
 0x352   : > { %v8345_v15 = vadd.f32 %v2239_v58, %v825_v9  ;;  %v2241_v25 = vpop.f32.mrb[17].mxu0  ;;  %5337 = vmatmul.mubr.f32.gmra.mrb[58].mxu0 %v12558_v7  ;;  %v8377_v27 = vadd.f32 %v3621_v40, %v825_v9  ;;  %v3623_v10 = vpop.f32.mrb[17].mxu1  ;;  %6719 = vmatmul.mubr.f32.gmra.mrb[58].mxu1 %v12558_v7 }
 0x353   : > { %v7894_v44 = vpack.c.bf16 %v3704_v28, %v3703_v46  ;;  %v8346_v60 = vadd.f32 %v2241_v25, %v825_v9  ;;  %5342 = vmatprep.mubr.f32.mxu0 %v13681_v38  ;;  %v7895_v1 = vpack.c.bf16 %v3706_v48, %v3705_v0  ;;  %v8378_v45 = vadd.f32 %v3623_v10, %v825_v9  ;;  %v835_v58 = vpop.permute.xlu1 %834 }
 0x354   : > { %v3707_v51 = vmax.f32 %v8345_v15, 0.0  ;;  %6724 = vmatprep.mubr.f32.mxu1 %v13681_v38  ;;  %v3709_v21 = vmax.f32 %v8377_v27, 0.0 }
 0x355   : > { %3945 = vst [vmem:[%s12757_s12 + $0xe0] sm:$0xff] %v7894_v44  ;;  %v3708_v32 = vmax.f32 %v8346_v60, 0.0  ;;  %v2246_v17 = vpop.f32.mrb[18].mxu0  ;;  %3946 = vst [vmem:[%s12757_s12 + $0xe8] sm:$0xff] %v7895_v1  ;;  %v3710_v4 = vmax.f32 %v8378_v45, 0.0  ;;  %v3628_v31 = vpop.f32.mrb[18].mxu1 }
 0x356   : > { %v8347_v22 = vadd.f32 %v2246_v17, %v830_v39  ;;  %v2248_v54 = vpop.f32.mrb[19].mxu0  ;;  %5345 = vmatmul.mubr.f32.gmra.mrb[60].mxu0 %v12571_v12  ;;  %v8379_v14 = vadd.f32 %v3628_v31, %v830_v39  ;;  %v3630_v34 = vpop.f32.mrb[19].mxu1  ;;  %6727 = vmatmul.mubr.f32.gmra.mrb[60].mxu1 %v12571_v12 }
 0x357   : > { %v7896_v7 = vpack.c.bf16 %v3708_v32, %v3707_v51  ;;  %v8348_v46 = vadd.f32 %v2248_v54, %v830_v39  ;;  %5350 = vmatprep.mubr.f32.mxu0 %v13681_v38  ;;  %v7897_v9 = vpack.c.bf16 %v3710_v4, %v3709_v21  ;;  %v8380_v28 = vadd.f32 %v3630_v34, %v830_v39  ;;  %v840_v32 = vpop.permute.xlu0 %839 }
 0x358   : > { %v3711_v0 = vmax.f32 %v8347_v22, 0.0  ;;  %6732 = vmatprep.mubr.f32.mxu1 %v13681_v38  ;;  %v3713_v48 = vmax.f32 %v8379_v14, 0.0 }
 0x359   : > { %3947 = vst [vmem:[%s12757_s12 + $0x100] sm:$0xff] %v7896_v7  ;;  %v3712_v15 = vmax.f32 %v8348_v46, 0.0  ;;  %v2253_v40 = vpop.f32.mrb[20].mxu0  ;;  %3948 = vst [vmem:[%s12757_s12 + $0x108] sm:$0xff] %v7897_v9  ;;  %v3714_v25 = vmax.f32 %v8380_v28, 0.0  ;;  %v3635_v27 = vpop.f32.mrb[20].mxu1 }
 0x35a   : > { %v8349_v44 = vadd.f32 %v2253_v40, %v835_v58  ;;  %v2255_v60 = vpop.f32.mrb[21].mxu0  ;;  %5353 = vmatmul.mubr.f32.gmra.mrb[62].mxu0 %v12583_v63  ;;  %v8381_v10 = vadd.f32 %v3635_v27, %v835_v58  ;;  %v3637_v51 = vpop.f32.mrb[21].mxu1  ;;  %6735 = vmatmul.mubr.f32.gmra.mrb[62].mxu1 %v12583_v63  ;;  %v14180_v46 = vld [vmem:[#allocation29_spill] sm:$0xff]  ;;  %v14182_v40 = vld [vmem:[#allocation126_spill] sm:$0xff] }
 0x35b   : > { %v7898_v12 = vpack.c.bf16 %v3712_v15, %v3711_v0  ;;  %v8350_v1 = vadd.f32 %v2255_v60, %v835_v58  ;;  %5439 = vmatprep.mubr.f32.mxu0 %v13681_v38  ;;  %v7899_v45 = vpack.c.bf16 %v3714_v25, %v3713_v48  ;;  %v8382_v21 = vadd.f32 %v3637_v51, %v835_v58  ;;  %v14181_v28 = vld [vmem:[#allocation125_spill] sm:$0xff]  ;;  %v14183_v25 = vld [vmem:[#allocation66_spill] sm:$0xff] }
 0x35c   : > { %v3715_v39 = vmax.f32 %v8349_v44, 0.0  ;;  %6821 = vmatprep.mubr.f32.mxu1 %v13681_v38  ;;  %v3717_v17 = vmax.f32 %v8381_v10, 0.0  ;;  %v845_v44 = vpop.permute.xlu1 %844 }
 0x35d   : > { %3949 = vst [vmem:[%s12757_s12 + $0x120] sm:$0xff] %v7898_v12  ;;  %v3716_v4 = vmax.f32 %v8350_v1, 0.0  ;;  %v2260_v22 = vpop.f32.mrb[22].mxu0  ;;  %3950 = vst [vmem:[%s12757_s12 + $0x128] sm:$0xff] %v7899_v45  ;;  %v3718_v31 = vmax.f32 %v8382_v21, 0.0  ;;  %v3642_v7 = vpop.f32.mrb[22].mxu1 }
 0x35e   : > { %v8351_v54 = vadd.f32 %v2260_v22, %v840_v32  ;;  %v2262_v14 = vpop.f32.mrb[23].mxu0  ;;  %5443 = vmatmul.mubr.f32.vlgmr.msra.gmra.mrb[32].mxu0 %v14180_v46  ;;  %v8383_v34 = vadd.f32 %v3642_v7, %v840_v32  ;;  %v3644_v0 = vpop.f32.mrb[23].mxu1  ;;  %6825 = vmatmul.mubr.f32.vlgmr.msra.gmra.mrb[32].mxu1 %v14180_v46  ;;  %v14184_v12 = vld [vmem:[#allocation67_spill] sm:$0xff]  ;;  %v14185_v21 = vld [vmem:[#allocation105_spill] sm:$0xff] }
 0x35f   : > { %v7900_v63 = vpack.c.bf16 %v3716_v4, %v3715_v39  ;;  %v8352_v9 = vadd.f32 %v2262_v14, %v840_v32  ;;  %8204 = vmatpush1.bf16.msra.mxu0 %v14181_v28  ;;  %v7901_v58 = vpack.c.bf16 %v3718_v31, %v3717_v17  ;;  %v8384_v15 = vadd.f32 %v3644_v0, %v840_v32  ;;  %v14186_v31 = vld [vmem:[#allocation72_spill] sm:$0xff]  ;;  %v14187_v46 = vld [vmem:[#allocation73_spill] sm:$0xff] }
 0x360   : > { %v3719_v48 = vmax.f32 %v8351_v54, 0.0  ;;  %8300 = vmatpush1.bf16.msra.mxu1 %v14182_v40  ;;  %8206 = vmatprep.subr.bf16.mxu0 %v14183_v25  ;;  %v3721_v27 = vmax.f32 %v8383_v34, 0.0  ;;  %v850_v34 = vpop.permute.xlu0 %849  ;;  %v14189_v28 = vld [vmem:[#allocation45_spill] sm:$0xff] }
 0x361   : > { %3951 = vst [vmem:[%s12757_s12 + $0x140] sm:$0xff] %v7900_v63  ;;  %v3720_v60 = vmax.f32 %v8352_v9, 0.0  ;;  %8302 = vmatprep.subr.bf16.mxu1 %v14184_v12  ;;  %v2267_v10 = vpop.f32.mrb[24].mxu0  ;;  %5448 = vmatprep.mubr.f32.mxu0 %v13681_v38  ;;  %3952 = vst [vmem:[%s12757_s12 + $0x148] sm:$0xff] %v7901_v58  ;;  %v3722_v1 = vmax.f32 %v8384_v15, 0.0  ;;  %v3649_v45 = vpop.f32.mrb[24].mxu1 }
 0x362   : > { %v8353_v51 = vadd.f32 %v2267_v10, %v845_v44  ;;  %6830 = vmatprep.mubr.f32.mxu1 %v13681_v38  ;;  %v2269_v39 = vpop.f32.mrb[25].mxu0  ;;  %5452 = vmatmul.mubr.f32.gmra.mrb[34].mxu0 %v14185_v21  ;;  %v8385_v17 = vadd.f32 %v3649_v45, %v845_v44  ;;  %v3651_v22 = vpop.f32.mrb[25].mxu1  ;;  %v14188_v63 = vld [vmem:[#allocation59_spill] sm:$0xff] }
 0x363   : > { %v7902_v32 = vpack.c.bf16 %v3720_v60, %v3719_v48  ;;  %v8354_v4 = vadd.f32 %v2269_v39, %v845_v44  ;;  %8208 = vmatpush1.bf16.msra.mxu0 %v14186_v31  ;;  %6834 = vmatmul.mubr.f32.gmra.mrb[34].mxu1 %v14185_v21  ;;  %v7903_v54 = vpack.c.bf16 %v3722_v1, %v3721_v27  ;;  %v14191_v1 = vld [vmem:[#allocation46_spill] sm:$0xff]  ;;  %v14192_v21 = vld [vmem:[#allocation47_spill] sm:$0xff]  ;;  %v14194_v31 = vld [vmem:[#allocation32_spill] sm:$0xff] }
 0x364   : > { %v3723_v7 = vmax.f32 %v8353_v51, 0.0  ;;  %v8386_v14 = vadd.f32 %v3651_v22, %v845_v44  ;;  %8304 = vmatpush1.bf16.msra.mxu1 %v14187_v46  ;;  %8210 = vmatprep.subr.bf16.mxu0 %v14188_v63  ;;  %v3725_v9 = vmax.f32 %v8385_v17, 0.0  ;;  %v14190_v44 = vld [vmem:[#allocation107_spill] sm:$0xff]  ;;  %v855_v17 = vpop.permute.xlu1 %854 }
 0x365   : > { %3953 = vst [vmem:[%s12757_s12 + $0x160] sm:$0xff] %v7902_v32  ;;  %v3724_v0 = vmax.f32 %v8354_v4, 0.0  ;;  %8306 = vmatprep.subr.bf16.mxu1 %v14189_v28  ;;  %v2274_v58 = vpop.f32.mrb[26].mxu0  ;;  %5457 = vmatprep.mubr.f32.mxu0 %v13681_v38  ;;  %3954 = vst [vmem:[%s12757_s12 + $0x168] sm:$0xff] %v7903_v54  ;;  %v3656_v40 = vpop.f32.mrb[26].mxu1  ;;  %v14193_v32 = vld [vmem:[#allocation69_spill] sm:$0xff] }
 0x366   : > { %v3726_v48 = vmax.f32 %v8386_v14, 0.0  ;;  %v8355_v15 = vadd.f32 %v2274_v58, %v850_v34  ;;  %6839 = vmatprep.mubr.f32.mxu1 %v13681_v38  ;;  %v2276_v25 = vpop.f32.mrb[27].mxu0  ;;  %5461 = vmatmul.mubr.f32.gmra.mrb[36].mxu0 %v14190_v44  ;;  %v8387_v60 = vadd.f32 %v3656_v40, %v850_v34  ;;  %v3658_v10 = vpop.f32.mrb[27].mxu1 }
 0x367   : > { %v7904_v27 = vpack.c.bf16 %v3724_v0, %v3723_v7  ;;  %v8356_v12 = vadd.f32 %v2276_v25, %v850_v34  ;;  %8212 = vmatpush1.bf16.msra.mxu0 %v14191_v1  ;;  %6843 = vmatmul.mubr.f32.gmra.mrb[36].mxu1 %v14190_v44  ;;  %v8388_v39 = vadd.f32 %v3658_v10, %v850_v34  ;;  %v14195_v34 = vld [vmem:[#allocation55_spill] sm:$0xff]  ;;  %v14197_v44 = vld [vmem:[#allocation81_spill] sm:$0xff] }
 0x368   : > { %v7905_v51 = vpack.c.bf16 %v3726_v48, %v3725_v9  ;;  %v3727_v45 = vmax.f32 %v8355_v15, 0.0  ;;  %8308 = vmatpush1.bf16.msra.mxu1 %v14192_v21  ;;  %8214 = vmatprep.subr.bf16.mxu0 %v14193_v32  ;;  %v3729_v4 = vmax.f32 %v8387_v60, 0.0  ;;  %v14196_v48 = vld [vmem:[#allocation85_spill] sm:$0xff] }
 0x369   : > { %3955 = vst [vmem:[%s12757_s12 + $0x180] sm:$0xff] %v7904_v27  ;;  %v3728_v22 = vmax.f32 %v8356_v12, 0.0  ;;  %8310 = vmatprep.subr.bf16.mxu1 %v14194_v31  ;;  %v2281_v54 = vpop.f32.mrb[28].mxu0  ;;  %5466 = vmatprep.mubr.f32.mxu0 %v13681_v38  ;;  %v3730_v7 = vmax.f32 %v8388_v39, 0.0  ;;  %v3663_v46 = vpop.f32.mrb[28].mxu1 }
 0x36a   : > { %3956 = vst [vmem:[%s12757_s12 + $0x188] sm:$0xff] %v7905_v51  ;;  %v8357_v14 = vadd.f32 %v2281_v54, %v855_v17  ;;  %6848 = vmatprep.mubr.f32.mxu1 %v13681_v38  ;;  %v2283_v63 = vpop.f32.mrb[29].mxu0  ;;  %5470 = vmatmul.mubr.f32.gmra.mrb[38].mxu0 %v14195_v34  ;;  %v8389_v0 = vadd.f32 %v3663_v46, %v855_v17  ;;  %v3665_v58 = vpop.f32.mrb[29].mxu1 }
 0x36b   : > { %v7906_v9 = vpack.c.bf16 %v3728_v22, %v3727_v45  ;;  %v8358_v28 = vadd.f32 %v2283_v63, %v855_v17  ;;  %8216 = vmatpush1.bf16.msra.mxu0 %v14196_v48  ;;  %6852 = vmatmul.mubr.f32.gmra.mrb[38].mxu1 %v14195_v34  ;;  %v7907_v15 = vpack.c.bf16 %v3730_v7, %v3729_v4  ;;  %v860_v27 = vpop.permute.xlu0 %859 }
 0x36c   : > { %v3731_v40 = vmax.f32 %v8357_v14, 0.0  ;;  %v8390_v25 = vadd.f32 %v3665_v58, %v855_v17  ;;  %8312 = vmatpush1.bf16.msra.mxu1 %v14197_v44  ;;  %8218 = vmatprep.subr.bf16.mxu0 %v14156_v61  ;;  %v3733_v60 = vmax.f32 %v8389_v0, 0.0 }
 0x36d   : > { %3957 = vst [vmem:[%s12757_s12 + $0x1a0] sm:$0xff] %v7906_v9  ;;  %v3732_v12 = vmax.f32 %v8358_v28, 0.0  ;;  %8314 = vmatprep.subr.bf16.mxu1 %v14157_v11  ;;  %v2288_v10 = vpop.f32.mrb[30].mxu0  ;;  %5475 = vmatprep.mubr.f32.mxu0 %v13681_v38  ;;  %3958 = vst [vmem:[%s12757_s12 + $0x1a8] sm:$0xff] %v7907_v15  ;;  %v3670_v45 = vpop.f32.mrb[30].mxu1 }
 0x36e   : > { %v3734_v1 = vmax.f32 %v8390_v25, 0.0  ;;  %v8359_v51 = vadd.f32 %v2288_v10, %v860_v27  ;;  %6857 = vmatprep.mubr.f32.mxu1 %v13681_v38  ;;  %v2290_v39 = vpop.f32.mrb[31].mxu0  ;;  %5479 = vmatmul.mubr.f32.gmra.mrb[40].mxu0 %v12421_v20  ;;  %v8391_v21 = vadd.f32 %v3670_v45, %v860_v27  ;;  %v3672_v17 = vpop.f32.mrb[31].mxu1 }
 0x36f   : > { %v7908_v61 = vpack.c.bf16 %v3732_v12, %v3731_v40  ;;  %v8360_v32 = vadd.f32 %v2290_v39, %v860_v27  ;;  %6861 = vmatmul.mubr.f32.gmra.mrb[40].mxu1 %v12421_v20  ;;  %5484 = vmatprep.mubr.f32.mxu0 %v13681_v38  ;;  %v8392_v22 = vadd.f32 %v3672_v17, %v860_v27 }
 0x370   : > { %v7909_v11 = vpack.c.bf16 %v3734_v1, %v3733_v60  ;;  %v3735_v4 = vmax.f32 %v8359_v51, 0.0  ;;  %6866 = vmatprep.mubr.f32.mxu1 %v13681_v38  ;;  %v3737_v31 = vmax.f32 %v8391_v21, 0.0 }
 0x371   : > { %3959 = vst [vmem:[%s12757_s12 + $0x1c0] sm:$0xff] %v7908_v61  ;;  %v3736_v54 = vmax.f32 %v8360_v32, 0.0  ;;  %v3738_v7 = vmax.f32 %v8392_v22, 0.0 }
 0x372   : > { %3960 = vst [vmem:[%s12757_s12 + $0x1c8] sm:$0xff] %v7909_v11  ;;  %5488 = vmatmul.mubr.f32.gmra.mrb[42].mxu0 %v12439_v6 }
 0x373   : > { %v7910_v14 = vpack.c.bf16 %v3736_v54, %v3735_v4  ;;  %6870 = vmatmul.mubr.f32.gmra.mrb[42].mxu1 %v12439_v6  ;;  %5493 = vmatprep.mubr.f32.mxu0 %v13681_v38  ;;  %v7911_v20 = vpack.c.bf16 %v3738_v7, %v3737_v31  ;;  %v14198_v6 = vld [vmem:[#allocation14_spill] sm:$0xff] }
 0x374   : > { %6875 = vmatprep.mubr.f32.mxu1 %v13681_v38 }
 0x375   : > { %3961 = vst [vmem:[%s12757_s12 + $0x1e0] sm:$0xff] %v7910_v14  ;;  %3962 = vst [vmem:[%s12757_s12 + $0x1e8] sm:$0xff] %v7911_v20 }
 0x376   : > { %5497 = vmatmul.mubr.f32.gmra.mrb[44].mxu0 %v12458_v53 }
 0x377   : > { %6879 = vmatmul.mubr.f32.gmra.mrb[44].mxu1 %v12458_v53  ;;  %5502 = vmatprep.mubr.f32.mxu0 %v13681_v38  ;;  %v14199_v53 = vld [vmem:[#allocation21_spill] sm:$0xff] }
 0x378   : > { %6884 = vmatprep.mubr.f32.mxu1 %v13681_v38 }
 0x37a   : > { %5506 = vmatmul.mubr.f32.gmra.mrb[46].mxu0 %v12472_v33 }
 0x37b   : > { %6888 = vmatmul.mubr.f32.gmra.mrb[46].mxu1 %v12472_v33  ;;  %5511 = vmatprep.mubr.f32.mxu0 %v13681_v38  ;;  %v14200_v33 = vld [vmem:[#allocation34_spill] sm:$0xff] }
 0x37c   : > { %6893 = vmatprep.mubr.f32.mxu1 %v13681_v38 }
 0x37e   : > { %5515 = vmatmul.mubr.f32.gmra.mrb[48].mxu0 %v12491_v56 }
 0x37f   : > { %6897 = vmatmul.mubr.f32.gmra.mrb[48].mxu1 %v12491_v56  ;;  %5520 = vmatprep.mubr.f32.mxu0 %v13681_v38  ;;  %v14201_v56 = vld [vmem:[#allocation35_spill] sm:$0xff] }
 0x380   : > { %6902 = vmatprep.mubr.f32.mxu1 %v13681_v38 }
 0x382   : > { %5524 = vmatmul.mubr.f32.gmra.mrb[50].mxu0 %v12509_v57 }
 0x383   : > { %6906 = vmatmul.mubr.f32.gmra.mrb[50].mxu1 %v12509_v57  ;;  %5529 = vmatprep.mubr.f32.mxu0 %v13681_v38  ;;  %v14202_v57 = vld [vmem:[#allocation87_spill] sm:$0xff] }
 0x384   : > { %6911 = vmatprep.mubr.f32.mxu1 %v13681_v38 }
 0x386   : > { %5533 = vmatmul.mubr.f32.gmra.mrb[52].mxu0 %v12526_v24 }
 0x387   : > { %6915 = vmatmul.mubr.f32.gmra.mrb[52].mxu1 %v12526_v24  ;;  %5538 = vmatprep.mubr.f32.mxu0 %v13681_v38  ;;  %v14203_v24 = vld [vmem:[#allocation90_spill] sm:$0xff] }
 0x388   : > { %6920 = vmatprep.mubr.f32.mxu1 %v13681_v38 }
 0x38a   : > { %5542 = vmatmul.mubr.f32.gmra.mrb[54].mxu0 %v12537_v50 }
 0x38b   : > { %6924 = vmatmul.mubr.f32.gmra.mrb[54].mxu1 %v12537_v50  ;;  %5547 = vmatprep.mubr.f32.mxu0 %v13681_v38  ;;  %v14204_v50 = vld [vmem:[#allocation95_spill] sm:$0xff] }
 0x38c   : > { %6929 = vmatprep.mubr.f32.mxu1 %v13681_v38 }
 0x38e   : > { %5551 = vmatmul.mubr.f32.gmra.mrb[56].mxu0 %v12555_v29 }
 0x38f   : > { %6933 = vmatmul.mubr.f32.gmra.mrb[56].mxu1 %v12555_v29  ;;  %5556 = vmatprep.mubr.f32.mxu0 %v13681_v38  ;;  %v14205_v29 = vld [vmem:[#allocation36_spill] sm:$0xff] }
 0x390   : > { %6938 = vmatprep.mubr.f32.mxu1 %v13681_v38 }
 0x392   : > { %5560 = vmatmul.mubr.f32.gmra.mrb[58].mxu0 %v12568_v26 }
 0x393   : > { %6942 = vmatmul.mubr.f32.gmra.mrb[58].mxu1 %v12568_v26  ;;  %5565 = vmatprep.mubr.f32.mxu0 %v13681_v38  ;;  %v14206_v26 = vld [vmem:[#allocation19_spill] sm:$0xff] }
 0x394   : > { %6947 = vmatprep.mubr.f32.mxu1 %v13681_v38 }
 0x396   : > { %5569 = vmatmul.mubr.f32.gmra.mrb[60].mxu0 %v14198_v6 }
 0x397   : > { %6951 = vmatmul.mubr.f32.gmra.mrb[60].mxu1 %v14198_v6  ;;  %5574 = vmatprep.mubr.f32.mxu0 %v13681_v38 }
 0x398   : > { %6956 = vmatprep.mubr.f32.mxu1 %v13681_v38 }
 0x39a   : > { %5578 = vmatmul.mubr.f32.gmra.mrb[62].mxu0 %v14199_v53 }
 0x39b   : > { %6960 = vmatmul.mubr.f32.gmra.mrb[62].mxu1 %v14199_v53  ;;  %5696 = vmatprep.mubr.f32.mxu0 %v13681_v38 }
 0x39c   : > { %7078 = vmatprep.mubr.f32.mxu1 %v13681_v38 }
 0x39e   : > { %5698 = vmatmul.mubr.f32.vlgmr.msra.gmra.mrb[32].mxu0 %v12246_v3 }
 0x39f   : > { %8220 = vmatpush1.bf16.msra.mxu0 %v14161_v18  ;;  %7080 = vmatmul.mubr.f32.vlgmr.msra.gmra.mrb[32].mxu1 %v12246_v3  ;;  %v14207_v18 = vld [vmem:[#allocation28_spill] sm:$0xff] }
 0x3a0   : > { %8316 = vmatpush1.bf16.msra.mxu1 %v14162_v19  ;;  %8222 = vmatprep.subr.bf16.mxu0 %v14163_v52 }
 0x3a1   : > { %8318 = vmatprep.subr.bf16.mxu1 %v14164_v55  ;;  %5703 = vmatprep.mubr.f32.mxu0 %v13681_v38  ;;  %v4500_v55 = vpop.permute.xlu0 %4499 }
 0x3a2   : > { %7085 = vmatprep.mubr.f32.mxu1 %v13681_v38  ;;  %5705 = vmatmul.mubr.f32.gmra.mrb[34].mxu0 %v12262_v30 }
 0x3a3   : > { %8224 = vmatpush1.bf16.msra.mxu0 %v14166_v23  ;;  %7087 = vmatmul.mubr.f32.gmra.mrb[34].mxu1 %v12262_v30 }
 0x3a4   : > { %8320 = vmatpush1.bf16.msra.mxu1 %v14167_v16  ;;  %8226 = vmatprep.subr.bf16.mxu0 %v14168_v8 }
 0x3a5   : > { %8322 = vmatprep.subr.bf16.mxu1 %v14169_v49  ;;  %5710 = vmatprep.mubr.f32.mxu0 %v13681_v38  ;;  %v4510_v45 = vpop.permute.xlu0 %4509 }
 0x3a6   : > { %7092 = vmatprep.mubr.f32.mxu1 %v13681_v38  ;;  %5712 = vmatmul.mubr.f32.gmra.mrb[36].mxu0 %v12296_v47 }
 0x3a7   : > { %8228 = vmatpush1.bf16.msra.mxu0 %v14171_v2  ;;  %7094 = vmatmul.mubr.f32.gmra.mrb[36].mxu1 %v12296_v47 }
 0x3a8   : > { %8324 = vmatpush1.bf16.msra.mxu1 %v14172_v42  ;;  %8230 = vmatprep.subr.bf16.mxu0 %v14173_v37 }
 0x3a9   : > { %8326 = vmatprep.subr.bf16.mxu1 %v14174_v5  ;;  %5717 = vmatprep.mubr.f32.mxu0 %v13681_v38 }
 0x3aa   : > { %7099 = vmatprep.mubr.f32.mxu1 %v13681_v38  ;;  %5719 = vmatmul.mubr.f32.gmra.mrb[38].mxu0 %v14150_v43 }
 0x3ab   : > { %8232 = vmatpush1.bf16.msra.mxu0 %v14176_v41  ;;  %7101 = vmatmul.mubr.f32.gmra.mrb[38].mxu1 %v14150_v43 }
 0x3ac   : > { %8328 = vmatpush1.bf16.msra.mxu1 %v14177_v59  ;;  %5724 = vmatprep.mubr.f32.mxu0 %v13681_v38 }
 0x3ad   : > { %7106 = vmatprep.mubr.f32.mxu1 %v13681_v38 }
 0x3ae   : > { %5726 = vmatmul.mubr.f32.gmra.mrb[40].mxu0 %v14158_v36 }
 0x3af   : > { %7108 = vmatmul.mubr.f32.gmra.mrb[40].mxu1 %v14158_v36  ;;  %5731 = vmatprep.mubr.f32.mxu0 %v13681_v38 }
 0x3b0   : > { %7113 = vmatprep.mubr.f32.mxu1 %v13681_v38 }
 0x3b2   : > { %5733 = vmatmul.mubr.f32.gmra.mrb[42].mxu0 %v14159_v35 }
 0x3b3   : > { %7115 = vmatmul.mubr.f32.gmra.mrb[42].mxu1 %v14159_v35  ;;  %5738 = vmatprep.mubr.f32.mxu0 %v13681_v38 }
 0x3b4   : > { %7120 = vmatprep.mubr.f32.mxu1 %v13681_v38 }
 0x3b6   : > { %5740 = vmatmul.mubr.f32.gmra.mrb[44].mxu0 %v12426_v13 }
 0x3b7   : > { %7122 = vmatmul.mubr.f32.gmra.mrb[44].mxu1 %v12426_v13  ;;  %5745 = vmatprep.mubr.f32.mxu0 %v13681_v38 }
 0x3b8   : > { %7127 = vmatprep.mubr.f32.mxu1 %v13681_v38 }
 0x3ba   : > { %5747 = vmatmul.mubr.f32.gmra.mrb[46].mxu0 %v12433_v62 }
 0x3bb   : > { %7129 = vmatmul.mubr.f32.gmra.mrb[46].mxu1 %v12433_v62  ;;  %5752 = vmatprep.mubr.f32.mxu0 %v13681_v38 }
 0x3bc   : > { %7134 = vmatprep.mubr.f32.mxu1 %v13681_v38 }
 0x3be   : > { %5754 = vmatmul.mubr.f32.gmra.mrb[48].mxu0 %v14200_v33 }
 0x3bf   : > { %7136 = vmatmul.mubr.f32.gmra.mrb[48].mxu1 %v14200_v33  ;;  %5759 = vmatprep.mubr.f32.mxu0 %v13681_v38 }
 0x3c0   : > { %7141 = vmatprep.mubr.f32.mxu1 %v13681_v38 }
 0x3c2   : > { %5761 = vmatmul.mubr.f32.gmra.mrb[50].mxu0 %v14201_v56 }
 0x3c3   : > { %7143 = vmatmul.mubr.f32.gmra.mrb[50].mxu1 %v14201_v56  ;;  %5766 = vmatprep.mubr.f32.mxu0 %v13681_v38 }
 0x3c4   : > { %7148 = vmatprep.mubr.f32.mxu1 %v13681_v38 }
 0x3c6   : > { %5768 = vmatmul.mubr.f32.gmra.mrb[52].mxu0 %v14202_v57 }
 0x3c7   : > { %7150 = vmatmul.mubr.f32.gmra.mrb[52].mxu1 %v14202_v57  ;;  %5773 = vmatprep.mubr.f32.mxu0 %v13681_v38 }
 0x3c8   : > { %7155 = vmatprep.mubr.f32.mxu1 %v13681_v38 }
 0x3ca   : > { %5775 = vmatmul.mubr.f32.gmra.mrb[54].mxu0 %v14203_v24 }
 0x3cb   : > { %7157 = vmatmul.mubr.f32.gmra.mrb[54].mxu1 %v14203_v24  ;;  %5780 = vmatprep.mubr.f32.mxu0 %v13681_v38 }
 0x3cc   : > { %7162 = vmatprep.mubr.f32.mxu1 %v13681_v38 }
 0x3ce   : > { %5782 = vmatmul.mubr.f32.gmra.mrb[56].mxu0 %v14204_v50 }
 0x3cf   : > { %7164 = vmatmul.mubr.f32.gmra.mrb[56].mxu1 %v14204_v50  ;;  %5787 = vmatprep.mubr.f32.mxu0 %v13681_v38 }
 0x3d0   : > { %7169 = vmatprep.mubr.f32.mxu1 %v13681_v38 }
 0x3d2   : > { %5789 = vmatmul.mubr.f32.gmra.mrb[58].mxu0 %v14205_v29 }
 0x3d3   : > { %7171 = vmatmul.mubr.f32.gmra.mrb[58].mxu1 %v14205_v29  ;;  %5794 = vmatprep.mubr.f32.mxu0 %v13681_v38 }
 0x3d4   : > { %7176 = vmatprep.mubr.f32.mxu1 %v13681_v38 }
 0x3d6   : > { %5796 = vmatmul.mubr.f32.gmra.mrb[60].mxu0 %v14206_v26 }
 0x3d7   : > { %7178 = vmatmul.mubr.f32.gmra.mrb[60].mxu1 %v14206_v26  ;;  %5801 = vmatprep.mubr.f32.mxu0 %v13681_v38 }
 0x3d8   : > { %7183 = vmatprep.mubr.f32.mxu1 %v13681_v38 }
 0x3da   : > { %5803 = vmatmul.mubr.f32.gmra.mrb[62].mxu0 %v14207_v18 }
 0x3db   : > { %7185 = vmatmul.mubr.f32.gmra.mrb[62].mxu1 %v14207_v18  ;;  %5889 = vmatprep.mubr.f32.mxu0 %v13681_v38 }
 0x3dc   : > { %7271 = vmatprep.mubr.f32.mxu1 %v13681_v38 }
 0x3de   : > { %5891 = vmatmul.mubr.f32.vlgmr.msra.gmra.mrb[32].mxu0 %v12246_v3 }
 0x3df   : > { %7273 = vmatmul.mubr.f32.vlgmr.msra.gmra.mrb[32].mxu1 %v12246_v3  ;;  %5896 = vmatprep.mubr.f32.mxu0 %v13681_v38  ;;  %v4495_v3 = vpop.permute.xlu1 %4494 }
 0x3e0   : > { %7278 = vmatprep.mubr.f32.mxu1 %v13681_v38 }
 0x3e2   : > { %5898 = vmatmul.mubr.f32.gmra.mrb[34].mxu0 %v12262_v30 }
 0x3e3   : > { %7280 = vmatmul.mubr.f32.gmra.mrb[34].mxu1 %v12262_v30  ;;  %5903 = vmatprep.mubr.f32.mxu0 %v13681_v38  ;;  %v4505_v9 = vpop.permute.xlu1 %4504 }
 0x3e4   : > { %7285 = vmatprep.mubr.f32.mxu1 %v13681_v38 }
 0x3e6   : > { %5905 = vmatmul.mubr.f32.gmra.mrb[36].mxu0 %v12296_v47 }
 0x3e7   : > { %7287 = vmatmul.mubr.f32.gmra.mrb[36].mxu1 %v12296_v47  ;;  %5910 = vmatprep.mubr.f32.mxu0 %v13681_v38  ;;  %v4515_v53 = vpop.permute.xlu1 %4514 }
 0x3e8   : > { %7292 = vmatprep.mubr.f32.mxu1 %v13681_v38 }
 0x3ea   : > { %5912 = vmatmul.mubr.f32.gmra.mrb[38].mxu0 %v14150_v43 }
 0x3eb   : > { %7294 = vmatmul.mubr.f32.gmra.mrb[38].mxu1 %v14150_v43  ;;  %5917 = vmatprep.mubr.f32.mxu0 %v13681_v38 }
 0x3ec   : > { %7299 = vmatprep.mubr.f32.mxu1 %v13681_v38 }
 0x3ee   : > { %5919 = vmatmul.mubr.f32.gmra.mrb[40].mxu0 %v14158_v36 }
 0x3ef   : > { %7301 = vmatmul.mubr.f32.gmra.mrb[40].mxu1 %v14158_v36  ;;  %5924 = vmatprep.mubr.f32.mxu0 %v13681_v38 }
 0x3f0   : > { %7306 = vmatprep.mubr.f32.mxu1 %v13681_v38 }
 0x3f2   : > { %5926 = vmatmul.mubr.f32.gmra.mrb[42].mxu0 %v14159_v35 }
 0x3f3   : > { %7308 = vmatmul.mubr.f32.gmra.mrb[42].mxu1 %v14159_v35  ;;  %5931 = vmatprep.mubr.f32.mxu0 %v13681_v38 }
 0x3f4   : > { %7313 = vmatprep.mubr.f32.mxu1 %v13681_v38 }
 0x3f6   : > { %5933 = vmatmul.mubr.f32.gmra.mrb[44].mxu0 %v12426_v13 }
 0x3f7   : > { %7315 = vmatmul.mubr.f32.gmra.mrb[44].mxu1 %v12426_v13  ;;  %5938 = vmatprep.mubr.f32.mxu0 %v13681_v38 }
 0x3f8   : > { %7320 = vmatprep.mubr.f32.mxu1 %v13681_v38 }
 0x3fa   : > { %5940 = vmatmul.mubr.f32.gmra.mrb[46].mxu0 %v12433_v62 }
 0x3fb   : > { %7322 = vmatmul.mubr.f32.gmra.mrb[46].mxu1 %v12433_v62  ;;  %5945 = vmatprep.mubr.f32.mxu0 %v13681_v38 }
 0x3fc   : > { %7327 = vmatprep.mubr.f32.mxu1 %v13681_v38 }
 0x3fe   : > { %5947 = vmatmul.mubr.f32.gmra.mrb[48].mxu0 %v14200_v33 }
 0x3ff   : > { %7329 = vmatmul.mubr.f32.gmra.mrb[48].mxu1 %v14200_v33  ;;  %5952 = vmatprep.mubr.f32.mxu0 %v13681_v38 }
 0x400   : > { %7334 = vmatprep.mubr.f32.mxu1 %v13681_v38 }
 0x402   : > { %5954 = vmatmul.mubr.f32.gmra.mrb[50].mxu0 %v14201_v56 }
 0x403   : > { %7336 = vmatmul.mubr.f32.gmra.mrb[50].mxu1 %v14201_v56  ;;  %5959 = vmatprep.mubr.f32.mxu0 %v13681_v38 }
 0x404   : > { %7341 = vmatprep.mubr.f32.mxu1 %v13681_v38 }
 0x406   : > { %5961 = vmatmul.mubr.f32.gmra.mrb[52].mxu0 %v14202_v57 }
 0x407   : > { %7343 = vmatmul.mubr.f32.gmra.mrb[52].mxu1 %v14202_v57  ;;  %5966 = vmatprep.mubr.f32.mxu0 %v13681_v38 }
 0x408   : > { %7348 = vmatprep.mubr.f32.mxu1 %v13681_v38 }
 0x40a   : > { %5968 = vmatmul.mubr.f32.gmra.mrb[54].mxu0 %v14203_v24 }
 0x40b   : > { %7350 = vmatmul.mubr.f32.gmra.mrb[54].mxu1 %v14203_v24  ;;  %5973 = vmatprep.mubr.f32.mxu0 %v13681_v38 }
 0x40c   : > { %7355 = vmatprep.mubr.f32.mxu1 %v13681_v38 }
 0x40e   : > { %5975 = vmatmul.mubr.f32.gmra.mrb[56].mxu0 %v14204_v50 }
 0x40f   : > { %7357 = vmatmul.mubr.f32.gmra.mrb[56].mxu1 %v14204_v50  ;;  %5980 = vmatprep.mubr.f32.mxu0 %v13681_v38 }
 0x410   : > { %7362 = vmatprep.mubr.f32.mxu1 %v13681_v38 }
 0x412   : > { %5982 = vmatmul.mubr.f32.gmra.mrb[58].mxu0 %v14205_v29 }
 0x413   : > { %7364 = vmatmul.mubr.f32.gmra.mrb[58].mxu1 %v14205_v29  ;;  %5987 = vmatprep.mubr.f32.mxu0 %v13681_v38 }
 0x414   : > { %7369 = vmatprep.mubr.f32.mxu1 %v13681_v38 }
 0x416   : > { %5989 = vmatmul.mubr.f32.gmra.mrb[60].mxu0 %v14206_v26 }
 0x417   : > { %7371 = vmatmul.mubr.f32.gmra.mrb[60].mxu1 %v14206_v26  ;;  %5994 = vmatprep.mubr.f32.mxu0 %v13681_v38 }
 0x418   : > { %7376 = vmatprep.mubr.f32.mxu1 %v13681_v38 }
 0x41a   : > { %5996 = vmatmul.mubr.f32.gmra.mrb[62].mxu0 %v14207_v18 }
 0x41b   : > { %7378 = vmatmul.mubr.f32.gmra.mrb[62].mxu1 %v14207_v18 }
 0x4b1   : > { %v5892_v30 = vpop.f32.mrb[32].mxu0 }
 0x4b2   : > { %v8393_v47 = vadd.f32 %v5892_v30, %v4495_v3  ;;  %v7274_v13 = vpop.f32.mrb[32].mxu1  ;;  %v5894_v62 = vpop.f32.mrb[33].mxu0 }
 0x4b3   : > { %v8425_v43 = vadd.f32 %v7274_v13, %v4495_v3  ;;  %v8394_v36 = vadd.f32 %v5894_v62, %v4495_v3  ;;  %v7276_v35 = vpop.f32.mrb[33].mxu1 }
 0x4b4   : > { %v7384_v19 = vmax.f32 %v8393_v47, 0.0  ;;  %v8426_v52 = vadd.f32 %v7276_v35, %v4495_v3 }
 0x4b5   : > { %v7386_v23 = vmax.f32 %v8425_v43, 0.0  ;;  %v7385_v16 = vmax.f32 %v8394_v36, 0.0  ;;  %v5899_v8 = vpop.f32.mrb[34].mxu0  ;;  %v4520_v36 = vpop.permute.xlu0 %4519 }
 0x4b6   : > { %v7387_v38 = vmax.f32 %v8426_v52, 0.0  ;;  %v8395_v49 = vadd.f32 %v5899_v8, %v4500_v55  ;;  %v7281_v2 = vpop.f32.mrb[34].mxu1  ;;  %v5901_v42 = vpop.f32.mrb[35].mxu0 }
 0x4b7   : > { %v7912_v37 = vpack.c.bf16 %v7385_v16, %v7384_v19  ;;  %v8427_v5 = vadd.f32 %v7281_v2, %v4500_v55  ;;  %v8396_v41 = vadd.f32 %v5901_v42, %v4500_v55  ;;  %v7283_v59 = vpop.f32.mrb[35].mxu1 }
 0x4b8   : > { %v7913_v46 = vpack.c.bf16 %v7387_v38, %v7386_v23  ;;  %v7388_v63 = vmax.f32 %v8395_v49, 0.0  ;;  %v8428_v34 = vadd.f32 %v7283_v59, %v4500_v55  ;;  %v4525_v59 = vpop.permute.xlu1 %4524 }
 0x4b9   : > { %7842 = vst [vmem:[%s12757_s12 + $0x10] sm:$0xff] %v7912_v37  ;;  %v7390_v0 = vmax.f32 %v8427_v5, 0.0  ;;  %v7389_v28 = vmax.f32 %v8396_v41, 0.0  ;;  %v5906_v58 = vpop.f32.mrb[36].mxu0 }
 0x4ba   : > { %7843 = vst [vmem:[%s12757_s12 + $0x18] sm:$0xff] %v7913_v46  ;;  %v7391_v48 = vmax.f32 %v8428_v34, 0.0  ;;  %v8397_v15 = vadd.f32 %v5906_v58, %v4505_v9  ;;  %v7288_v40 = vpop.f32.mrb[36].mxu1  ;;  %v5908_v25 = vpop.f32.mrb[37].mxu0 }
 0x4bb   : > { %v7914_v44 = vpack.c.bf16 %v7389_v28, %v7388_v63  ;;  %v8429_v27 = vadd.f32 %v7288_v40, %v4505_v9  ;;  %v8398_v60 = vadd.f32 %v5908_v25, %v4505_v9  ;;  %v7290_v12 = vpop.f32.mrb[37].mxu1 }
 0x4bc   : > { %v7915_v10 = vpack.c.bf16 %v7391_v48, %v7390_v0  ;;  %v7392_v1 = vmax.f32 %v8397_v15, 0.0  ;;  %v8430_v51 = vadd.f32 %v7290_v12, %v4505_v9  ;;  %v4530_v12 = vpop.permute.xlu0 %4529 }
 0x4bd   : > { %7844 = vst [vmem:[%s12757_s12 + $0x30] sm:$0xff] %v7914_v44  ;;  %v7394_v39 = vmax.f32 %v8429_v27, 0.0  ;;  %v7393_v61 = vmax.f32 %v8398_v60, 0.0  ;;  %v5913_v21 = vpop.f32.mrb[38].mxu0 }
 0x4be   : > { %7845 = vst [vmem:[%s12757_s12 + $0x38] sm:$0xff] %v7915_v10  ;;  %v7395_v32 = vmax.f32 %v8430_v51, 0.0  ;;  %v8399_v17 = vadd.f32 %v5913_v21, %v4510_v45  ;;  %v7295_v11 = vpop.f32.mrb[38].mxu1  ;;  %v5915_v4 = vpop.f32.mrb[39].mxu0 }
 0x4bf   : > { %v7916_v22 = vpack.c.bf16 %v7393_v61, %v7392_v1  ;;  %v8431_v31 = vadd.f32 %v7295_v11, %v4510_v45  ;;  %v8400_v54 = vadd.f32 %v5915_v4, %v4510_v45  ;;  %v7297_v7 = vpop.f32.mrb[39].mxu1 }
 0x4c0   : > { %v7917_v14 = vpack.c.bf16 %v7395_v32, %v7394_v39  ;;  %v7396_v20 = vmax.f32 %v8399_v17, 0.0  ;;  %v8432_v6 = vadd.f32 %v7297_v7, %v4510_v45  ;;  %v4535_v7 = vpop.permute.xlu1 %4534 }
 0x4c1   : > { %7846 = vst [vmem:[%s12757_s12 + $0x50] sm:$0xff] %v7916_v22  ;;  %v7398_v33 = vmax.f32 %v8431_v31, 0.0  ;;  %v7397_v56 = vmax.f32 %v8400_v54, 0.0  ;;  %v5920_v57 = vpop.f32.mrb[40].mxu0 }
 0x4c2   : > { %7847 = vst [vmem:[%s12757_s12 + $0x58] sm:$0xff] %v7917_v14  ;;  %v7399_v24 = vmax.f32 %v8432_v6, 0.0  ;;  %v8401_v50 = vadd.f32 %v5920_v57, %v4515_v53  ;;  %v7302_v29 = vpop.f32.mrb[40].mxu1  ;;  %v5922_v26 = vpop.f32.mrb[41].mxu0 }
 0x4c3   : > { %v7918_v18 = vpack.c.bf16 %v7397_v56, %v7396_v20  ;;  %v8433_v3 = vadd.f32 %v7302_v29, %v4515_v53  ;;  %v8402_v30 = vadd.f32 %v5922_v26, %v4515_v53  ;;  %v7304_v47 = vpop.f32.mrb[41].mxu1 }
 0x4c4   : > { %v7919_v13 = vpack.c.bf16 %v7399_v24, %v7398_v33  ;;  %v7400_v62 = vmax.f32 %v8401_v50, 0.0  ;;  %v8434_v43 = vadd.f32 %v7304_v47, %v4515_v53  ;;  %v4540_v47 = vpop.permute.xlu0 %4539 }
 0x4c5   : > { %7848 = vst [vmem:[%s12757_s12 + $0x70] sm:$0xff] %v7918_v18  ;;  %v7402_v35 = vmax.f32 %v8433_v3, 0.0  ;;  %v7401_v19 = vmax.f32 %v8402_v30, 0.0  ;;  %v5927_v52 = vpop.f32.mrb[42].mxu0 }
 0x4c6   : > { %7849 = vst [vmem:[%s12757_s12 + $0x78] sm:$0xff] %v7919_v13  ;;  %v7403_v55 = vmax.f32 %v8434_v43, 0.0  ;;  %v8403_v23 = vadd.f32 %v5927_v52, %v4520_v36  ;;  %v7309_v16 = vpop.f32.mrb[42].mxu1  ;;  %v5929_v8 = vpop.f32.mrb[43].mxu0 }
 0x4c7   : > { %v7920_v38 = vpack.c.bf16 %v7401_v19, %v7400_v62  ;;  %v8435_v49 = vadd.f32 %v7309_v16, %v4520_v36  ;;  %v8404_v2 = vadd.f32 %v5929_v8, %v4520_v36  ;;  %v7311_v42 = vpop.f32.mrb[43].mxu1 }
 0x4c8   : > { %v7921_v37 = vpack.c.bf16 %v7403_v55, %v7402_v35  ;;  %v7404_v5 = vmax.f32 %v8403_v23, 0.0  ;;  %v8436_v41 = vadd.f32 %v7311_v42, %v4520_v36  ;;  %v4545_v42 = vpop.permute.xlu1 %4544 }
 0x4c9   : > { %7850 = vst [vmem:[%s12757_s12 + $0x90] sm:$0xff] %v7920_v38  ;;  %v7406_v46 = vmax.f32 %v8435_v49, 0.0  ;;  %v7405_v63 = vmax.f32 %v8404_v2, 0.0  ;;  %v5934_v34 = vpop.f32.mrb[44].mxu0 }
 0x4ca   : > { %7851 = vst [vmem:[%s12757_s12 + $0x98] sm:$0xff] %v7921_v37  ;;  %v7407_v9 = vmax.f32 %v8436_v41, 0.0  ;;  %v8405_v0 = vadd.f32 %v5934_v34, %v4525_v59  ;;  %v7316_v28 = vpop.f32.mrb[44].mxu1  ;;  %v5936_v58 = vpop.f32.mrb[45].mxu0 }
 0x4cb   : > { %v7922_v48 = vpack.c.bf16 %v7405_v63, %v7404_v5  ;;  %v8437_v15 = vadd.f32 %v7316_v28, %v4525_v59  ;;  %v8406_v40 = vadd.f32 %v5936_v58, %v4525_v59  ;;  %v7318_v25 = vpop.f32.mrb[45].mxu1 }
 0x4cc   : > { %v7923_v44 = vpack.c.bf16 %v7407_v9, %v7406_v46  ;;  %v7408_v27 = vmax.f32 %v8405_v0, 0.0  ;;  %v8438_v60 = vadd.f32 %v7318_v25, %v4525_v59  ;;  %v4550_v25 = vpop.permute.xlu0 %4549 }
 0x4cd   : > { %7852 = vst [vmem:[%s12757_s12 + $0xb0] sm:$0xff] %v7922_v48  ;;  %v7410_v10 = vmax.f32 %v8437_v15, 0.0  ;;  %v7409_v1 = vmax.f32 %v8406_v40, 0.0  ;;  %v5941_v51 = vpop.f32.mrb[46].mxu0 }
 0x4ce   : > { %7853 = vst [vmem:[%s12757_s12 + $0xb8] sm:$0xff] %v7923_v44  ;;  %v7411_v45 = vmax.f32 %v8438_v60, 0.0  ;;  %v8407_v39 = vadd.f32 %v5941_v51, %v4530_v12  ;;  %v7323_v61 = vpop.f32.mrb[46].mxu1  ;;  %v5943_v21 = vpop.f32.mrb[47].mxu0 }
 0x4cf   : > { %v7924_v32 = vpack.c.bf16 %v7409_v1, %v7408_v27  ;;  %v8439_v17 = vadd.f32 %v7323_v61, %v4530_v12  ;;  %v8408_v11 = vadd.f32 %v5943_v21, %v4530_v12  ;;  %v7325_v4 = vpop.f32.mrb[47].mxu1 }
 0x4d0   : > { %v7925_v22 = vpack.c.bf16 %v7411_v45, %v7410_v10  ;;  %v7412_v31 = vmax.f32 %v8407_v39, 0.0  ;;  %v8440_v54 = vadd.f32 %v7325_v4, %v4530_v12  ;;  %v4555_v4 = vpop.permute.xlu1 %4554 }
 0x4d1   : > { %7854 = vst [vmem:[%s12757_s12 + $0xd0] sm:$0xff] %v7924_v32  ;;  %v7414_v14 = vmax.f32 %v8439_v17, 0.0  ;;  %v7413_v20 = vmax.f32 %v8408_v11, 0.0  ;;  %v5948_v6 = vpop.f32.mrb[48].mxu0 }
 0x4d2   : > { %7855 = vst [vmem:[%s12757_s12 + $0xd8] sm:$0xff] %v7925_v22  ;;  %v7415_v53 = vmax.f32 %v8440_v54, 0.0  ;;  %v8409_v33 = vadd.f32 %v5948_v6, %v4535_v7  ;;  %v7330_v56 = vpop.f32.mrb[48].mxu1  ;;  %v5950_v57 = vpop.f32.mrb[49].mxu0 }
 0x4d3   : > { %v7926_v24 = vpack.c.bf16 %v7413_v20, %v7412_v31  ;;  %v8441_v50 = vadd.f32 %v7330_v56, %v4535_v7  ;;  %v8410_v29 = vadd.f32 %v5950_v57, %v4535_v7  ;;  %v7332_v26 = vpop.f32.mrb[49].mxu1 }
 0x4d4   : > { %v7927_v18 = vpack.c.bf16 %v7415_v53, %v7414_v14  ;;  %v7416_v3 = vmax.f32 %v8409_v33, 0.0  ;;  %v8442_v30 = vadd.f32 %v7332_v26, %v4535_v7  ;;  %v4560_v26 = vpop.permute.xlu0 %4559 }
 0x4d5   : > { %7856 = vst [vmem:[%s12757_s12 + $0xf0] sm:$0xff] %v7926_v24  ;;  %v7418_v13 = vmax.f32 %v8441_v50, 0.0  ;;  %v7417_v62 = vmax.f32 %v8410_v29, 0.0  ;;  %v5955_v43 = vpop.f32.mrb[50].mxu0 }
 0x4d6   : > { %7857 = vst [vmem:[%s12757_s12 + $0xf8] sm:$0xff] %v7927_v18  ;;  %v7419_v36 = vmax.f32 %v8442_v30, 0.0  ;;  %v8411_v35 = vadd.f32 %v5955_v43, %v4540_v47  ;;  %v7337_v19 = vpop.f32.mrb[50].mxu1  ;;  %v5957_v52 = vpop.f32.mrb[51].mxu0 }
 0x4d7   : > { %v7928_v55 = vpack.c.bf16 %v7417_v62, %v7416_v3  ;;  %v8443_v23 = vadd.f32 %v7337_v19, %v4540_v47  ;;  %v8412_v16 = vadd.f32 %v5957_v52, %v4540_v47  ;;  %v7339_v8 = vpop.f32.mrb[51].mxu1 }
 0x4d8   : > { %v7929_v38 = vpack.c.bf16 %v7419_v36, %v7418_v13  ;;  %v7420_v49 = vmax.f32 %v8411_v35, 0.0  ;;  %v8444_v2 = vadd.f32 %v7339_v8, %v4540_v47  ;;  %v4565_v8 = vpop.permute.xlu1 %4564 }
 0x4d9   : > { %7858 = vst [vmem:[%s12757_s12 + $0x110] sm:$0xff] %v7928_v55  ;;  %v7422_v37 = vmax.f32 %v8443_v23, 0.0  ;;  %v7421_v5 = vmax.f32 %v8412_v16, 0.0  ;;  %v5962_v41 = vpop.f32.mrb[52].mxu0 }
 0x4da   : > { %7859 = vst [vmem:[%s12757_s12 + $0x118] sm:$0xff] %v7929_v38  ;;  %v7423_v59 = vmax.f32 %v8444_v2, 0.0  ;;  %v8413_v46 = vadd.f32 %v5962_v41, %v4545_v42  ;;  %v7344_v63 = vpop.f32.mrb[52].mxu1  ;;  %v5964_v34 = vpop.f32.mrb[53].mxu0 }
 0x4db   : > { %v7930_v9 = vpack.c.bf16 %v7421_v5, %v7420_v49  ;;  %v8445_v0 = vadd.f32 %v7344_v63, %v4545_v42  ;;  %v8414_v28 = vadd.f32 %v5964_v34, %v4545_v42  ;;  %v7346_v58 = vpop.f32.mrb[53].mxu1 }
 0x4dc   : > { %v7931_v48 = vpack.c.bf16 %v7423_v59, %v7422_v37  ;;  %v7424_v15 = vmax.f32 %v8413_v46, 0.0  ;;  %v8446_v40 = vadd.f32 %v7346_v58, %v4545_v42  ;;  %v4570_v58 = vpop.permute.xlu0 %4569 }
 0x4dd   : > { %7860 = vst [vmem:[%s12757_s12 + $0x130] sm:$0xff] %v7930_v9  ;;  %v7426_v44 = vmax.f32 %v8445_v0, 0.0  ;;  %v7425_v27 = vmax.f32 %v8414_v28, 0.0  ;;  %v5969_v60 = vpop.f32.mrb[54].mxu0 }
 0x4de   : > { %7861 = vst [vmem:[%s12757_s12 + $0x138] sm:$0xff] %v7931_v48  ;;  %v7427_v12 = vmax.f32 %v8446_v40, 0.0  ;;  %v8415_v10 = vadd.f32 %v5969_v60, %v4550_v25  ;;  %v7351_v1 = vpop.f32.mrb[54].mxu1  ;;  %v5971_v51 = vpop.f32.mrb[55].mxu0 }
 0x4df   : > { %v7932_v45 = vpack.c.bf16 %v7425_v27, %v7424_v15  ;;  %v8447_v39 = vadd.f32 %v7351_v1, %v4550_v25  ;;  %v8416_v61 = vadd.f32 %v5971_v51, %v4550_v25  ;;  %v7353_v21 = vpop.f32.mrb[55].mxu1 }
 0x4e0   : > { %v7933_v32 = vpack.c.bf16 %v7427_v12, %v7426_v44  ;;  %v7428_v17 = vmax.f32 %v8415_v10, 0.0  ;;  %v8448_v11 = vadd.f32 %v7353_v21, %v4550_v25 }
 0x4e1   : > { %7862 = vst [vmem:[%s12757_s12 + $0x150] sm:$0xff] %v7932_v45  ;;  %v7430_v22 = vmax.f32 %v8447_v39, 0.0  ;;  %v7429_v31 = vmax.f32 %v8416_v61, 0.0  ;;  %v5976_v54 = vpop.f32.mrb[56].mxu0 }
 0x4e2   : > { %7863 = vst [vmem:[%s12757_s12 + $0x158] sm:$0xff] %v7933_v32  ;;  %v7431_v7 = vmax.f32 %v8448_v11, 0.0  ;;  %v8417_v14 = vadd.f32 %v5976_v54, %v4555_v4  ;;  %v7358_v20 = vpop.f32.mrb[56].mxu1  ;;  %v5978_v6 = vpop.f32.mrb[57].mxu0 }
 0x4e3   : > { %v7934_v53 = vpack.c.bf16 %v7429_v31, %v7428_v17  ;;  %v8449_v33 = vadd.f32 %v7358_v20, %v4555_v4  ;;  %v8418_v56 = vadd.f32 %v5978_v6, %v4555_v4  ;;  %v7360_v57 = vpop.f32.mrb[57].mxu1 }
 0x4e4   : > { %v7935_v24 = vpack.c.bf16 %v7431_v7, %v7430_v22  ;;  %v7432_v50 = vmax.f32 %v8417_v14, 0.0  ;;  %v8450_v29 = vadd.f32 %v7360_v57, %v4555_v4 }
 0x4e5   : > { %7864 = vst [vmem:[%s12757_s12 + $0x170] sm:$0xff] %v7934_v53  ;;  %v7434_v18 = vmax.f32 %v8449_v33, 0.0  ;;  %v7433_v3 = vmax.f32 %v8418_v56, 0.0  ;;  %v5983_v30 = vpop.f32.mrb[58].mxu0 }
 0x4e6   : > { %7865 = vst [vmem:[%s12757_s12 + $0x178] sm:$0xff] %v7935_v24  ;;  %v7435_v47 = vmax.f32 %v8450_v29, 0.0  ;;  %v8419_v13 = vadd.f32 %v5983_v30, %v4560_v26  ;;  %v7365_v62 = vpop.f32.mrb[58].mxu1  ;;  %v5985_v43 = vpop.f32.mrb[59].mxu0 }
 0x4e7   : > { %v7936_v36 = vpack.c.bf16 %v7433_v3, %v7432_v50  ;;  %v8451_v35 = vadd.f32 %v7365_v62, %v4560_v26  ;;  %v8420_v19 = vadd.f32 %v5985_v43, %v4560_v26  ;;  %v7367_v52 = vpop.f32.mrb[59].mxu1 }
 0x4e8   : > { %v7937_v55 = vpack.c.bf16 %v7435_v47, %v7434_v18  ;;  %v7436_v23 = vmax.f32 %v8419_v13, 0.0  ;;  %v8452_v16 = vadd.f32 %v7367_v52, %v4560_v26 }
 0x4e9   : > { %7866 = vst [vmem:[%s12757_s12 + $0x190] sm:$0xff] %v7936_v36  ;;  %v7438_v38 = vmax.f32 %v8451_v35, 0.0  ;;  %v7437_v49 = vmax.f32 %v8420_v19, 0.0  ;;  %v5990_v2 = vpop.f32.mrb[60].mxu0 }
 0x4ea   : > { %7867 = vst [vmem:[%s12757_s12 + $0x198] sm:$0xff] %v7937_v55  ;;  %v7439_v42 = vmax.f32 %v8452_v16, 0.0  ;;  %v8421_v37 = vadd.f32 %v5990_v2, %v4565_v8  ;;  %v7372_v5 = vpop.f32.mrb[60].mxu1  ;;  %v5992_v41 = vpop.f32.mrb[61].mxu0 }
 0x4eb   : > { %v7938_v59 = vpack.c.bf16 %v7437_v49, %v7436_v23  ;;  %v8453_v46 = vadd.f32 %v7372_v5, %v4565_v8  ;;  %v8422_v63 = vadd.f32 %v5992_v41, %v4565_v8  ;;  %v7374_v34 = vpop.f32.mrb[61].mxu1 }
 0x4ec   : > { %v7939_v9 = vpack.c.bf16 %v7439_v42, %v7438_v38  ;;  %v7440_v0 = vmax.f32 %v8421_v37, 0.0  ;;  %v8454_v28 = vadd.f32 %v7374_v34, %v4565_v8 }
 0x4ed   : > { %7868 = vst [vmem:[%s12757_s12 + $0x1b0] sm:$0xff] %v7938_v59  ;;  %v7442_v48 = vmax.f32 %v8453_v46, 0.0  ;;  %v7441_v15 = vmax.f32 %v8422_v63, 0.0  ;;  %v5997_v40 = vpop.f32.mrb[62].mxu0 }
 0x4ee   : > { %7869 = vst [vmem:[%s12757_s12 + $0x1b8] sm:$0xff] %v7939_v9  ;;  %v7443_v25 = vmax.f32 %v8454_v28, 0.0  ;;  %v8423_v44 = vadd.f32 %v5997_v40, %v4570_v58  ;;  %v7379_v27 = vpop.f32.mrb[62].mxu1  ;;  %v5999_v60 = vpop.f32.mrb[63].mxu0 }
 0x4ef   : > { %v7940_v12 = vpack.c.bf16 %v7441_v15, %v7440_v0  ;;  %v8455_v10 = vadd.f32 %v7379_v27, %v4570_v58  ;;  %v8424_v1 = vadd.f32 %v5999_v60, %v4570_v58  ;;  %v7381_v51 = vpop.f32.mrb[63].mxu1 }
 0x4f0   : > { %v7941_v45 = vpack.c.bf16 %v7443_v25, %v7442_v48  ;;  %v7444_v39 = vmax.f32 %v8423_v44, 0.0  ;;  %v8456_v61 = vadd.f32 %v7381_v51, %v4570_v58 }
 0x4f1   : > { %7870 = vst [vmem:[%s12757_s12 + $0x1d0] sm:$0xff] %v7940_v12  ;;  %v7446_v21 = vmax.f32 %v8455_v10, 0.0  ;;  %v7445_v32 = vmax.f32 %v8424_v1, 0.0 }
 0x4f2   : > { %7871 = vst [vmem:[%s12757_s12 + $0x1d8] sm:$0xff] %v7941_v45  ;;  %v7447_v17 = vmax.f32 %v8456_v61, 0.0 }
 0x4f3   : > { %v7942_v11 = vpack.c.bf16 %v7445_v32, %v7444_v39 }
 0x4f4   : > { %v7943_v4 = vpack.c.bf16 %v7447_v17, %v7446_v21 }
 0x4f5   : > { %7872 = vst [vmem:[%s12757_s12 + $0x1f0] sm:$0xff] %v7942_v11 }
 0x4f6   : > { %7873 = vst [vmem:[%s12757_s12 + $0x1f8] sm:$0xff] %v7943_v4 }
 0x4f7   : > { %9202 = shalt.err (!%p9199_p5)
}
 0x4f8   : > { %s9203_s7 = scalar_lea.hbm %s13082_s17, 8192  ;;  %s9207_s10 = scalar_lea.hbm %s13141_s5, 16384 }
 0x4f9   : > { %p9204_p6 = scmp.ne.s32.totalorder %s13082_s17, %s9203_s7  ;;  %p9208_p10 = scmp.lt.u32.totalorder %s13082_s17, %s13141_s5 }
 0x4fa   : > { %p9209_p11 = scmp.lt.u32.totalorder %s9207_s10, %s9203_s7  ;;  %p9211_p13 = scmp.lt.u32.totalorder %s9203_s7, %s13082_s17 }
 0x4fb   : > { %p9205_p7 = pnand %p9204_p6, %p9346_p4 }
 0x4fc   : > { %p9210_p12 = por %p9209_p11, %p9208_p10 }
 0x4fd   : > { %p9206_p9 = pneg %p9205_p7 }
 0x4fe   : > { %p9212_p0 = por %p9211_p13, %p9210_p12 }
 0x500   : > { %p9213_p1 = pnand %p9212_p0, %p9206_p9 }
 0x502   : > { %9216 = shalt.err (!%p9213_p1)
}
 0x503   : > { %s9274_s13 = smov 512   ;;  %s9275_s15 = smov 32  }
 0x504   : > { %9097 = dma.vmem_to_hbm [thread:$0]  (%p9346_p4), %s13084_s14, 8192, %s13082_s17, %s13090_s21, %s9274_s13, %s9274_s13, %s9275_s15  }
 0x505 PF: > { %p9103_p2 = scmp.ge.s32.totalorder %s9267_s23, 2  ;;  %s7704_s16 = sand.u32 1, %s9247_s18  }
 0x506   : > { %s7705_s24 = scalar_lea.sflag [#allocation3], %s7704_s16 }
 0x507   : > { %p9100_p3 = pnand %p9103_p2, %p9353_p8 }
 0x509   : > { %9242 = dma.done.wait (!%p9100_p3), %s7705_s24, 8192  }
 0x50a   : > { %9244 = vsyncadd (!%p9100_p3), %s7705_s24, 4294959104  ;;  %s18_s23 = sadd.s32 1, %s9267_s23   ;;  %s14208_s18 = smov %s9251_s19 }
 0x50b   : > { %p15_p5 = scmp.ge.s32.totalorder %s18_s23, 4   ;;  %s14209_s19 = smov %s9255_s20 }
 0x50c   : > { %s14210_s20 = smov %s9359_s6  ;;  %s14211_s21 = smov %s9263_s22 }
 0x50d   : > { %s14212_s22 = smov %s14214_s26  ;;  %17 = sbr.rel (!%p15_p5) target bundleno = 4 (0x4), region = 77 }
 0x514   :  { %7710 = vsyncpa [#allocation3], 1 }
 0x515   :  { %7712 = vsyncpa [#allocation3 + $0x1], 1 }

</bundles_post_ra>
